<compile_context>
chip_gen: v5e
topology: v5e:2x2
jax: 0.10.0
libtpu: 0.0.40
codegen_flags: <defaults>
</compile_context>

<pallas_src>
import functools

import jax
import jax.numpy as jnp
import numpy as np
from jax.experimental import pallas as pl
from jax.experimental.pallas import tpu as pltpu


def _round_up(a, b):
    return (a + b - 1) // b * b


# ----------------------------- Pallas kernel --------------------------------

def _make_caps_kernel(*, K, s, Hp, Ho, Wo, tb, P, N_pad):
    """Fused shifted-window conv + bias + capsule-squash kernel (one b-tile)."""

    def kernel(xp_ref, w_ref, b_ref, s_ref, st_ref, o_ref):
        # xp: (tb, s*s*Hp, Wp, C) f32   polyphase-decomposed input tile
        # w : (K*K, C, N_pad)     bf16  per-(kh,kw) weight slab, col = oc*n_caps+cap
        # b : (1, N_pad)          f32   bias (same column order)
        # s : (N_pad, G_pad)      bf16  column -> capsule-group one-hot
        # st: (G_pad, N_pad)      bf16  group sum -> columns (transpose of s)
        # o : (tb, P, N_pad)      f32   squashed conv output
        C = xp_ref.shape[-1]
        acc = jnp.zeros((tb * P, N_pad), jnp.float32)
        # Fully-unrolled static loop over kernel taps; all slice offsets are
        # static so there is no dynamic-slice lowering risk.
        for kh in range(K):
            for kw in range(K):
                ph, dh = kh % s, kh // s
                pw, dw = kw % s, kw // s
                base = (ph * s + pw) * Hp
                win = xp_ref[:, base + dh:base + dh + Ho, dw:dw + Wo, :]
                # TODO(synk): the (tb,Ho,Wo,C)->(tb*P,C) reshape can relayout;
                # a multi-free-dim dot_general (or Wp-wide matmul + shifted
                # accumulate) would avoid the per-tap copy if it shows up hot.
                lhs = win.reshape(tb * P, C).astype(jnp.bfloat16)
                acc = acc + jnp.dot(lhs, w_ref[kh * K + kw],
                                    preferred_element_type=jnp.float32)

        # ---- epilogue: bias + squash over the capsule axis -----------------
        y = acc + b_ref[...]                                    # (tb*P, N_pad)
        y2 = (y * y).astype(jnp.bfloat16)
        grp = jnp.dot(y2, s_ref[...], preferred_element_type=jnp.float32)
        sj2 = jnp.dot(grp.astype(jnp.bfloat16), st_ref[...],
                      preferred_element_type=jnp.float32)       # (tb*P, N_pad)
        # squash scale = sqrt(sj2) / (1 + sj2); EUP ops, eps-protected vs 0/0
        # (reference/PyTorch divide by sqrt(sj2) unprotected — differs only at
        # exactly-zero capsule vectors).
        scale = (sj2 * jax.lax.rsqrt(sj2 + 1e-12)
                 * pl.reciprocal(1.0 + sj2, approx=True))
        o_ref[...] = (y * scale).reshape(o_ref.shape)

    return kernel


# ------------------------------- wrapper ------------------------------------

def primary_capsule_forward(x, W_all, b_all, *, kernel_size, stride):
    """x: (B, in_ch, H, W) NCHW.  W_all: (n_caps, out_ch, in_ch, K, K).
    b_all: (n_caps, out_ch).  Returns (B, out_ch*Ho*Wo, n_caps) like PyTorch."""
    B, C, H, Wd = x.shape
    n_capsules, out_ch = b_all.shape
    K, s = kernel_size, stride
    Ho = (H - K) // s + 1
    Wo = (Wd - K) // s + 1
    P = Ho * Wo
    N = n_capsules * out_ch
    N_pad = _round_up(N, 128)
    G_pad = _round_up(out_ch, 128)
    Hp = -(-H // s)
    Wp = -(-Wd // s)

    # --- batch tiling: >= 2 tiles when B >= 2 (megacore), VMEM-bounded -------
    tb = max(1, min(8, B // 2))
    while tb > 1 and tb * (s * s * Hp) * Wp * C * 4 > 24 * (1 << 20):
        tb = max(1, tb // 2)
    B_pad = _round_up(B, tb)
    grid = (B_pad // tb,)

    # --- zero-expansion polyphase decomposition of x (NCHW -> NHWC phases) ---
    xt = jnp.transpose(x, (0, 2, 3, 1))                        # (B, H, W, C)
    xt = jnp.pad(xt, ((0, B_pad - B), (0, Hp * s - H), (0, Wp * s - Wd), (0, 0)))
    xr = xt.reshape(B_pad, Hp, s, Wp, s, C)                    # (b, ih, ph, iw, pw, c)
    phases = xr.transpose(0, 2, 4, 1, 3, 5).reshape(B_pad, s * s * Hp, Wp, C)
    # TODO(synk): store phases in bf16 to halve the (already ~20x reduced)
    # input HBM traffic once packed-dtype relayout coverage is confirmed.

    # --- weights as per-(kh,kw) (C, N) slabs, column j = oc*n_caps + cap -----
    Wmat = jnp.transpose(W_all, (3, 4, 2, 1, 0)).reshape(K * K, C, N)
    Wmat = jnp.pad(Wmat, ((0, 0), (0, 0), (0, N_pad - N))).astype(jnp.bfloat16)
    bvec = jnp.pad(jnp.transpose(b_all).reshape(1, N).astype(jnp.float32),
                   ((0, 0), (0, N_pad - N)))

    # --- thin capsule-group matrices (0/1, exact in bf16) --------------------
    col = jnp.arange(N_pad)
    g = jnp.arange(G_pad)
    S = ((col[:, None] // n_capsules == g[None, :])
         & (col[:, None] < N) & (g[None, :] < out_ch)).astype(jnp.bfloat16)
    ST = jnp.transpose(S)

    kernel = _make_caps_kernel(K=K, s=s, Hp=Hp, Ho=Ho, Wo=Wo, tb=tb, P=P,
                               N_pad=N_pad)

    est_vmem = (2 * tb * (s * s * Hp) * Wp * C * 4          # phases (dbl-buffered)
                + 2 * K * K * C * N_pad * 2                 # weights
                + 2 * (2 * N_pad * G_pad * 2 + N_pad * 4)   # S, ST, bias
                + 2 * tb * P * N_pad * 4                    # output block
                + 4 * tb * P * N_pad * 4)                   # acc + epilogue temps
    vmem_limit = int(min(max(2 * est_vmem, 32 << 20), 48 << 20))

    out_pad = pl.pallas_call(
        kernel,
        out_shape=jax.ShapeDtypeStruct((B_pad, P, N_pad), jnp.float32),
        grid=grid,
        in_specs=[
            pl.BlockSpec((tb, s * s * Hp, Wp, C), lambda b: (b, 0, 0, 0)),
            pl.BlockSpec((K * K, C, N_pad), lambda b: (0, 0, 0)),
            pl.BlockSpec((1, N_pad), lambda b: (0, 0)),
            pl.BlockSpec((N_pad, G_pad), lambda b: (0, 0)),
            pl.BlockSpec((G_pad, N_pad), lambda b: (0, 0)),
        ],
        out_specs=pl.BlockSpec((tb, P, N_pad), lambda b: (b, 0, 0)),
        compiler_params=pltpu.CompilerParams(
            dimension_semantics=("parallel",),
            vmem_limit_bytes=vmem_limit),
        cost_estimate=pl.CostEstimate(
            flops=2 * B_pad * P * N_pad * (C * K * K + 2 * G_pad),
            transcendentals=2 * B_pad * P * N_pad,
            bytes_accessed=(B_pad * s * s * Hp * Wp * C * 4
                            + K * K * C * N_pad * 2
                            + 2 * N_pad * G_pad * 2 + N_pad * 4
                            + B_pad * P * N_pad * 4)),
    )(phases, Wmat, bvec, S, ST)

    # --- glue: slice padding, rearrange to PyTorch layout --------------------
    # row = (b, p); col = oc*n_caps + cap  ->  (b, oc*P + p, cap)
    out = out_pad[:B, :, :N].reshape(B, P, out_ch, n_capsules)
    out = out.transpose(0, 2, 1, 3).reshape(B, out_ch * P, n_capsules)
    return out


# --------------------------- pure-JAX reference ------------------------------

def primary_capsule_reference(x, W_all, b_all, *, kernel_size, stride):
    n_capsules = W_all.shape[0]
    outs = []
    for c in range(n_capsules):
        y = jax.lax.conv_general_dilated(
            x, W_all[c], window_strides=(stride, stride), padding="VALID",
            dimension_numbers=("NCHW", "OIHW", "NCHW"))
        y = y + b_all[c][None, :, None, None]
        outs.append(y.reshape(x.shape[0], -1, 1))
    out = jnp.concatenate(outs, axis=-1)
    sj2 = jnp.sum(out ** 2, axis=-1, keepdims=True)
    sj = jnp.sqrt(sj2)
    return sj2 / (1.0 + sj2) * out / sj


# --------------------------------- main --------------------------------------

if __name__ == "__main__":
    # Small shapes consistent with the module: n_capsules=8, kernel_size=9,
    # stride=2 (module defaults), with in_ch=4, out_ch=8, spatial=16.
    B, in_ch, H, W = 2, 4, 16, 16
    n_capsules, out_ch, kernel_size, stride = 8, 8, 9, 2

    key = jax.random.PRNGKey(0)
    kx, kw, kb = jax.random.split(key, 3)
    x = jax.random.normal(kx, (B, in_ch, H, W), dtype=jnp.float32)
    W_all = 0.1 * jax.random.normal(
        kw, (n_capsules, out_ch, in_ch, kernel_size, kernel_size),
        dtype=jnp.float32)
    b_all = 0.1 * jax.random.normal(kb, (n_capsules, out_ch), dtype=jnp.float32)

    fwd = jax.jit(functools.partial(primary_capsule_forward,
                                    kernel_size=kernel_size, stride=stride))
    out = jax.block_until_ready(fwd(x, W_all, b_all))

    ref = primary_capsule_reference(x, W_all, b_all,
                                    kernel_size=kernel_size, stride=stride)
    ref = jax.block_until_ready(ref)

    assert out.shape == ref.shape == (B, out_ch * 4 * 4, n_capsules), out.shape
    # Tolerance loosened vs a pure-f32 path: MXU operands are bf16 (inputs,
    # weights, and the y^2 group-sum), with all accumulation in f32.
    np.testing.assert_allclose(np.asarray(out), np.asarray(ref),
                               rtol=2e-2, atol=2e-2)

    print("KERNEL_OK")
</pallas_src>

<mosaic_0001>
module attributes {stable_mosaic.version = 11 : i64} {
  func.func @kernel(%arg0: i32, %arg1: memref<1x32x8x4xf32, #tpu.memory_space<vmem>>, %arg2: memref<81x4x128xbf16, #tpu.memory_space<vmem>>, %arg3: memref<1x128xf32, #tpu.memory_space<vmem>>, %arg4: memref<128x128xbf16, #tpu.memory_space<vmem>>, %arg5: memref<128x128xbf16, #tpu.memory_space<vmem>>, %arg6: memref<1x16x128xf32, #tpu.memory_space<vmem>>) attributes {dimension_semantics = [#tpu.dimension_semantics<parallel>], iteration_bounds = array<i64: 2>, scalar_prefetch = 0 : i64, scratch_operands = 0 : i64, tpu.core_type = #tpu.core_type<tc>, window_params = [{transform_indices = @transform_0, window_bounds = array<i64: 1, 32, 8, 4>}, {pipeline_mode = #tpu.pipeline_mode<synchronous>, transform_indices = @transform_1, window_bounds = array<i64: 81, 4, 128>}, {pipeline_mode = #tpu.pipeline_mode<synchronous>, transform_indices = @transform_2, window_bounds = array<i64: 1, 128>}, {pipeline_mode = #tpu.pipeline_mode<synchronous>, transform_indices = @transform_3, window_bounds = array<i64: 128, 128>}, {pipeline_mode = #tpu.pipeline_mode<synchronous>, transform_indices = @transform_4, window_bounds = array<i64: 128, 128>}, {transform_indices = @transform_5, window_bounds = array<i64: 1, 16, 128>}]} {
    %cst = arith.constant 0.000000e+00 : f32
    %0 = vector.broadcast %cst : f32 to vector<16x128xf32>
    %c0 = arith.constant 0 : index
    %c0_0 = arith.constant 0 : index
    %c0_1 = arith.constant 0 : index
    %c0_2 = arith.constant 0 : index
    %1 = vector.load %arg1[%c0, %c0_0, %c0_1, %c0_2] : memref<1x32x8x4xf32, #tpu.memory_space<vmem>>, vector<1x4x4x4xf32>
    %2 = vector.shape_cast %1 : vector<1x4x4x4xf32> to vector<16x4xf32>
    %3 = arith.truncf %2 : vector<16x4xf32> to vector<16x4xbf16>
    %c0_3 = arith.constant 0 : index
    %c0_4 = arith.constant 0 : index
    %c0_5 = arith.constant 0 : index
    %4 = vector.load %arg2[%c0_3, %c0_4, %c0_5] : memref<81x4x128xbf16, #tpu.memory_space<vmem>>, vector<1x4x128xbf16>
    %5 = vector.shape_cast %4 : vector<1x4x128xbf16> to vector<4x128xbf16>
    %cst_6 = arith.constant dense<0.000000e+00> : vector<16x128xf32>
    %6 = tpu.matmul %3, %5, %cst_6 {dimension_numbers = #tpu.dot_dimension_numbers<[1], [0], [0], [1], [0, 0, 1, 1], [], []>} : vector<16x4xbf16>, vector<4x128xbf16>, vector<16x128xf32> -> vector<16x128xf32>
    %7 = arith.addf %0, %6 : vector<16x128xf32>
    %c0_7 = arith.constant 0 : index
    %c8 = arith.constant 8 : index
    %c0_8 = arith.constant 0 : index
    %c0_9 = arith.constant 0 : index
    %8 = vector.load %arg1[%c0_7, %c8, %c0_8, %c0_9] : memref<1x32x8x4xf32, #tpu.memory_space<vmem>>, vector<1x4x4x4xf32>
    %9 = vector.shape_cast %8 : vector<1x4x4x4xf32> to vector<16x4xf32>
    %10 = arith.truncf %9 : vector<16x4xf32> to vector<16x4xbf16>
    %c1 = arith.constant 1 : index
    %c0_10 = arith.constant 0 : index
    %c0_11 = arith.constant 0 : index
    %11 = vector.load %arg2[%c1, %c0_10, %c0_11] : memref<81x4x128xbf16, #tpu.memory_space<vmem>>, vector<1x4x128xbf16>
    %12 = vector.shape_cast %11 : vector<1x4x128xbf16> to vector<4x128xbf16>
    %cst_12 = arith.constant dense<0.000000e+00> : vector<16x128xf32>
    %13 = tpu.matmul %10, %12, %cst_12 {dimension_numbers = #tpu.dot_dimension_numbers<[1], [0], [0], [1], [0, 0, 1, 1], [], []>} : vector<16x4xbf16>, vector<4x128xbf16>, vector<16x128xf32> -> vector<16x128xf32>
    %14 = arith.addf %7, %13 : vector<16x128xf32>
    %c0_13 = arith.constant 0 : index
    %c0_14 = arith.constant 0 : index
    %c1_15 = arith.constant 1 : index
    %c0_16 = arith.constant 0 : index
    %15 = vector.load %arg1[%c0_13, %c0_14, %c1_15, %c0_16] : memref<1x32x8x4xf32, #tpu.memory_space<vmem>>, vector<1x4x4x4xf32>
    %16 = vector.shape_cast %15 : vector<1x4x4x4xf32> to vector<16x4xf32>
    %17 = arith.truncf %16 : vector<16x4xf32> to vector<16x4xbf16>
    %c2 = arith.constant 2 : index
    %c0_17 = arith.constant 0 : index
    %c0_18 = arith.constant 0 : index
    %18 = vector.load %arg2[%c2, %c0_17, %c0_18] : memref<81x4x128xbf16, #tpu.memory_space<vmem>>, vector<1x4x128xbf16>
    %19 = vector.shape_cast %18 : vector<1x4x128xbf16> to vector<4x128xbf16>
    %cst_19 = arith.constant dense<0.000000e+00> : vector<16x128xf32>
    %20 = tpu.matmul %17, %19, %cst_19 {dimension_numbers = #tpu.dot_dimension_numbers<[1], [0], [0], [1], [0, 0, 1, 1], [], []>} : vector<16x4xbf16>, vector<4x128xbf16>, vector<16x128xf32> -> vector<16x128xf32>
    %21 = arith.addf %14, %20 : vector<16x128xf32>
    %c0_20 = arith.constant 0 : index
    %c8_21 = arith.constant 8 : index
    %c1_22 = arith.constant 1 : index
    %c0_23 = arith.constant 0 : index
    %22 = vector.load %arg1[%c0_20, %c8_21, %c1_22, %c0_23] : memref<1x32x8x4xf32, #tpu.memory_space<vmem>>, vector<1x4x4x4xf32>
    %23 = vector.shape_cast %22 : vector<1x4x4x4xf32> to vector<16x4xf32>
    %24 = arith.truncf %23 : vector<16x4xf32> to vector<16x4xbf16>
    %c3 = arith.constant 3 : index
    %c0_24 = arith.constant 0 : index
    %c0_25 = arith.constant 0 : index
    %25 = vector.load %arg2[%c3, %c0_24, %c0_25] : memref<81x4x128xbf16, #tpu.memory_space<vmem>>, vector<1x4x128xbf16>
    %26 = vector.shape_cast %25 : vector<1x4x128xbf16> to vector<4x128xbf16>
    %cst_26 = arith.constant dense<0.000000e+00> : vector<16x128xf32>
    %27 = tpu.matmul %24, %26, %cst_26 {dimension_numbers = #tpu.dot_dimension_numbers<[1], [0], [0], [1], [0, 0, 1, 1], [], []>} : vector<16x4xbf16>, vector<4x128xbf16>, vector<16x128xf32> -> vector<16x128xf32>
    %28 = arith.addf %21, %27 : vector<16x128xf32>
    %c0_27 = arith.constant 0 : index
    %c0_28 = arith.constant 0 : index
    %c2_29 = arith.constant 2 : index
    %c0_30 = arith.constant 0 : index
    %29 = vector.load %arg1[%c0_27, %c0_28, %c2_29, %c0_30] : memref<1x32x8x4xf32, #tpu.memory_space<vmem>>, vector<1x4x4x4xf32>
    %30 = vector.shape_cast %29 : vector<1x4x4x4xf32> to vector<16x4xf32>
    %31 = arith.truncf %30 : vector<16x4xf32> to vector<16x4xbf16>
    %c4 = arith.constant 4 : index
    %c0_31 = arith.constant 0 : index
    %c0_32 = arith.constant 0 : index
    %32 = vector.load %arg2[%c4, %c0_31, %c0_32] : memref<81x4x128xbf16, #tpu.memory_space<vmem>>, vector<1x4x128xbf16>
    %33 = vector.shape_cast %32 : vector<1x4x128xbf16> to vector<4x128xbf16>
    %cst_33 = arith.constant dense<0.000000e+00> : vector<16x128xf32>
    %34 = tpu.matmul %31, %33, %cst_33 {dimension_numbers = #tpu.dot_dimension_numbers<[1], [0], [0], [1], [0, 0, 1, 1], [], []>} : vector<16x4xbf16>, vector<4x128xbf16>, vector<16x128xf32> -> vector<16x128xf32>
    %35 = arith.addf %28, %34 : vector<16x128xf32>
    %c0_34 = arith.constant 0 : index
    %c8_35 = arith.constant 8 : index
    %c2_36 = arith.constant 2 : index
    %c0_37 = arith.constant 0 : index
    %36 = vector.load %arg1[%c0_34, %c8_35, %c2_36, %c0_37] : memref<1x32x8x4xf32, #tpu.memory_space<vmem>>, vector<1x4x4x4xf32>
    %37 = vector.shape_cast %36 : vector<1x4x4x4xf32> to vector<16x4xf32>
    %38 = arith.truncf %37 : vector<16x4xf32> to vector<16x4xbf16>
    %c5 = arith.constant 5 : index
    %c0_38 = arith.constant 0 : index
    %c0_39 = arith.constant 0 : index
    %39 = vector.load %arg2[%c5, %c0_38, %c0_39] : memref<81x4x128xbf16, #tpu.memory_space<vmem>>, vector<1x4x128xbf16>
    %40 = vector.shape_cast %39 : vector<1x4x128xbf16> to vector<4x128xbf16>
    %cst_40 = arith.constant dense<0.000000e+00> : vector<16x128xf32>
    %41 = tpu.matmul %38, %40, %cst_40 {dimension_numbers = #tpu.dot_dimension_numbers<[1], [0], [0], [1], [0, 0, 1, 1], [], []>} : vector<16x4xbf16>, vector<4x128xbf16>, vector<16x128xf32> -> vector<16x128xf32>
    %42 = arith.addf %35, %41 : vector<16x128xf32>
    %c0_41 = arith.constant 0 : index
    %c0_42 = arith.constant 0 : index
    %c3_43 = arith.constant 3 : index
    %c0_44 = arith.constant 0 : index
    %43 = vector.load %arg1[%c0_41, %c0_42, %c3_43, %c0_44] : memref<1x32x8x4xf32, #tpu.memory_space<vmem>>, vector<1x4x4x4xf32>
    %44 = vector.shape_cast %43 : vector<1x4x4x4xf32> to vector<16x4xf32>
    %45 = arith.truncf %44 : vector<16x4xf32> to vector<16x4xbf16>
    %c6 = arith.constant 6 : index
    %c0_45 = arith.constant 0 : index
    %c0_46 = arith.constant 0 : index
    %46 = vector.load %arg2[%c6, %c0_45, %c0_46] : memref<81x4x128xbf16, #tpu.memory_space<vmem>>, vector<1x4x128xbf16>
    %47 = vector.shape_cast %46 : vector<1x4x128xbf16> to vector<4x128xbf16>
    %cst_47 = arith.constant dense<0.000000e+00> : vector<16x128xf32>
    %48 = tpu.matmul %45, %47, %cst_47 {dimension_numbers = #tpu.dot_dimension_numbers<[1], [0], [0], [1], [0, 0, 1, 1], [], []>} : vector<16x4xbf16>, vector<4x128xbf16>, vector<16x128xf32> -> vector<16x128xf32>
    %49 = arith.addf %42, %48 : vector<16x128xf32>
    %c0_48 = arith.constant 0 : index
    %c8_49 = arith.constant 8 : index
    %c3_50 = arith.constant 3 : index
    %c0_51 = arith.constant 0 : index
    %50 = vector.load %arg1[%c0_48, %c8_49, %c3_50, %c0_51] : memref<1x32x8x4xf32, #tpu.memory_space<vmem>>, vector<1x4x4x4xf32>
    %51 = vector.shape_cast %50 : vector<1x4x4x4xf32> to vector<16x4xf32>
    %52 = arith.truncf %51 : vector<16x4xf32> to vector<16x4xbf16>
    %c7 = arith.constant 7 : index
    %c0_52 = arith.constant 0 : index
    %c0_53 = arith.constant 0 : index
    %53 = vector.load %arg2[%c7, %c0_52, %c0_53] : memref<81x4x128xbf16, #tpu.memory_space<vmem>>, vector<1x4x128xbf16>
    %54 = vector.shape_cast %53 : vector<1x4x128xbf16> to vector<4x128xbf16>
    %cst_54 = arith.constant dense<0.000000e+00> : vector<16x128xf32>
    %55 = tpu.matmul %52, %54, %cst_54 {dimension_numbers = #tpu.dot_dimension_numbers<[1], [0], [0], [1], [0, 0, 1, 1], [], []>} : vector<16x4xbf16>, vector<4x128xbf16>, vector<16x128xf32> -> vector<16x128xf32>
    %56 = arith.addf %49, %55 : vector<16x128xf32>
    %c0_55 = arith.constant 0 : index
    %c0_56 = arith.constant 0 : index
    %c4_57 = arith.constant 4 : index
    %c0_58 = arith.constant 0 : index
    %57 = vector.load %arg1[%c0_55, %c0_56, %c4_57, %c0_58] : memref<1x32x8x4xf32, #tpu.memory_space<vmem>>, vector<1x4x4x4xf32>
    %58 = vector.shape_cast %57 : vector<1x4x4x4xf32> to vector<16x4xf32>
    %59 = arith.truncf %58 : vector<16x4xf32> to vector<16x4xbf16>
    %c8_59 = arith.constant 8 : index
    %c0_60 = arith.constant 0 : index
    %c0_61 = arith.constant 0 : index
    %60 = vector.load %arg2[%c8_59, %c0_60, %c0_61] : memref<81x4x128xbf16, #tpu.memory_space<vmem>>, vector<1x4x128xbf16>
    %61 = vector.shape_cast %60 : vector<1x4x128xbf16> to vector<4x128xbf16>
    %cst_62 = arith.constant dense<0.000000e+00> : vector<16x128xf32>
    %62 = tpu.matmul %59, %61, %cst_62 {dimension_numbers = #tpu.dot_dimension_numbers<[1], [0], [0], [1], [0, 0, 1, 1], [], []>} : vector<16x4xbf16>, vector<4x128xbf16>, vector<16x128xf32> -> vector<16x128xf32>
    %63 = arith.addf %56, %62 : vector<16x128xf32>
    %c0_63 = arith.constant 0 : index
    %c16 = arith.constant 16 : index
    %c0_64 = arith.constant 0 : index
    %c0_65 = arith.constant 0 : index
    %64 = vector.load %arg1[%c0_63, %c16, %c0_64, %c0_65] : memref<1x32x8x4xf32, #tpu.memory_space<vmem>>, vector<1x4x4x4xf32>
    %65 = vector.shape_cast %64 : vector<1x4x4x4xf32> to vector<16x4xf32>
    %66 = arith.truncf %65 : vector<16x4xf32> to vector<16x4xbf16>
    %c9 = arith.constant 9 : index
    %c0_66 = arith.constant 0 : index
    %c0_67 = arith.constant 0 : index
    %67 = vector.load %arg2[%c9, %c0_66, %c0_67] : memref<81x4x128xbf16, #tpu.memory_space<vmem>>, vector<1x4x128xbf16>
    %68 = vector.shape_cast %67 : vector<1x4x128xbf16> to vector<4x128xbf16>
    %cst_68 = arith.constant dense<0.000000e+00> : vector<16x128xf32>
    %69 = tpu.matmul %66, %68, %cst_68 {dimension_numbers = #tpu.dot_dimension_numbers<[1], [0], [0], [1], [0, 0, 1, 1], [], []>} : vector<16x4xbf16>, vector<4x128xbf16>, vector<16x128xf32> -> vector<16x128xf32>
    %70 = arith.addf %63, %69 : vector<16x128xf32>
    %c0_69 = arith.constant 0 : index
    %c24 = arith.constant 24 : index
    %c0_70 = arith.constant 0 : index
    %c0_71 = arith.constant 0 : index
    %71 = vector.load %arg1[%c0_69, %c24, %c0_70, %c0_71] : memref<1x32x8x4xf32, #tpu.memory_space<vmem>>, vector<1x4x4x4xf32>
    %72 = vector.shape_cast %71 : vector<1x4x4x4xf32> to vector<16x4xf32>
    %73 = arith.truncf %72 : vector<16x4xf32> to vector<16x4xbf16>
    %c10 = arith.constant 10 : index
    %c0_72 = arith.constant 0 : index
    %c0_73 = arith.constant 0 : index
    %74 = vector.load %arg2[%c10, %c0_72, %c0_73] : memref<81x4x128xbf16, #tpu.memory_space<vmem>>, vector<1x4x128xbf16>
    %75 = vector.shape_cast %74 : vector<1x4x128xbf16> to vector<4x128xbf16>
    %cst_74 = arith.constant dense<0.000000e+00> : vector<16x128xf32>
    %76 = tpu.matmul %73, %75, %cst_74 {dimension_numbers = #tpu.dot_dimension_numbers<[1], [0], [0], [1], [0, 0, 1, 1], [], []>} : vector<16x4xbf16>, vector<4x128xbf16>, vector<16x128xf32> -> vector<16x128xf32>
    %77 = arith.addf %70, %76 : vector<16x128xf32>
    %c0_75 = arith.constant 0 : index
    %c16_76 = arith.constant 16 : index
    %c1_77 = arith.constant 1 : index
    %c0_78 = arith.constant 0 : index
    %78 = vector.load %arg1[%c0_75, %c16_76, %c1_77, %c0_78] : memref<1x32x8x4xf32, #tpu.memory_space<vmem>>, vector<1x4x4x4xf32>
    %79 = vector.shape_cast %78 : vector<1x4x4x4xf32> to vector<16x4xf32>
    %80 = arith.truncf %79 : vector<16x4xf32> to vector<16x4xbf16>
    %c11 = arith.constant 11 : index
    %c0_79 = arith.constant 0 : index
    %c0_80 = arith.constant 0 : index
    %81 = vector.load %arg2[%c11, %c0_79, %c0_80] : memref<81x4x128xbf16, #tpu.memory_space<vmem>>, vector<1x4x128xbf16>
    %82 = vector.shape_cast %81 : vector<1x4x128xbf16> to vector<4x128xbf16>
    %cst_81 = arith.constant dense<0.000000e+00> : vector<16x128xf32>
    %83 = tpu.matmul %80, %82, %cst_81 {dimension_numbers = #tpu.dot_dimension_numbers<[1], [0], [0], [1], [0, 0, 1, 1], [], []>} : vector<16x4xbf16>, vector<4x128xbf16>, vector<16x128xf32> -> vector<16x128xf32>
    %84 = arith.addf %77, %83 : vector<16x128xf32>
    %c0_82 = arith.constant 0 : index
    %c24_83 = arith.constant 24 : index
    %c1_84 = arith.constant 1 : index
    %c0_85 = arith.constant 0 : index
    %85 = vector.load %arg1[%c0_82, %c24_83, %c1_84, %c0_85] : memref<1x32x8x4xf32, #tpu.memory_space<vmem>>, vector<1x4x4x4xf32>
    %86 = vector.shape_cast %85 : vector<1x4x4x4xf32> to vector<16x4xf32>
    %87 = arith.truncf %86 : vector<16x4xf32> to vector<16x4xbf16>
    %c12 = arith.constant 12 : index
    %c0_86 = arith.constant 0 : index
    %c0_87 = arith.constant 0 : index
    %88 = vector.load %arg2[%c12, %c0_86, %c0_87] : memref<81x4x128xbf16, #tpu.memory_space<vmem>>, vector<1x4x128xbf16>
    %89 = vector.shape_cast %88 : vector<1x4x128xbf16> to vector<4x128xbf16>
    %cst_88 = arith.constant dense<0.000000e+00> : vector<16x128xf32>
    %90 = tpu.matmul %87, %89, %cst_88 {dimension_numbers = #tpu.dot_dimension_numbers<[1], [0], [0], [1], [0, 0, 1, 1], [], []>} : vector<16x4xbf16>, vector<4x128xbf16>, vector<16x128xf32> -> vector<16x128xf32>
    %91 = arith.addf %84, %90 : vector<16x128xf32>
    %c0_89 = arith.constant 0 : index
    %c16_90 = arith.constant 16 : index
    %c2_91 = arith.constant 2 : index
    %c0_92 = arith.constant 0 : index
    %92 = vector.load %arg1[%c0_89, %c16_90, %c2_91, %c0_92] : memref<1x32x8x4xf32, #tpu.memory_space<vmem>>, vector<1x4x4x4xf32>
    %93 = vector.shape_cast %92 : vector<1x4x4x4xf32> to vector<16x4xf32>
    %94 = arith.truncf %93 : vector<16x4xf32> to vector<16x4xbf16>
    %c13 = arith.constant 13 : index
    %c0_93 = arith.constant 0 : index
    %c0_94 = arith.constant 0 : index
    %95 = vector.load %arg2[%c13, %c0_93, %c0_94] : memref<81x4x128xbf16, #tpu.memory_space<vmem>>, vector<1x4x128xbf16>
    %96 = vector.shape_cast %95 : vector<1x4x128xbf16> to vector<4x128xbf16>
    %cst_95 = arith.constant dense<0.000000e+00> : vector<16x128xf32>
    %97 = tpu.matmul %94, %96, %cst_95 {dimension_numbers = #tpu.dot_dimension_numbers<[1], [0], [0], [1], [0, 0, 1, 1], [], []>} : vector<16x4xbf16>, vector<4x128xbf16>, vector<16x128xf32> -> vector<16x128xf32>
    %98 = arith.addf %91, %97 : vector<16x128xf32>
    %c0_96 = arith.constant 0 : index
    %c24_97 = arith.constant 24 : index
    %c2_98 = arith.constant 2 : index
    %c0_99 = arith.constant 0 : index
    %99 = vector.load %arg1[%c0_96, %c24_97, %c2_98, %c0_99] : memref<1x32x8x4xf32, #tpu.memory_space<vmem>>, vector<1x4x4x4xf32>
    %100 = vector.shape_cast %99 : vector<1x4x4x4xf32> to vector<16x4xf32>
    %101 = arith.truncf %100 : vector<16x4xf32> to vector<16x4xbf16>
    %c14 = arith.constant 14 : index
    %c0_100 = arith.constant 0 : index
    %c0_101 = arith.constant 0 : index
    %102 = vector.load %arg2[%c14, %c0_100, %c0_101] : memref<81x4x128xbf16, #tpu.memory_space<vmem>>, vector<1x4x128xbf16>
    %103 = vector.shape_cast %102 : vector<1x4x128xbf16> to vector<4x128xbf16>
    %cst_102 = arith.constant dense<0.000000e+00> : vector<16x128xf32>
    %104 = tpu.matmul %101, %103, %cst_102 {dimension_numbers = #tpu.dot_dimension_numbers<[1], [0], [0], [1], [0, 0, 1, 1], [], []>} : vector<16x4xbf16>, vector<4x128xbf16>, vector<16x128xf32> -> vector<16x128xf32>
    %105 = arith.addf %98, %104 : vector<16x128xf32>
    %c0_103 = arith.constant 0 : index
    %c16_104 = arith.constant 16 : index
    %c3_105 = arith.constant 3 : index
    %c0_106 = arith.constant 0 : index
    %106 = vector.load %arg1[%c0_103, %c16_104, %c3_105, %c0_106] : memref<1x32x8x4xf32, #tpu.memory_space<vmem>>, vector<1x4x4x4xf32>
    %107 = vector.shape_cast %106 : vector<1x4x4x4xf32> to vector<16x4xf32>
    %108 = arith.truncf %107 : vector<16x4xf32> to vector<16x4xbf16>
    %c15 = arith.constant 15 : index
    %c0_107 = arith.constant 0 : index
    %c0_108 = arith.constant 0 : index
    %109 = vector.load %arg2[%c15, %c0_107, %c0_108] : memref<81x4x128xbf16, #tpu.memory_space<vmem>>, vector<1x4x128xbf16>
    %110 = vector.shape_cast %109 : vector<1x4x128xbf16> to vector<4x128xbf16>
    %cst_109 = arith.constant dense<0.000000e+00> : vector<16x128xf32>
    %111 = tpu.matmul %108, %110, %cst_109 {dimension_numbers = #tpu.dot_dimension_numbers<[1], [0], [0], [1], [0, 0, 1, 1], [], []>} : vector<16x4xbf16>, vector<4x128xbf16>, vector<16x128xf32> -> vector<16x128xf32>
    %112 = arith.addf %105, %111 : vector<16x128xf32>
    %c0_110 = arith.constant 0 : index
    %c24_111 = arith.constant 24 : index
    %c3_112 = arith.constant 3 : index
    %c0_113 = arith.constant 0 : index
    %113 = vector.load %arg1[%c0_110, %c24_111, %c3_112, %c0_113] : memref<1x32x8x4xf32, #tpu.memory_space<vmem>>, vector<1x4x4x4xf32>
    %114 = vector.shape_cast %113 : vector<1x4x4x4xf32> to vector<16x4xf32>
    %115 = arith.truncf %114 : vector<16x4xf32> to vector<16x4xbf16>
    %c16_114 = arith.constant 16 : index
    %c0_115 = arith.constant 0 : index
    %c0_116 = arith.constant 0 : index
    %116 = vector.load %arg2[%c16_114, %c0_115, %c0_116] : memref<81x4x128xbf16, #tpu.memory_space<vmem>>, vector<1x4x128xbf16>
    %117 = vector.shape_cast %116 : vector<1x4x128xbf16> to vector<4x128xbf16>
    %cst_117 = arith.constant dense<0.000000e+00> : vector<16x128xf32>
    %118 = tpu.matmul %115, %117, %cst_117 {dimension_numbers = #tpu.dot_dimension_numbers<[1], [0], [0], [1], [0, 0, 1, 1], [], []>} : vector<16x4xbf16>, vector<4x128xbf16>, vector<16x128xf32> -> vector<16x128xf32>
    %119 = arith.addf %112, %118 : vector<16x128xf32>
    %c0_118 = arith.constant 0 : index
    %c16_119 = arith.constant 16 : index
    %c4_120 = arith.constant 4 : index
    %c0_121 = arith.constant 0 : index
    %120 = vector.load %arg1[%c0_118, %c16_119, %c4_120, %c0_121] : memref<1x32x8x4xf32, #tpu.memory_space<vmem>>, vector<1x4x4x4xf32>
    %121 = vector.shape_cast %120 : vector<1x4x4x4xf32> to vector<16x4xf32>
    %122 = arith.truncf %121 : vector<16x4xf32> to vector<16x4xbf16>
    %c17 = arith.constant 17 : index
    %c0_122 = arith.constant 0 : index
    %c0_123 = arith.constant 0 : index
    %123 = vector.load %arg2[%c17, %c0_122, %c0_123] : memref<81x4x128xbf16, #tpu.memory_space<vmem>>, vector<1x4x128xbf16>
    %124 = vector.shape_cast %123 : vector<1x4x128xbf16> to vector<4x128xbf16>
    %cst_124 = arith.constant dense<0.000000e+00> : vector<16x128xf32>
    %125 = tpu.matmul %122, %124, %cst_124 {dimension_numbers = #tpu.dot_dimension_numbers<[1], [0], [0], [1], [0, 0, 1, 1], [], []>} : vector<16x4xbf16>, vector<4x128xbf16>, vector<16x128xf32> -> vector<16x128xf32>
    %126 = arith.addf %119, %125 : vector<16x128xf32>
    %c0_125 = arith.constant 0 : index
    %c1_126 = arith.constant 1 : index
    %c0_127 = arith.constant 0 : index
    %c0_128 = arith.constant 0 : index
    %127 = vector.load %arg1[%c0_125, %c1_126, %c0_127, %c0_128] : memref<1x32x8x4xf32, #tpu.memory_space<vmem>>, vector<1x4x4x4xf32>
    %128 = vector.shape_cast %127 : vector<1x4x4x4xf32> to vector<16x4xf32>
    %129 = arith.truncf %128 : vector<16x4xf32> to vector<16x4xbf16>
    %c18 = arith.constant 18 : index
    %c0_129 = arith.constant 0 : index
    %c0_130 = arith.constant 0 : index
    %130 = vector.load %arg2[%c18, %c0_129, %c0_130] : memref<81x4x128xbf16, #tpu.memory_space<vmem>>, vector<1x4x128xbf16>
    %131 = vector.shape_cast %130 : vector<1x4x128xbf16> to vector<4x128xbf16>
    %cst_131 = arith.constant dense<0.000000e+00> : vector<16x128xf32>
    %132 = tpu.matmul %129, %131, %cst_131 {dimension_numbers = #tpu.dot_dimension_numbers<[1], [0], [0], [1], [0, 0, 1, 1], [], []>} : vector<16x4xbf16>, vector<4x128xbf16>, vector<16x128xf32> -> vector<16x128xf32>
    %133 = arith.addf %126, %132 : vector<16x128xf32>
    %c0_132 = arith.constant 0 : index
    %c9_133 = arith.constant 9 : index
    %c0_134 = arith.constant 0 : index
    %c0_135 = arith.constant 0 : index
    %134 = vector.load %arg1[%c0_132, %c9_133, %c0_134, %c0_135] : memref<1x32x8x4xf32, #tpu.memory_space<vmem>>, vector<1x4x4x4xf32>
    %135 = vector.shape_cast %134 : vector<1x4x4x4xf32> to vector<16x4xf32>
    %136 = arith.truncf %135 : vector<16x4xf32> to vector<16x4xbf16>
    %c19 = arith.constant 19 : index
    %c0_136 = arith.constant 0 : index
    %c0_137 = arith.constant 0 : index
    %137 = vector.load %arg2[%c19, %c0_136, %c0_137] : memref<81x4x128xbf16, #tpu.memory_space<vmem>>, vector<1x4x128xbf16>
    %138 = vector.shape_cast %137 : vector<1x4x128xbf16> to vector<4x128xbf16>
    %cst_138 = arith.constant dense<0.000000e+00> : vector<16x128xf32>
    %139 = tpu.matmul %136, %138, %cst_138 {dimension_numbers = #tpu.dot_dimension_numbers<[1], [0], [0], [1], [0, 0, 1, 1], [], []>} : vector<16x4xbf16>, vector<4x128xbf16>, vector<16x128xf32> -> vector<16x128xf32>
    %140 = arith.addf %133, %139 : vector<16x128xf32>
    %c0_139 = arith.constant 0 : index
    %c1_140 = arith.constant 1 : index
    %c1_141 = arith.constant 1 : index
    %c0_142 = arith.constant 0 : index
    %141 = vector.load %arg1[%c0_139, %c1_140, %c1_141, %c0_142] : memref<1x32x8x4xf32, #tpu.memory_space<vmem>>, vector<1x4x4x4xf32>
    %142 = vector.shape_cast %141 : vector<1x4x4x4xf32> to vector<16x4xf32>
    %143 = arith.truncf %142 : vector<16x4xf32> to vector<16x4xbf16>
    %c20 = arith.constant 20 : index
    %c0_143 = arith.constant 0 : index
    %c0_144 = arith.constant 0 : index
    %144 = vector.load %arg2[%c20, %c0_143, %c0_144] : memref<81x4x128xbf16, #tpu.memory_space<vmem>>, vector<1x4x128xbf16>
    %145 = vector.shape_cast %144 : vector<1x4x128xbf16> to vector<4x128xbf16>
    %cst_145 = arith.constant dense<0.000000e+00> : vector<16x128xf32>
    %146 = tpu.matmul %143, %145, %cst_145 {dimension_numbers = #tpu.dot_dimension_numbers<[1], [0], [0], [1], [0, 0, 1, 1], [], []>} : vector<16x4xbf16>, vector<4x128xbf16>, vector<16x128xf32> -> vector<16x128xf32>
    %147 = arith.addf %140, %146 : vector<16x128xf32>
    %c0_146 = arith.constant 0 : index
    %c9_147 = arith.constant 9 : index
    %c1_148 = arith.constant 1 : index
    %c0_149 = arith.constant 0 : index
    %148 = vector.load %arg1[%c0_146, %c9_147, %c1_148, %c0_149] : memref<1x32x8x4xf32, #tpu.memory_space<vmem>>, vector<1x4x4x4xf32>
    %149 = vector.shape_cast %148 : vector<1x4x4x4xf32> to vector<16x4xf32>
    %150 = arith.truncf %149 : vector<16x4xf32> to vector<16x4xbf16>
    %c21 = arith.constant 21 : index
    %c0_150 = arith.constant 0 : index
    %c0_151 = arith.constant 0 : index
    %151 = vector.load %arg2[%c21, %c0_150, %c0_151] : memref<81x4x128xbf16, #tpu.memory_space<vmem>>, vector<1x4x128xbf16>
    %152 = vector.shape_cast %151 : vector<1x4x128xbf16> to vector<4x128xbf16>
    %cst_152 = arith.constant dense<0.000000e+00> : vector<16x128xf32>
    %153 = tpu.matmul %150, %152, %cst_152 {dimension_numbers = #tpu.dot_dimension_numbers<[1], [0], [0], [1], [0, 0, 1, 1], [], []>} : vector<16x4xbf16>, vector<4x128xbf16>, vector<16x128xf32> -> vector<16x128xf32>
    %154 = arith.addf %147, %153 : vector<16x128xf32>
    %c0_153 = arith.constant 0 : index
    %c1_154 = arith.constant 1 : index
    %c2_155 = arith.constant 2 : index
    %c0_156 = arith.constant 0 : index
    %155 = vector.load %arg1[%c0_153, %c1_154, %c2_155, %c0_156] : memref<1x32x8x4xf32, #tpu.memory_space<vmem>>, vector<1x4x4x4xf32>
    %156 = vector.shape_cast %155 : vector<1x4x4x4xf32> to vector<16x4xf32>
    %157 = arith.truncf %156 : vector<16x4xf32> to vector<16x4xbf16>
    %c22 = arith.constant 22 : index
    %c0_157 = arith.constant 0 : index
    %c0_158 = arith.constant 0 : index
    %158 = vector.load %arg2[%c22, %c0_157, %c0_158] : memref<81x4x128xbf16, #tpu.memory_space<vmem>>, vector<1x4x128xbf16>
    %159 = vector.shape_cast %158 : vector<1x4x128xbf16> to vector<4x128xbf16>
    %cst_159 = arith.constant dense<0.000000e+00> : vector<16x128xf32>
    %160 = tpu.matmul %157, %159, %cst_159 {dimension_numbers = #tpu.dot_dimension_numbers<[1], [0], [0], [1], [0, 0, 1, 1], [], []>} : vector<16x4xbf16>, vector<4x128xbf16>, vector<16x128xf32> -> vector<16x128xf32>
    %161 = arith.addf %154, %160 : vector<16x128xf32>
    %c0_160 = arith.constant 0 : index
    %c9_161 = arith.constant 9 : index
    %c2_162 = arith.constant 2 : index
    %c0_163 = arith.constant 0 : index
    %162 = vector.load %arg1[%c0_160, %c9_161, %c2_162, %c0_163] : memref<1x32x8x4xf32, #tpu.memory_space<vmem>>, vector<1x4x4x4xf32>
    %163 = vector.shape_cast %162 : vector<1x4x4x4xf32> to vector<16x4xf32>
    %164 = arith.truncf %163 : vector<16x4xf32> to vector<16x4xbf16>
    %c23 = arith.constant 23 : index
    %c0_164 = arith.constant 0 : index
    %c0_165 = arith.constant 0 : index
    %165 = vector.load %arg2[%c23, %c0_164, %c0_165] : memref<81x4x128xbf16, #tpu.memory_space<vmem>>, vector<1x4x128xbf16>
    %166 = vector.shape_cast %165 : vector<1x4x128xbf16> to vector<4x128xbf16>
    %cst_166 = arith.constant dense<0.000000e+00> : vector<16x128xf32>
    %167 = tpu.matmul %164, %166, %cst_166 {dimension_numbers = #tpu.dot_dimension_numbers<[1], [0], [0], [1], [0, 0, 1, 1], [], []>} : vector<16x4xbf16>, vector<4x128xbf16>, vector<16x128xf32> -> vector<16x128xf32>
    %168 = arith.addf %161, %167 : vector<16x128xf32>
    %c0_167 = arith.constant 0 : index
    %c1_168 = arith.constant 1 : index
    %c3_169 = arith.constant 3 : index
    %c0_170 = arith.constant 0 : index
    %169 = vector.load %arg1[%c0_167, %c1_168, %c3_169, %c0_170] : memref<1x32x8x4xf32, #tpu.memory_space<vmem>>, vector<1x4x4x4xf32>
    %170 = vector.shape_cast %169 : vector<1x4x4x4xf32> to vector<16x4xf32>
    %171 = arith.truncf %170 : vector<16x4xf32> to vector<16x4xbf16>
    %c24_171 = arith.constant 24 : index
    %c0_172 = arith.constant 0 : index
    %c0_173 = arith.constant 0 : index
    %172 = vector.load %arg2[%c24_171, %c0_172, %c0_173] : memref<81x4x128xbf16, #tpu.memory_space<vmem>>, vector<1x4x128xbf16>
    %173 = vector.shape_cast %172 : vector<1x4x128xbf16> to vector<4x128xbf16>
    %cst_174 = arith.constant dense<0.000000e+00> : vector<16x128xf32>
    %174 = tpu.matmul %171, %173, %cst_174 {dimension_numbers = #tpu.dot_dimension_numbers<[1], [0], [0], [1], [0, 0, 1, 1], [], []>} : vector<16x4xbf16>, vector<4x128xbf16>, vector<16x128xf32> -> vector<16x128xf32>
    %175 = arith.addf %168, %174 : vector<16x128xf32>
    %c0_175 = arith.constant 0 : index
    %c9_176 = arith.constant 9 : index
    %c3_177 = arith.constant 3 : index
    %c0_178 = arith.constant 0 : index
    %176 = vector.load %arg1[%c0_175, %c9_176, %c3_177, %c0_178] : memref<1x32x8x4xf32, #tpu.memory_space<vmem>>, vector<1x4x4x4xf32>
    %177 = vector.shape_cast %176 : vector<1x4x4x4xf32> to vector<16x4xf32>
    %178 = arith.truncf %177 : vector<16x4xf32> to vector<16x4xbf16>
    %c25 = arith.constant 25 : index
    %c0_179 = arith.constant 0 : index
    %c0_180 = arith.constant 0 : index
    %179 = vector.load %arg2[%c25, %c0_179, %c0_180] : memref<81x4x128xbf16, #tpu.memory_space<vmem>>, vector<1x4x128xbf16>
    %180 = vector.shape_cast %179 : vector<1x4x128xbf16> to vector<4x128xbf16>
    %cst_181 = arith.constant dense<0.000000e+00> : vector<16x128xf32>
    %181 = tpu.matmul %178, %180, %cst_181 {dimension_numbers = #tpu.dot_dimension_numbers<[1], [0], [0], [1], [0, 0, 1, 1], [], []>} : vector<16x4xbf16>, vector<4x128xbf16>, vector<16x128xf32> -> vector<16x128xf32>
    %182 = arith.addf %175, %181 : vector<16x128xf32>
    %c0_182 = arith.constant 0 : index
    %c1_183 = arith.constant 1 : index
    %c4_184 = arith.constant 4 : index
    %c0_185 = arith.constant 0 : index
    %183 = vector.load %arg1[%c0_182, %c1_183, %c4_184, %c0_185] : memref<1x32x8x4xf32, #tpu.memory_space<vmem>>, vector<1x4x4x4xf32>
    %184 = vector.shape_cast %183 : vector<1x4x4x4xf32> to vector<16x4xf32>
    %185 = arith.truncf %184 : vector<16x4xf32> to vector<16x4xbf16>
    %c26 = arith.constant 26 : index
    %c0_186 = arith.constant 0 : index
    %c0_187 = arith.constant 0 : index
    %186 = vector.load %arg2[%c26, %c0_186, %c0_187] : memref<81x4x128xbf16, #tpu.memory_space<vmem>>, vector<1x4x128xbf16>
    %187 = vector.shape_cast %186 : vector<1x4x128xbf16> to vector<4x128xbf16>
    %cst_188 = arith.constant dense<0.000000e+00> : vector<16x128xf32>
    %188 = tpu.matmul %185, %187, %cst_188 {dimension_numbers = #tpu.dot_dimension_numbers<[1], [0], [0], [1], [0, 0, 1, 1], [], []>} : vector<16x4xbf16>, vector<4x128xbf16>, vector<16x128xf32> -> vector<16x128xf32>
    %189 = arith.addf %182, %188 : vector<16x128xf32>
    %c0_189 = arith.constant 0 : index
    %c17_190 = arith.constant 17 : index
    %c0_191 = arith.constant 0 : index
    %c0_192 = arith.constant 0 : index
    %190 = vector.load %arg1[%c0_189, %c17_190, %c0_191, %c0_192] : memref<1x32x8x4xf32, #tpu.memory_space<vmem>>, vector<1x4x4x4xf32>
    %191 = vector.shape_cast %190 : vector<1x4x4x4xf32> to vector<16x4xf32>
    %192 = arith.truncf %191 : vector<16x4xf32> to vector<16x4xbf16>
    %c27 = arith.constant 27 : index
    %c0_193 = arith.constant 0 : index
    %c0_194 = arith.constant 0 : index
    %193 = vector.load %arg2[%c27, %c0_193, %c0_194] : memref<81x4x128xbf16, #tpu.memory_space<vmem>>, vector<1x4x128xbf16>
    %194 = vector.shape_cast %193 : vector<1x4x128xbf16> to vector<4x128xbf16>
    %cst_195 = arith.constant dense<0.000000e+00> : vector<16x128xf32>
    %195 = tpu.matmul %192, %194, %cst_195 {dimension_numbers = #tpu.dot_dimension_numbers<[1], [0], [0], [1], [0, 0, 1, 1], [], []>} : vector<16x4xbf16>, vector<4x128xbf16>, vector<16x128xf32> -> vector<16x128xf32>
    %196 = arith.addf %189, %195 : vector<16x128xf32>
    %c0_196 = arith.constant 0 : index
    %c25_197 = arith.constant 25 : index
    %c0_198 = arith.constant 0 : index
    %c0_199 = arith.constant 0 : index
    %197 = vector.load %arg1[%c0_196, %c25_197, %c0_198, %c0_199] : memref<1x32x8x4xf32, #tpu.memory_space<vmem>>, vector<1x4x4x4xf32>
    %198 = vector.shape_cast %197 : vector<1x4x4x4xf32> to vector<16x4xf32>
    %199 = arith.truncf %198 : vector<16x4xf32> to vector<16x4xbf16>
    %c28 = arith.constant 28 : index
    %c0_200 = arith.constant 0 : index
    %c0_201 = arith.constant 0 : index
    %200 = vector.load %arg2[%c28, %c0_200, %c0_201] : memref<81x4x128xbf16, #tpu.memory_space<vmem>>, vector<1x4x128xbf16>
    %201 = vector.shape_cast %200 : vector<1x4x128xbf16> to vector<4x128xbf16>
    %cst_202 = arith.constant dense<0.000000e+00> : vector<16x128xf32>
    %202 = tpu.matmul %199, %201, %cst_202 {dimension_numbers = #tpu.dot_dimension_numbers<[1], [0], [0], [1], [0, 0, 1, 1], [], []>} : vector<16x4xbf16>, vector<4x128xbf16>, vector<16x128xf32> -> vector<16x128xf32>
    %203 = arith.addf %196, %202 : vector<16x128xf32>
    %c0_203 = arith.constant 0 : index
    %c17_204 = arith.constant 17 : index
    %c1_205 = arith.constant 1 : index
    %c0_206 = arith.constant 0 : index
    %204 = vector.load %arg1[%c0_203, %c17_204, %c1_205, %c0_206] : memref<1x32x8x4xf32, #tpu.memory_space<vmem>>, vector<1x4x4x4xf32>
    %205 = vector.shape_cast %204 : vector<1x4x4x4xf32> to vector<16x4xf32>
    %206 = arith.truncf %205 : vector<16x4xf32> to vector<16x4xbf16>
    %c29 = arith.constant 29 : index
    %c0_207 = arith.constant 0 : index
    %c0_208 = arith.constant 0 : index
    %207 = vector.load %arg2[%c29, %c0_207, %c0_208] : memref<81x4x128xbf16, #tpu.memory_space<vmem>>, vector<1x4x128xbf16>
    %208 = vector.shape_cast %207 : vector<1x4x128xbf16> to vector<4x128xbf16>
    %cst_209 = arith.constant dense<0.000000e+00> : vector<16x128xf32>
    %209 = tpu.matmul %206, %208, %cst_209 {dimension_numbers = #tpu.dot_dimension_numbers<[1], [0], [0], [1], [0, 0, 1, 1], [], []>} : vector<16x4xbf16>, vector<4x128xbf16>, vector<16x128xf32> -> vector<16x128xf32>
    %210 = arith.addf %203, %209 : vector<16x128xf32>
    %c0_210 = arith.constant 0 : index
    %c25_211 = arith.constant 25 : index
    %c1_212 = arith.constant 1 : index
    %c0_213 = arith.constant 0 : index
    %211 = vector.load %arg1[%c0_210, %c25_211, %c1_212, %c0_213] : memref<1x32x8x4xf32, #tpu.memory_space<vmem>>, vector<1x4x4x4xf32>
    %212 = vector.shape_cast %211 : vector<1x4x4x4xf32> to vector<16x4xf32>
    %213 = arith.truncf %212 : vector<16x4xf32> to vector<16x4xbf16>
    %c30 = arith.constant 30 : index
    %c0_214 = arith.constant 0 : index
    %c0_215 = arith.constant 0 : index
    %214 = vector.load %arg2[%c30, %c0_214, %c0_215] : memref<81x4x128xbf16, #tpu.memory_space<vmem>>, vector<1x4x128xbf16>
    %215 = vector.shape_cast %214 : vector<1x4x128xbf16> to vector<4x128xbf16>
    %cst_216 = arith.constant dense<0.000000e+00> : vector<16x128xf32>
    %216 = tpu.matmul %213, %215, %cst_216 {dimension_numbers = #tpu.dot_dimension_numbers<[1], [0], [0], [1], [0, 0, 1, 1], [], []>} : vector<16x4xbf16>, vector<4x128xbf16>, vector<16x128xf32> -> vector<16x128xf32>
    %217 = arith.addf %210, %216 : vector<16x128xf32>
    %c0_217 = arith.constant 0 : index
    %c17_218 = arith.constant 17 : index
    %c2_219 = arith.constant 2 : index
    %c0_220 = arith.constant 0 : index
    %218 = vector.load %arg1[%c0_217, %c17_218, %c2_219, %c0_220] : memref<1x32x8x4xf32, #tpu.memory_space<vmem>>, vector<1x4x4x4xf32>
    %219 = vector.shape_cast %218 : vector<1x4x4x4xf32> to vector<16x4xf32>
    %220 = arith.truncf %219 : vector<16x4xf32> to vector<16x4xbf16>
    %c31 = arith.constant 31 : index
    %c0_221 = arith.constant 0 : index
    %c0_222 = arith.constant 0 : index
    %221 = vector.load %arg2[%c31, %c0_221, %c0_222] : memref<81x4x128xbf16, #tpu.memory_space<vmem>>, vector<1x4x128xbf16>
    %222 = vector.shape_cast %221 : vector<1x4x128xbf16> to vector<4x128xbf16>
    %cst_223 = arith.constant dense<0.000000e+00> : vector<16x128xf32>
    %223 = tpu.matmul %220, %222, %cst_223 {dimension_numbers = #tpu.dot_dimension_numbers<[1], [0], [0], [1], [0, 0, 1, 1], [], []>} : vector<16x4xbf16>, vector<4x128xbf16>, vector<16x128xf32> -> vector<16x128xf32>
    %224 = arith.addf %217, %223 : vector<16x128xf32>
    %c0_224 = arith.constant 0 : index
    %c25_225 = arith.constant 25 : index
    %c2_226 = arith.constant 2 : index
    %c0_227 = arith.constant 0 : index
    %225 = vector.load %arg1[%c0_224, %c25_225, %c2_226, %c0_227] : memref<1x32x8x4xf32, #tpu.memory_space<vmem>>, vector<1x4x4x4xf32>
    %226 = vector.shape_cast %225 : vector<1x4x4x4xf32> to vector<16x4xf32>
    %227 = arith.truncf %226 : vector<16x4xf32> to vector<16x4xbf16>
    %c32 = arith.constant 32 : index
    %c0_228 = arith.constant 0 : index
    %c0_229 = arith.constant 0 : index
    %228 = vector.load %arg2[%c32, %c0_228, %c0_229] : memref<81x4x128xbf16, #tpu.memory_space<vmem>>, vector<1x4x128xbf16>
    %229 = vector.shape_cast %228 : vector<1x4x128xbf16> to vector<4x128xbf16>
    %cst_230 = arith.constant dense<0.000000e+00> : vector<16x128xf32>
    %230 = tpu.matmul %227, %229, %cst_230 {dimension_numbers = #tpu.dot_dimension_numbers<[1], [0], [0], [1], [0, 0, 1, 1], [], []>} : vector<16x4xbf16>, vector<4x128xbf16>, vector<16x128xf32> -> vector<16x128xf32>
    %231 = arith.addf %224, %230 : vector<16x128xf32>
    %c0_231 = arith.constant 0 : index
    %c17_232 = arith.constant 17 : index
    %c3_233 = arith.constant 3 : index
    %c0_234 = arith.constant 0 : index
    %232 = vector.load %arg1[%c0_231, %c17_232, %c3_233, %c0_234] : memref<1x32x8x4xf32, #tpu.memory_space<vmem>>, vector<1x4x4x4xf32>
    %233 = vector.shape_cast %232 : vector<1x4x4x4xf32> to vector<16x4xf32>
    %234 = arith.truncf %233 : vector<16x4xf32> to vector<16x4xbf16>
    %c33 = arith.constant 33 : index
    %c0_235 = arith.constant 0 : index
    %c0_236 = arith.constant 0 : index
    %235 = vector.load %arg2[%c33, %c0_235, %c0_236] : memref<81x4x128xbf16, #tpu.memory_space<vmem>>, vector<1x4x128xbf16>
    %236 = vector.shape_cast %235 : vector<1x4x128xbf16> to vector<4x128xbf16>
    %cst_237 = arith.constant dense<0.000000e+00> : vector<16x128xf32>
    %237 = tpu.matmul %234, %236, %cst_237 {dimension_numbers = #tpu.dot_dimension_numbers<[1], [0], [0], [1], [0, 0, 1, 1], [], []>} : vector<16x4xbf16>, vector<4x128xbf16>, vector<16x128xf32> -> vector<16x128xf32>
    %238 = arith.addf %231, %237 : vector<16x128xf32>
    %c0_238 = arith.constant 0 : index
    %c25_239 = arith.constant 25 : index
    %c3_240 = arith.constant 3 : index
    %c0_241 = arith.constant 0 : index
    %239 = vector.load %arg1[%c0_238, %c25_239, %c3_240, %c0_241] : memref<1x32x8x4xf32, #tpu.memory_space<vmem>>, vector<1x4x4x4xf32>
    %240 = vector.shape_cast %239 : vector<1x4x4x4xf32> to vector<16x4xf32>
    %241 = arith.truncf %240 : vector<16x4xf32> to vector<16x4xbf16>
    %c34 = arith.constant 34 : index
    %c0_242 = arith.constant 0 : index
    %c0_243 = arith.constant 0 : index
    %242 = vector.load %arg2[%c34, %c0_242, %c0_243] : memref<81x4x128xbf16, #tpu.memory_space<vmem>>, vector<1x4x128xbf16>
    %243 = vector.shape_cast %242 : vector<1x4x128xbf16> to vector<4x128xbf16>
    %cst_244 = arith.constant dense<0.000000e+00> : vector<16x128xf32>
    %244 = tpu.matmul %241, %243, %cst_244 {dimension_numbers = #tpu.dot_dimension_numbers<[1], [0], [0], [1], [0, 0, 1, 1], [], []>} : vector<16x4xbf16>, vector<4x128xbf16>, vector<16x128xf32> -> vector<16x128xf32>
    %245 = arith.addf %238, %244 : vector<16x128xf32>
    %c0_245 = arith.constant 0 : index
    %c17_246 = arith.constant 17 : index
    %c4_247 = arith.constant 4 : index
    %c0_248 = arith.constant 0 : index
    %246 = vector.load %arg1[%c0_245, %c17_246, %c4_247, %c0_248] : memref<1x32x8x4xf32, #tpu.memory_space<vmem>>, vector<1x4x4x4xf32>
    %247 = vector.shape_cast %246 : vector<1x4x4x4xf32> to vector<16x4xf32>
    %248 = arith.truncf %247 : vector<16x4xf32> to vector<16x4xbf16>
    %c35 = arith.constant 35 : index
    %c0_249 = arith.constant 0 : index
    %c0_250 = arith.constant 0 : index
    %249 = vector.load %arg2[%c35, %c0_249, %c0_250] : memref<81x4x128xbf16, #tpu.memory_space<vmem>>, vector<1x4x128xbf16>
    %250 = vector.shape_cast %249 : vector<1x4x128xbf16> to vector<4x128xbf16>
    %cst_251 = arith.constant dense<0.000000e+00> : vector<16x128xf32>
    %251 = tpu.matmul %248, %250, %cst_251 {dimension_numbers = #tpu.dot_dimension_numbers<[1], [0], [0], [1], [0, 0, 1, 1], [], []>} : vector<16x4xbf16>, vector<4x128xbf16>, vector<16x128xf32> -> vector<16x128xf32>
    %252 = arith.addf %245, %251 : vector<16x128xf32>
    %c0_252 = arith.constant 0 : index
    %c2_253 = arith.constant 2 : index
    %c0_254 = arith.constant 0 : index
    %c0_255 = arith.constant 0 : index
    %253 = vector.load %arg1[%c0_252, %c2_253, %c0_254, %c0_255] : memref<1x32x8x4xf32, #tpu.memory_space<vmem>>, vector<1x4x4x4xf32>
    %254 = vector.shape_cast %253 : vector<1x4x4x4xf32> to vector<16x4xf32>
    %255 = arith.truncf %254 : vector<16x4xf32> to vector<16x4xbf16>
    %c36 = arith.constant 36 : index
    %c0_256 = arith.constant 0 : index
    %c0_257 = arith.constant 0 : index
    %256 = vector.load %arg2[%c36, %c0_256, %c0_257] : memref<81x4x128xbf16, #tpu.memory_space<vmem>>, vector<1x4x128xbf16>
    %257 = vector.shape_cast %256 : vector<1x4x128xbf16> to vector<4x128xbf16>
    %cst_258 = arith.constant dense<0.000000e+00> : vector<16x128xf32>
    %258 = tpu.matmul %255, %257, %cst_258 {dimension_numbers = #tpu.dot_dimension_numbers<[1], [0], [0], [1], [0, 0, 1, 1], [], []>} : vector<16x4xbf16>, vector<4x128xbf16>, vector<16x128xf32> -> vector<16x128xf32>
    %259 = arith.addf %252, %258 : vector<16x128xf32>
    %c0_259 = arith.constant 0 : index
    %c10_260 = arith.constant 10 : index
    %c0_261 = arith.constant 0 : index
    %c0_262 = arith.constant 0 : index
    %260 = vector.load %arg1[%c0_259, %c10_260, %c0_261, %c0_262] : memref<1x32x8x4xf32, #tpu.memory_space<vmem>>, vector<1x4x4x4xf32>
    %261 = vector.shape_cast %260 : vector<1x4x4x4xf32> to vector<16x4xf32>
    %262 = arith.truncf %261 : vector<16x4xf32> to vector<16x4xbf16>
    %c37 = arith.constant 37 : index
    %c0_263 = arith.constant 0 : index
    %c0_264 = arith.constant 0 : index
    %263 = vector.load %arg2[%c37, %c0_263, %c0_264] : memref<81x4x128xbf16, #tpu.memory_space<vmem>>, vector<1x4x128xbf16>
    %264 = vector.shape_cast %263 : vector<1x4x128xbf16> to vector<4x128xbf16>
    %cst_265 = arith.constant dense<0.000000e+00> : vector<16x128xf32>
    %265 = tpu.matmul %262, %264, %cst_265 {dimension_numbers = #tpu.dot_dimension_numbers<[1], [0], [0], [1], [0, 0, 1, 1], [], []>} : vector<16x4xbf16>, vector<4x128xbf16>, vector<16x128xf32> -> vector<16x128xf32>
    %266 = arith.addf %259, %265 : vector<16x128xf32>
    %c0_266 = arith.constant 0 : index
    %c2_267 = arith.constant 2 : index
    %c1_268 = arith.constant 1 : index
    %c0_269 = arith.constant 0 : index
    %267 = vector.load %arg1[%c0_266, %c2_267, %c1_268, %c0_269] : memref<1x32x8x4xf32, #tpu.memory_space<vmem>>, vector<1x4x4x4xf32>
    %268 = vector.shape_cast %267 : vector<1x4x4x4xf32> to vector<16x4xf32>
    %269 = arith.truncf %268 : vector<16x4xf32> to vector<16x4xbf16>
    %c38 = arith.constant 38 : index
    %c0_270 = arith.constant 0 : index
    %c0_271 = arith.constant 0 : index
    %270 = vector.load %arg2[%c38, %c0_270, %c0_271] : memref<81x4x128xbf16, #tpu.memory_space<vmem>>, vector<1x4x128xbf16>
    %271 = vector.shape_cast %270 : vector<1x4x128xbf16> to vector<4x128xbf16>
    %cst_272 = arith.constant dense<0.000000e+00> : vector<16x128xf32>
    %272 = tpu.matmul %269, %271, %cst_272 {dimension_numbers = #tpu.dot_dimension_numbers<[1], [0], [0], [1], [0, 0, 1, 1], [], []>} : vector<16x4xbf16>, vector<4x128xbf16>, vector<16x128xf32> -> vector<16x128xf32>
    %273 = arith.addf %266, %272 : vector<16x128xf32>
    %c0_273 = arith.constant 0 : index
    %c10_274 = arith.constant 10 : index
    %c1_275 = arith.constant 1 : index
    %c0_276 = arith.constant 0 : index
    %274 = vector.load %arg1[%c0_273, %c10_274, %c1_275, %c0_276] : memref<1x32x8x4xf32, #tpu.memory_space<vmem>>, vector<1x4x4x4xf32>
    %275 = vector.shape_cast %274 : vector<1x4x4x4xf32> to vector<16x4xf32>
    %276 = arith.truncf %275 : vector<16x4xf32> to vector<16x4xbf16>
    %c39 = arith.constant 39 : index
    %c0_277 = arith.constant 0 : index
    %c0_278 = arith.constant 0 : index
    %277 = vector.load %arg2[%c39, %c0_277, %c0_278] : memref<81x4x128xbf16, #tpu.memory_space<vmem>>, vector<1x4x128xbf16>
    %278 = vector.shape_cast %277 : vector<1x4x128xbf16> to vector<4x128xbf16>
    %cst_279 = arith.constant dense<0.000000e+00> : vector<16x128xf32>
    %279 = tpu.matmul %276, %278, %cst_279 {dimension_numbers = #tpu.dot_dimension_numbers<[1], [0], [0], [1], [0, 0, 1, 1], [], []>} : vector<16x4xbf16>, vector<4x128xbf16>, vector<16x128xf32> -> vector<16x128xf32>
    %280 = arith.addf %273, %279 : vector<16x128xf32>
    %c0_280 = arith.constant 0 : index
    %c2_281 = arith.constant 2 : index
    %c2_282 = arith.constant 2 : index
    %c0_283 = arith.constant 0 : index
    %281 = vector.load %arg1[%c0_280, %c2_281, %c2_282, %c0_283] : memref<1x32x8x4xf32, #tpu.memory_space<vmem>>, vector<1x4x4x4xf32>
    %282 = vector.shape_cast %281 : vector<1x4x4x4xf32> to vector<16x4xf32>
    %283 = arith.truncf %282 : vector<16x4xf32> to vector<16x4xbf16>
    %c40 = arith.constant 40 : index
    %c0_284 = arith.constant 0 : index
    %c0_285 = arith.constant 0 : index
    %284 = vector.load %arg2[%c40, %c0_284, %c0_285] : memref<81x4x128xbf16, #tpu.memory_space<vmem>>, vector<1x4x128xbf16>
    %285 = vector.shape_cast %284 : vector<1x4x128xbf16> to vector<4x128xbf16>
    %cst_286 = arith.constant dense<0.000000e+00> : vector<16x128xf32>
    %286 = tpu.matmul %283, %285, %cst_286 {dimension_numbers = #tpu.dot_dimension_numbers<[1], [0], [0], [1], [0, 0, 1, 1], [], []>} : vector<16x4xbf16>, vector<4x128xbf16>, vector<16x128xf32> -> vector<16x128xf32>
    %287 = arith.addf %280, %286 : vector<16x128xf32>
    %c0_287 = arith.constant 0 : index
    %c10_288 = arith.constant 10 : index
    %c2_289 = arith.constant 2 : index
    %c0_290 = arith.constant 0 : index
    %288 = vector.load %arg1[%c0_287, %c10_288, %c2_289, %c0_290] : memref<1x32x8x4xf32, #tpu.memory_space<vmem>>, vector<1x4x4x4xf32>
    %289 = vector.shape_cast %288 : vector<1x4x4x4xf32> to vector<16x4xf32>
    %290 = arith.truncf %289 : vector<16x4xf32> to vector<16x4xbf16>
    %c41 = arith.constant 41 : index
    %c0_291 = arith.constant 0 : index
    %c0_292 = arith.constant 0 : index
    %291 = vector.load %arg2[%c41, %c0_291, %c0_292] : memref<81x4x128xbf16, #tpu.memory_space<vmem>>, vector<1x4x128xbf16>
    %292 = vector.shape_cast %291 : vector<1x4x128xbf16> to vector<4x128xbf16>
    %cst_293 = arith.constant dense<0.000000e+00> : vector<16x128xf32>
    %293 = tpu.matmul %290, %292, %cst_293 {dimension_numbers = #tpu.dot_dimension_numbers<[1], [0], [0], [1], [0, 0, 1, 1], [], []>} : vector<16x4xbf16>, vector<4x128xbf16>, vector<16x128xf32> -> vector<16x128xf32>
    %294 = arith.addf %287, %293 : vector<16x128xf32>
    %c0_294 = arith.constant 0 : index
    %c2_295 = arith.constant 2 : index
    %c3_296 = arith.constant 3 : index
    %c0_297 = arith.constant 0 : index
    %295 = vector.load %arg1[%c0_294, %c2_295, %c3_296, %c0_297] : memref<1x32x8x4xf32, #tpu.memory_space<vmem>>, vector<1x4x4x4xf32>
    %296 = vector.shape_cast %295 : vector<1x4x4x4xf32> to vector<16x4xf32>
    %297 = arith.truncf %296 : vector<16x4xf32> to vector<16x4xbf16>
    %c42 = arith.constant 42 : index
    %c0_298 = arith.constant 0 : index
    %c0_299 = arith.constant 0 : index
    %298 = vector.load %arg2[%c42, %c0_298, %c0_299] : memref<81x4x128xbf16, #tpu.memory_space<vmem>>, vector<1x4x128xbf16>
    %299 = vector.shape_cast %298 : vector<1x4x128xbf16> to vector<4x128xbf16>
    %cst_300 = arith.constant dense<0.000000e+00> : vector<16x128xf32>
    %300 = tpu.matmul %297, %299, %cst_300 {dimension_numbers = #tpu.dot_dimension_numbers<[1], [0], [0], [1], [0, 0, 1, 1], [], []>} : vector<16x4xbf16>, vector<4x128xbf16>, vector<16x128xf32> -> vector<16x128xf32>
    %301 = arith.addf %294, %300 : vector<16x128xf32>
    %c0_301 = arith.constant 0 : index
    %c10_302 = arith.constant 10 : index
    %c3_303 = arith.constant 3 : index
    %c0_304 = arith.constant 0 : index
    %302 = vector.load %arg1[%c0_301, %c10_302, %c3_303, %c0_304] : memref<1x32x8x4xf32, #tpu.memory_space<vmem>>, vector<1x4x4x4xf32>
    %303 = vector.shape_cast %302 : vector<1x4x4x4xf32> to vector<16x4xf32>
    %304 = arith.truncf %303 : vector<16x4xf32> to vector<16x4xbf16>
    %c43 = arith.constant 43 : index
    %c0_305 = arith.constant 0 : index
    %c0_306 = arith.constant 0 : index
    %305 = vector.load %arg2[%c43, %c0_305, %c0_306] : memref<81x4x128xbf16, #tpu.memory_space<vmem>>, vector<1x4x128xbf16>
    %306 = vector.shape_cast %305 : vector<1x4x128xbf16> to vector<4x128xbf16>
    %cst_307 = arith.constant dense<0.000000e+00> : vector<16x128xf32>
    %307 = tpu.matmul %304, %306, %cst_307 {dimension_numbers = #tpu.dot_dimension_numbers<[1], [0], [0], [1], [0, 0, 1, 1], [], []>} : vector<16x4xbf16>, vector<4x128xbf16>, vector<16x128xf32> -> vector<16x128xf32>
    %308 = arith.addf %301, %307 : vector<16x128xf32>
    %c0_308 = arith.constant 0 : index
    %c2_309 = arith.constant 2 : index
    %c4_310 = arith.constant 4 : index
    %c0_311 = arith.constant 0 : index
    %309 = vector.load %arg1[%c0_308, %c2_309, %c4_310, %c0_311] : memref<1x32x8x4xf32, #tpu.memory_space<vmem>>, vector<1x4x4x4xf32>
    %310 = vector.shape_cast %309 : vector<1x4x4x4xf32> to vector<16x4xf32>
    %311 = arith.truncf %310 : vector<16x4xf32> to vector<16x4xbf16>
    %c44 = arith.constant 44 : index
    %c0_312 = arith.constant 0 : index
    %c0_313 = arith.constant 0 : index
    %312 = vector.load %arg2[%c44, %c0_312, %c0_313] : memref<81x4x128xbf16, #tpu.memory_space<vmem>>, vector<1x4x128xbf16>
    %313 = vector.shape_cast %312 : vector<1x4x128xbf16> to vector<4x128xbf16>
    %cst_314 = arith.constant dense<0.000000e+00> : vector<16x128xf32>
    %314 = tpu.matmul %311, %313, %cst_314 {dimension_numbers = #tpu.dot_dimension_numbers<[1], [0], [0], [1], [0, 0, 1, 1], [], []>} : vector<16x4xbf16>, vector<4x128xbf16>, vector<16x128xf32> -> vector<16x128xf32>
    %315 = arith.addf %308, %314 : vector<16x128xf32>
    %c0_315 = arith.constant 0 : index
    %c18_316 = arith.constant 18 : index
    %c0_317 = arith.constant 0 : index
    %c0_318 = arith.constant 0 : index
    %316 = vector.load %arg1[%c0_315, %c18_316, %c0_317, %c0_318] : memref<1x32x8x4xf32, #tpu.memory_space<vmem>>, vector<1x4x4x4xf32>
    %317 = vector.shape_cast %316 : vector<1x4x4x4xf32> to vector<16x4xf32>
    %318 = arith.truncf %317 : vector<16x4xf32> to vector<16x4xbf16>
    %c45 = arith.constant 45 : index
    %c0_319 = arith.constant 0 : index
    %c0_320 = arith.constant 0 : index
    %319 = vector.load %arg2[%c45, %c0_319, %c0_320] : memref<81x4x128xbf16, #tpu.memory_space<vmem>>, vector<1x4x128xbf16>
    %320 = vector.shape_cast %319 : vector<1x4x128xbf16> to vector<4x128xbf16>
    %cst_321 = arith.constant dense<0.000000e+00> : vector<16x128xf32>
    %321 = tpu.matmul %318, %320, %cst_321 {dimension_numbers = #tpu.dot_dimension_numbers<[1], [0], [0], [1], [0, 0, 1, 1], [], []>} : vector<16x4xbf16>, vector<4x128xbf16>, vector<16x128xf32> -> vector<16x128xf32>
    %322 = arith.addf %315, %321 : vector<16x128xf32>
    %c0_322 = arith.constant 0 : index
    %c26_323 = arith.constant 26 : index
    %c0_324 = arith.constant 0 : index
    %c0_325 = arith.constant 0 : index
    %323 = vector.load %arg1[%c0_322, %c26_323, %c0_324, %c0_325] : memref<1x32x8x4xf32, #tpu.memory_space<vmem>>, vector<1x4x4x4xf32>
    %324 = vector.shape_cast %323 : vector<1x4x4x4xf32> to vector<16x4xf32>
    %325 = arith.truncf %324 : vector<16x4xf32> to vector<16x4xbf16>
    %c46 = arith.constant 46 : index
    %c0_326 = arith.constant 0 : index
    %c0_327 = arith.constant 0 : index
    %326 = vector.load %arg2[%c46, %c0_326, %c0_327] : memref<81x4x128xbf16, #tpu.memory_space<vmem>>, vector<1x4x128xbf16>
    %327 = vector.shape_cast %326 : vector<1x4x128xbf16> to vector<4x128xbf16>
    %cst_328 = arith.constant dense<0.000000e+00> : vector<16x128xf32>
    %328 = tpu.matmul %325, %327, %cst_328 {dimension_numbers = #tpu.dot_dimension_numbers<[1], [0], [0], [1], [0, 0, 1, 1], [], []>} : vector<16x4xbf16>, vector<4x128xbf16>, vector<16x128xf32> -> vector<16x128xf32>
    %329 = arith.addf %322, %328 : vector<16x128xf32>
    %c0_329 = arith.constant 0 : index
    %c18_330 = arith.constant 18 : index
    %c1_331 = arith.constant 1 : index
    %c0_332 = arith.constant 0 : index
    %330 = vector.load %arg1[%c0_329, %c18_330, %c1_331, %c0_332] : memref<1x32x8x4xf32, #tpu.memory_space<vmem>>, vector<1x4x4x4xf32>
    %331 = vector.shape_cast %330 : vector<1x4x4x4xf32> to vector<16x4xf32>
    %332 = arith.truncf %331 : vector<16x4xf32> to vector<16x4xbf16>
    %c47 = arith.constant 47 : index
    %c0_333 = arith.constant 0 : index
    %c0_334 = arith.constant 0 : index
    %333 = vector.load %arg2[%c47, %c0_333, %c0_334] : memref<81x4x128xbf16, #tpu.memory_space<vmem>>, vector<1x4x128xbf16>
    %334 = vector.shape_cast %333 : vector<1x4x128xbf16> to vector<4x128xbf16>
    %cst_335 = arith.constant dense<0.000000e+00> : vector<16x128xf32>
    %335 = tpu.matmul %332, %334, %cst_335 {dimension_numbers = #tpu.dot_dimension_numbers<[1], [0], [0], [1], [0, 0, 1, 1], [], []>} : vector<16x4xbf16>, vector<4x128xbf16>, vector<16x128xf32> -> vector<16x128xf32>
    %336 = arith.addf %329, %335 : vector<16x128xf32>
    %c0_336 = arith.constant 0 : index
    %c26_337 = arith.constant 26 : index
    %c1_338 = arith.constant 1 : index
    %c0_339 = arith.constant 0 : index
    %337 = vector.load %arg1[%c0_336, %c26_337, %c1_338, %c0_339] : memref<1x32x8x4xf32, #tpu.memory_space<vmem>>, vector<1x4x4x4xf32>
    %338 = vector.shape_cast %337 : vector<1x4x4x4xf32> to vector<16x4xf32>
    %339 = arith.truncf %338 : vector<16x4xf32> to vector<16x4xbf16>
    %c48 = arith.constant 48 : index
    %c0_340 = arith.constant 0 : index
    %c0_341 = arith.constant 0 : index
    %340 = vector.load %arg2[%c48, %c0_340, %c0_341] : memref<81x4x128xbf16, #tpu.memory_space<vmem>>, vector<1x4x128xbf16>
    %341 = vector.shape_cast %340 : vector<1x4x128xbf16> to vector<4x128xbf16>
    %cst_342 = arith.constant dense<0.000000e+00> : vector<16x128xf32>
    %342 = tpu.matmul %339, %341, %cst_342 {dimension_numbers = #tpu.dot_dimension_numbers<[1], [0], [0], [1], [0, 0, 1, 1], [], []>} : vector<16x4xbf16>, vector<4x128xbf16>, vector<16x128xf32> -> vector<16x128xf32>
    %343 = arith.addf %336, %342 : vector<16x128xf32>
    %c0_343 = arith.constant 0 : index
    %c18_344 = arith.constant 18 : index
    %c2_345 = arith.constant 2 : index
    %c0_346 = arith.constant 0 : index
    %344 = vector.load %arg1[%c0_343, %c18_344, %c2_345, %c0_346] : memref<1x32x8x4xf32, #tpu.memory_space<vmem>>, vector<1x4x4x4xf32>
    %345 = vector.shape_cast %344 : vector<1x4x4x4xf32> to vector<16x4xf32>
    %346 = arith.truncf %345 : vector<16x4xf32> to vector<16x4xbf16>
    %c49 = arith.constant 49 : index
    %c0_347 = arith.constant 0 : index
    %c0_348 = arith.constant 0 : index
    %347 = vector.load %arg2[%c49, %c0_347, %c0_348] : memref<81x4x128xbf16, #tpu.memory_space<vmem>>, vector<1x4x128xbf16>
    %348 = vector.shape_cast %347 : vector<1x4x128xbf16> to vector<4x128xbf16>
    %cst_349 = arith.constant dense<0.000000e+00> : vector<16x128xf32>
    %349 = tpu.matmul %346, %348, %cst_349 {dimension_numbers = #tpu.dot_dimension_numbers<[1], [0], [0], [1], [0, 0, 1, 1], [], []>} : vector<16x4xbf16>, vector<4x128xbf16>, vector<16x128xf32> -> vector<16x128xf32>
    %350 = arith.addf %343, %349 : vector<16x128xf32>
    %c0_350 = arith.constant 0 : index
    %c26_351 = arith.constant 26 : index
    %c2_352 = arith.constant 2 : index
    %c0_353 = arith.constant 0 : index
    %351 = vector.load %arg1[%c0_350, %c26_351, %c2_352, %c0_353] : memref<1x32x8x4xf32, #tpu.memory_space<vmem>>, vector<1x4x4x4xf32>
    %352 = vector.shape_cast %351 : vector<1x4x4x4xf32> to vector<16x4xf32>
    %353 = arith.truncf %352 : vector<16x4xf32> to vector<16x4xbf16>
    %c50 = arith.constant 50 : index
    %c0_354 = arith.constant 0 : index
    %c0_355 = arith.constant 0 : index
    %354 = vector.load %arg2[%c50, %c0_354, %c0_355] : memref<81x4x128xbf16, #tpu.memory_space<vmem>>, vector<1x4x128xbf16>
    %355 = vector.shape_cast %354 : vector<1x4x128xbf16> to vector<4x128xbf16>
    %cst_356 = arith.constant dense<0.000000e+00> : vector<16x128xf32>
    %356 = tpu.matmul %353, %355, %cst_356 {dimension_numbers = #tpu.dot_dimension_numbers<[1], [0], [0], [1], [0, 0, 1, 1], [], []>} : vector<16x4xbf16>, vector<4x128xbf16>, vector<16x128xf32> -> vector<16x128xf32>
    %357 = arith.addf %350, %356 : vector<16x128xf32>
    %c0_357 = arith.constant 0 : index
    %c18_358 = arith.constant 18 : index
    %c3_359 = arith.constant 3 : index
    %c0_360 = arith.constant 0 : index
    %358 = vector.load %arg1[%c0_357, %c18_358, %c3_359, %c0_360] : memref<1x32x8x4xf32, #tpu.memory_space<vmem>>, vector<1x4x4x4xf32>
    %359 = vector.shape_cast %358 : vector<1x4x4x4xf32> to vector<16x4xf32>
    %360 = arith.truncf %359 : vector<16x4xf32> to vector<16x4xbf16>
    %c51 = arith.constant 51 : index
    %c0_361 = arith.constant 0 : index
    %c0_362 = arith.constant 0 : index
    %361 = vector.load %arg2[%c51, %c0_361, %c0_362] : memref<81x4x128xbf16, #tpu.memory_space<vmem>>, vector<1x4x128xbf16>
    %362 = vector.shape_cast %361 : vector<1x4x128xbf16> to vector<4x128xbf16>
    %cst_363 = arith.constant dense<0.000000e+00> : vector<16x128xf32>
    %363 = tpu.matmul %360, %362, %cst_363 {dimension_numbers = #tpu.dot_dimension_numbers<[1], [0], [0], [1], [0, 0, 1, 1], [], []>} : vector<16x4xbf16>, vector<4x128xbf16>, vector<16x128xf32> -> vector<16x128xf32>
    %364 = arith.addf %357, %363 : vector<16x128xf32>
    %c0_364 = arith.constant 0 : index
    %c26_365 = arith.constant 26 : index
    %c3_366 = arith.constant 3 : index
    %c0_367 = arith.constant 0 : index
    %365 = vector.load %arg1[%c0_364, %c26_365, %c3_366, %c0_367] : memref<1x32x8x4xf32, #tpu.memory_space<vmem>>, vector<1x4x4x4xf32>
    %366 = vector.shape_cast %365 : vector<1x4x4x4xf32> to vector<16x4xf32>
    %367 = arith.truncf %366 : vector<16x4xf32> to vector<16x4xbf16>
    %c52 = arith.constant 52 : index
    %c0_368 = arith.constant 0 : index
    %c0_369 = arith.constant 0 : index
    %368 = vector.load %arg2[%c52, %c0_368, %c0_369] : memref<81x4x128xbf16, #tpu.memory_space<vmem>>, vector<1x4x128xbf16>
    %369 = vector.shape_cast %368 : vector<1x4x128xbf16> to vector<4x128xbf16>
    %cst_370 = arith.constant dense<0.000000e+00> : vector<16x128xf32>
    %370 = tpu.matmul %367, %369, %cst_370 {dimension_numbers = #tpu.dot_dimension_numbers<[1], [0], [0], [1], [0, 0, 1, 1], [], []>} : vector<16x4xbf16>, vector<4x128xbf16>, vector<16x128xf32> -> vector<16x128xf32>
    %371 = arith.addf %364, %370 : vector<16x128xf32>
    %c0_371 = arith.constant 0 : index
    %c18_372 = arith.constant 18 : index
    %c4_373 = arith.constant 4 : index
    %c0_374 = arith.constant 0 : index
    %372 = vector.load %arg1[%c0_371, %c18_372, %c4_373, %c0_374] : memref<1x32x8x4xf32, #tpu.memory_space<vmem>>, vector<1x4x4x4xf32>
    %373 = vector.shape_cast %372 : vector<1x4x4x4xf32> to vector<16x4xf32>
    %374 = arith.truncf %373 : vector<16x4xf32> to vector<16x4xbf16>
    %c53 = arith.constant 53 : index
    %c0_375 = arith.constant 0 : index
    %c0_376 = arith.constant 0 : index
    %375 = vector.load %arg2[%c53, %c0_375, %c0_376] : memref<81x4x128xbf16, #tpu.memory_space<vmem>>, vector<1x4x128xbf16>
    %376 = vector.shape_cast %375 : vector<1x4x128xbf16> to vector<4x128xbf16>
    %cst_377 = arith.constant dense<0.000000e+00> : vector<16x128xf32>
    %377 = tpu.matmul %374, %376, %cst_377 {dimension_numbers = #tpu.dot_dimension_numbers<[1], [0], [0], [1], [0, 0, 1, 1], [], []>} : vector<16x4xbf16>, vector<4x128xbf16>, vector<16x128xf32> -> vector<16x128xf32>
    %378 = arith.addf %371, %377 : vector<16x128xf32>
    %c0_378 = arith.constant 0 : index
    %c3_379 = arith.constant 3 : index
    %c0_380 = arith.constant 0 : index
    %c0_381 = arith.constant 0 : index
    %379 = vector.load %arg1[%c0_378, %c3_379, %c0_380, %c0_381] : memref<1x32x8x4xf32, #tpu.memory_space<vmem>>, vector<1x4x4x4xf32>
    %380 = vector.shape_cast %379 : vector<1x4x4x4xf32> to vector<16x4xf32>
    %381 = arith.truncf %380 : vector<16x4xf32> to vector<16x4xbf16>
    %c54 = arith.constant 54 : index
    %c0_382 = arith.constant 0 : index
    %c0_383 = arith.constant 0 : index
    %382 = vector.load %arg2[%c54, %c0_382, %c0_383] : memref<81x4x128xbf16, #tpu.memory_space<vmem>>, vector<1x4x128xbf16>
    %383 = vector.shape_cast %382 : vector<1x4x128xbf16> to vector<4x128xbf16>
    %cst_384 = arith.constant dense<0.000000e+00> : vector<16x128xf32>
    %384 = tpu.matmul %381, %383, %cst_384 {dimension_numbers = #tpu.dot_dimension_numbers<[1], [0], [0], [1], [0, 0, 1, 1], [], []>} : vector<16x4xbf16>, vector<4x128xbf16>, vector<16x128xf32> -> vector<16x128xf32>
    %385 = arith.addf %378, %384 : vector<16x128xf32>
    %c0_385 = arith.constant 0 : index
    %c11_386 = arith.constant 11 : index
    %c0_387 = arith.constant 0 : index
    %c0_388 = arith.constant 0 : index
    %386 = vector.load %arg1[%c0_385, %c11_386, %c0_387, %c0_388] : memref<1x32x8x4xf32, #tpu.memory_space<vmem>>, vector<1x4x4x4xf32>
    %387 = vector.shape_cast %386 : vector<1x4x4x4xf32> to vector<16x4xf32>
    %388 = arith.truncf %387 : vector<16x4xf32> to vector<16x4xbf16>
    %c55 = arith.constant 55 : index
    %c0_389 = arith.constant 0 : index
    %c0_390 = arith.constant 0 : index
    %389 = vector.load %arg2[%c55, %c0_389, %c0_390] : memref<81x4x128xbf16, #tpu.memory_space<vmem>>, vector<1x4x128xbf16>
    %390 = vector.shape_cast %389 : vector<1x4x128xbf16> to vector<4x128xbf16>
    %cst_391 = arith.constant dense<0.000000e+00> : vector<16x128xf32>
    %391 = tpu.matmul %388, %390, %cst_391 {dimension_numbers = #tpu.dot_dimension_numbers<[1], [0], [0], [1], [0, 0, 1, 1], [], []>} : vector<16x4xbf16>, vector<4x128xbf16>, vector<16x128xf32> -> vector<16x128xf32>
    %392 = arith.addf %385, %391 : vector<16x128xf32>
    %c0_392 = arith.constant 0 : index
    %c3_393 = arith.constant 3 : index
    %c1_394 = arith.constant 1 : index
    %c0_395 = arith.constant 0 : index
    %393 = vector.load %arg1[%c0_392, %c3_393, %c1_394, %c0_395] : memref<1x32x8x4xf32, #tpu.memory_space<vmem>>, vector<1x4x4x4xf32>
    %394 = vector.shape_cast %393 : vector<1x4x4x4xf32> to vector<16x4xf32>
    %395 = arith.truncf %394 : vector<16x4xf32> to vector<16x4xbf16>
    %c56 = arith.constant 56 : index
    %c0_396 = arith.constant 0 : index
    %c0_397 = arith.constant 0 : index
    %396 = vector.load %arg2[%c56, %c0_396, %c0_397] : memref<81x4x128xbf16, #tpu.memory_space<vmem>>, vector<1x4x128xbf16>
    %397 = vector.shape_cast %396 : vector<1x4x128xbf16> to vector<4x128xbf16>
    %cst_398 = arith.constant dense<0.000000e+00> : vector<16x128xf32>
    %398 = tpu.matmul %395, %397, %cst_398 {dimension_numbers = #tpu.dot_dimension_numbers<[1], [0], [0], [1], [0, 0, 1, 1], [], []>} : vector<16x4xbf16>, vector<4x128xbf16>, vector<16x128xf32> -> vector<16x128xf32>
    %399 = arith.addf %392, %398 : vector<16x128xf32>
    %c0_399 = arith.constant 0 : index
    %c11_400 = arith.constant 11 : index
    %c1_401 = arith.constant 1 : index
    %c0_402 = arith.constant 0 : index
    %400 = vector.load %arg1[%c0_399, %c11_400, %c1_401, %c0_402] : memref<1x32x8x4xf32, #tpu.memory_space<vmem>>, vector<1x4x4x4xf32>
    %401 = vector.shape_cast %400 : vector<1x4x4x4xf32> to vector<16x4xf32>
    %402 = arith.truncf %401 : vector<16x4xf32> to vector<16x4xbf16>
    %c57 = arith.constant 57 : index
    %c0_403 = arith.constant 0 : index
    %c0_404 = arith.constant 0 : index
    %403 = vector.load %arg2[%c57, %c0_403, %c0_404] : memref<81x4x128xbf16, #tpu.memory_space<vmem>>, vector<1x4x128xbf16>
    %404 = vector.shape_cast %403 : vector<1x4x128xbf16> to vector<4x128xbf16>
    %cst_405 = arith.constant dense<0.000000e+00> : vector<16x128xf32>
    %405 = tpu.matmul %402, %404, %cst_405 {dimension_numbers = #tpu.dot_dimension_numbers<[1], [0], [0], [1], [0, 0, 1, 1], [], []>} : vector<16x4xbf16>, vector<4x128xbf16>, vector<16x128xf32> -> vector<16x128xf32>
    %406 = arith.addf %399, %405 : vector<16x128xf32>
    %c0_406 = arith.constant 0 : index
    %c3_407 = arith.constant 3 : index
    %c2_408 = arith.constant 2 : index
    %c0_409 = arith.constant 0 : index
    %407 = vector.load %arg1[%c0_406, %c3_407, %c2_408, %c0_409] : memref<1x32x8x4xf32, #tpu.memory_space<vmem>>, vector<1x4x4x4xf32>
    %408 = vector.shape_cast %407 : vector<1x4x4x4xf32> to vector<16x4xf32>
    %409 = arith.truncf %408 : vector<16x4xf32> to vector<16x4xbf16>
    %c58 = arith.constant 58 : index
    %c0_410 = arith.constant 0 : index
    %c0_411 = arith.constant 0 : index
    %410 = vector.load %arg2[%c58, %c0_410, %c0_411] : memref<81x4x128xbf16, #tpu.memory_space<vmem>>, vector<1x4x128xbf16>
    %411 = vector.shape_cast %410 : vector<1x4x128xbf16> to vector<4x128xbf16>
    %cst_412 = arith.constant dense<0.000000e+00> : vector<16x128xf32>
    %412 = tpu.matmul %409, %411, %cst_412 {dimension_numbers = #tpu.dot_dimension_numbers<[1], [0], [0], [1], [0, 0, 1, 1], [], []>} : vector<16x4xbf16>, vector<4x128xbf16>, vector<16x128xf32> -> vector<16x128xf32>
    %413 = arith.addf %406, %412 : vector<16x128xf32>
    %c0_413 = arith.constant 0 : index
    %c11_414 = arith.constant 11 : index
    %c2_415 = arith.constant 2 : index
    %c0_416 = arith.constant 0 : index
    %414 = vector.load %arg1[%c0_413, %c11_414, %c2_415, %c0_416] : memref<1x32x8x4xf32, #tpu.memory_space<vmem>>, vector<1x4x4x4xf32>
    %415 = vector.shape_cast %414 : vector<1x4x4x4xf32> to vector<16x4xf32>
    %416 = arith.truncf %415 : vector<16x4xf32> to vector<16x4xbf16>
    %c59 = arith.constant 59 : index
    %c0_417 = arith.constant 0 : index
    %c0_418 = arith.constant 0 : index
    %417 = vector.load %arg2[%c59, %c0_417, %c0_418] : memref<81x4x128xbf16, #tpu.memory_space<vmem>>, vector<1x4x128xbf16>
    %418 = vector.shape_cast %417 : vector<1x4x128xbf16> to vector<4x128xbf16>
    %cst_419 = arith.constant dense<0.000000e+00> : vector<16x128xf32>
    %419 = tpu.matmul %416, %418, %cst_419 {dimension_numbers = #tpu.dot_dimension_numbers<[1], [0], [0], [1], [0, 0, 1, 1], [], []>} : vector<16x4xbf16>, vector<4x128xbf16>, vector<16x128xf32> -> vector<16x128xf32>
    %420 = arith.addf %413, %419 : vector<16x128xf32>
    %c0_420 = arith.constant 0 : index
    %c3_421 = arith.constant 3 : index
    %c3_422 = arith.constant 3 : index
    %c0_423 = arith.constant 0 : index
    %421 = vector.load %arg1[%c0_420, %c3_421, %c3_422, %c0_423] : memref<1x32x8x4xf32, #tpu.memory_space<vmem>>, vector<1x4x4x4xf32>
    %422 = vector.shape_cast %421 : vector<1x4x4x4xf32> to vector<16x4xf32>
    %423 = arith.truncf %422 : vector<16x4xf32> to vector<16x4xbf16>
    %c60 = arith.constant 60 : index
    %c0_424 = arith.constant 0 : index
    %c0_425 = arith.constant 0 : index
    %424 = vector.load %arg2[%c60, %c0_424, %c0_425] : memref<81x4x128xbf16, #tpu.memory_space<vmem>>, vector<1x4x128xbf16>
    %425 = vector.shape_cast %424 : vector<1x4x128xbf16> to vector<4x128xbf16>
    %cst_426 = arith.constant dense<0.000000e+00> : vector<16x128xf32>
    %426 = tpu.matmul %423, %425, %cst_426 {dimension_numbers = #tpu.dot_dimension_numbers<[1], [0], [0], [1], [0, 0, 1, 1], [], []>} : vector<16x4xbf16>, vector<4x128xbf16>, vector<16x128xf32> -> vector<16x128xf32>
    %427 = arith.addf %420, %426 : vector<16x128xf32>
    %c0_427 = arith.constant 0 : index
    %c11_428 = arith.constant 11 : index
    %c3_429 = arith.constant 3 : index
    %c0_430 = arith.constant 0 : index
    %428 = vector.load %arg1[%c0_427, %c11_428, %c3_429, %c0_430] : memref<1x32x8x4xf32, #tpu.memory_space<vmem>>, vector<1x4x4x4xf32>
    %429 = vector.shape_cast %428 : vector<1x4x4x4xf32> to vector<16x4xf32>
    %430 = arith.truncf %429 : vector<16x4xf32> to vector<16x4xbf16>
    %c61 = arith.constant 61 : index
    %c0_431 = arith.constant 0 : index
    %c0_432 = arith.constant 0 : index
    %431 = vector.load %arg2[%c61, %c0_431, %c0_432] : memref<81x4x128xbf16, #tpu.memory_space<vmem>>, vector<1x4x128xbf16>
    %432 = vector.shape_cast %431 : vector<1x4x128xbf16> to vector<4x128xbf16>
    %cst_433 = arith.constant dense<0.000000e+00> : vector<16x128xf32>
    %433 = tpu.matmul %430, %432, %cst_433 {dimension_numbers = #tpu.dot_dimension_numbers<[1], [0], [0], [1], [0, 0, 1, 1], [], []>} : vector<16x4xbf16>, vector<4x128xbf16>, vector<16x128xf32> -> vector<16x128xf32>
    %434 = arith.addf %427, %433 : vector<16x128xf32>
    %c0_434 = arith.constant 0 : index
    %c3_435 = arith.constant 3 : index
    %c4_436 = arith.constant 4 : index
    %c0_437 = arith.constant 0 : index
    %435 = vector.load %arg1[%c0_434, %c3_435, %c4_436, %c0_437] : memref<1x32x8x4xf32, #tpu.memory_space<vmem>>, vector<1x4x4x4xf32>
    %436 = vector.shape_cast %435 : vector<1x4x4x4xf32> to vector<16x4xf32>
    %437 = arith.truncf %436 : vector<16x4xf32> to vector<16x4xbf16>
    %c62 = arith.constant 62 : index
    %c0_438 = arith.constant 0 : index
    %c0_439 = arith.constant 0 : index
    %438 = vector.load %arg2[%c62, %c0_438, %c0_439] : memref<81x4x128xbf16, #tpu.memory_space<vmem>>, vector<1x4x128xbf16>
    %439 = vector.shape_cast %438 : vector<1x4x128xbf16> to vector<4x128xbf16>
    %cst_440 = arith.constant dense<0.000000e+00> : vector<16x128xf32>
    %440 = tpu.matmul %437, %439, %cst_440 {dimension_numbers = #tpu.dot_dimension_numbers<[1], [0], [0], [1], [0, 0, 1, 1], [], []>} : vector<16x4xbf16>, vector<4x128xbf16>, vector<16x128xf32> -> vector<16x128xf32>
    %441 = arith.addf %434, %440 : vector<16x128xf32>
    %c0_441 = arith.constant 0 : index
    %c19_442 = arith.constant 19 : index
    %c0_443 = arith.constant 0 : index
    %c0_444 = arith.constant 0 : index
    %442 = vector.load %arg1[%c0_441, %c19_442, %c0_443, %c0_444] : memref<1x32x8x4xf32, #tpu.memory_space<vmem>>, vector<1x4x4x4xf32>
    %443 = vector.shape_cast %442 : vector<1x4x4x4xf32> to vector<16x4xf32>
    %444 = arith.truncf %443 : vector<16x4xf32> to vector<16x4xbf16>
    %c63 = arith.constant 63 : index
    %c0_445 = arith.constant 0 : index
    %c0_446 = arith.constant 0 : index
    %445 = vector.load %arg2[%c63, %c0_445, %c0_446] : memref<81x4x128xbf16, #tpu.memory_space<vmem>>, vector<1x4x128xbf16>
    %446 = vector.shape_cast %445 : vector<1x4x128xbf16> to vector<4x128xbf16>
    %cst_447 = arith.constant dense<0.000000e+00> : vector<16x128xf32>
    %447 = tpu.matmul %444, %446, %cst_447 {dimension_numbers = #tpu.dot_dimension_numbers<[1], [0], [0], [1], [0, 0, 1, 1], [], []>} : vector<16x4xbf16>, vector<4x128xbf16>, vector<16x128xf32> -> vector<16x128xf32>
    %448 = arith.addf %441, %447 : vector<16x128xf32>
    %c0_448 = arith.constant 0 : index
    %c27_449 = arith.constant 27 : index
    %c0_450 = arith.constant 0 : index
    %c0_451 = arith.constant 0 : index
    %449 = vector.load %arg1[%c0_448, %c27_449, %c0_450, %c0_451] : memref<1x32x8x4xf32, #tpu.memory_space<vmem>>, vector<1x4x4x4xf32>
    %450 = vector.shape_cast %449 : vector<1x4x4x4xf32> to vector<16x4xf32>
    %451 = arith.truncf %450 : vector<16x4xf32> to vector<16x4xbf16>
    %c64 = arith.constant 64 : index
    %c0_452 = arith.constant 0 : index
    %c0_453 = arith.constant 0 : index
    %452 = vector.load %arg2[%c64, %c0_452, %c0_453] : memref<81x4x128xbf16, #tpu.memory_space<vmem>>, vector<1x4x128xbf16>
    %453 = vector.shape_cast %452 : vector<1x4x128xbf16> to vector<4x128xbf16>
    %cst_454 = arith.constant dense<0.000000e+00> : vector<16x128xf32>
    %454 = tpu.matmul %451, %453, %cst_454 {dimension_numbers = #tpu.dot_dimension_numbers<[1], [0], [0], [1], [0, 0, 1, 1], [], []>} : vector<16x4xbf16>, vector<4x128xbf16>, vector<16x128xf32> -> vector<16x128xf32>
    %455 = arith.addf %448, %454 : vector<16x128xf32>
    %c0_455 = arith.constant 0 : index
    %c19_456 = arith.constant 19 : index
    %c1_457 = arith.constant 1 : index
    %c0_458 = arith.constant 0 : index
    %456 = vector.load %arg1[%c0_455, %c19_456, %c1_457, %c0_458] : memref<1x32x8x4xf32, #tpu.memory_space<vmem>>, vector<1x4x4x4xf32>
    %457 = vector.shape_cast %456 : vector<1x4x4x4xf32> to vector<16x4xf32>
    %458 = arith.truncf %457 : vector<16x4xf32> to vector<16x4xbf16>
    %c65 = arith.constant 65 : index
    %c0_459 = arith.constant 0 : index
    %c0_460 = arith.constant 0 : index
    %459 = vector.load %arg2[%c65, %c0_459, %c0_460] : memref<81x4x128xbf16, #tpu.memory_space<vmem>>, vector<1x4x128xbf16>
    %460 = vector.shape_cast %459 : vector<1x4x128xbf16> to vector<4x128xbf16>
    %cst_461 = arith.constant dense<0.000000e+00> : vector<16x128xf32>
    %461 = tpu.matmul %458, %460, %cst_461 {dimension_numbers = #tpu.dot_dimension_numbers<[1], [0], [0], [1], [0, 0, 1, 1], [], []>} : vector<16x4xbf16>, vector<4x128xbf16>, vector<16x128xf32> -> vector<16x128xf32>
    %462 = arith.addf %455, %461 : vector<16x128xf32>
    %c0_462 = arith.constant 0 : index
    %c27_463 = arith.constant 27 : index
    %c1_464 = arith.constant 1 : index
    %c0_465 = arith.constant 0 : index
    %463 = vector.load %arg1[%c0_462, %c27_463, %c1_464, %c0_465] : memref<1x32x8x4xf32, #tpu.memory_space<vmem>>, vector<1x4x4x4xf32>
    %464 = vector.shape_cast %463 : vector<1x4x4x4xf32> to vector<16x4xf32>
    %465 = arith.truncf %464 : vector<16x4xf32> to vector<16x4xbf16>
    %c66 = arith.constant 66 : index
    %c0_466 = arith.constant 0 : index
    %c0_467 = arith.constant 0 : index
    %466 = vector.load %arg2[%c66, %c0_466, %c0_467] : memref<81x4x128xbf16, #tpu.memory_space<vmem>>, vector<1x4x128xbf16>
    %467 = vector.shape_cast %466 : vector<1x4x128xbf16> to vector<4x128xbf16>
    %cst_468 = arith.constant dense<0.000000e+00> : vector<16x128xf32>
    %468 = tpu.matmul %465, %467, %cst_468 {dimension_numbers = #tpu.dot_dimension_numbers<[1], [0], [0], [1], [0, 0, 1, 1], [], []>} : vector<16x4xbf16>, vector<4x128xbf16>, vector<16x128xf32> -> vector<16x128xf32>
    %469 = arith.addf %462, %468 : vector<16x128xf32>
    %c0_469 = arith.constant 0 : index
    %c19_470 = arith.constant 19 : index
    %c2_471 = arith.constant 2 : index
    %c0_472 = arith.constant 0 : index
    %470 = vector.load %arg1[%c0_469, %c19_470, %c2_471, %c0_472] : memref<1x32x8x4xf32, #tpu.memory_space<vmem>>, vector<1x4x4x4xf32>
    %471 = vector.shape_cast %470 : vector<1x4x4x4xf32> to vector<16x4xf32>
    %472 = arith.truncf %471 : vector<16x4xf32> to vector<16x4xbf16>
    %c67 = arith.constant 67 : index
    %c0_473 = arith.constant 0 : index
    %c0_474 = arith.constant 0 : index
    %473 = vector.load %arg2[%c67, %c0_473, %c0_474] : memref<81x4x128xbf16, #tpu.memory_space<vmem>>, vector<1x4x128xbf16>
    %474 = vector.shape_cast %473 : vector<1x4x128xbf16> to vector<4x128xbf16>
    %cst_475 = arith.constant dense<0.000000e+00> : vector<16x128xf32>
    %475 = tpu.matmul %472, %474, %cst_475 {dimension_numbers = #tpu.dot_dimension_numbers<[1], [0], [0], [1], [0, 0, 1, 1], [], []>} : vector<16x4xbf16>, vector<4x128xbf16>, vector<16x128xf32> -> vector<16x128xf32>
    %476 = arith.addf %469, %475 : vector<16x128xf32>
    %c0_476 = arith.constant 0 : index
    %c27_477 = arith.constant 27 : index
    %c2_478 = arith.constant 2 : index
    %c0_479 = arith.constant 0 : index
    %477 = vector.load %arg1[%c0_476, %c27_477, %c2_478, %c0_479] : memref<1x32x8x4xf32, #tpu.memory_space<vmem>>, vector<1x4x4x4xf32>
    %478 = vector.shape_cast %477 : vector<1x4x4x4xf32> to vector<16x4xf32>
    %479 = arith.truncf %478 : vector<16x4xf32> to vector<16x4xbf16>
    %c68 = arith.constant 68 : index
    %c0_480 = arith.constant 0 : index
    %c0_481 = arith.constant 0 : index
    %480 = vector.load %arg2[%c68, %c0_480, %c0_481] : memref<81x4x128xbf16, #tpu.memory_space<vmem>>, vector<1x4x128xbf16>
    %481 = vector.shape_cast %480 : vector<1x4x128xbf16> to vector<4x128xbf16>
    %cst_482 = arith.constant dense<0.000000e+00> : vector<16x128xf32>
    %482 = tpu.matmul %479, %481, %cst_482 {dimension_numbers = #tpu.dot_dimension_numbers<[1], [0], [0], [1], [0, 0, 1, 1], [], []>} : vector<16x4xbf16>, vector<4x128xbf16>, vector<16x128xf32> -> vector<16x128xf32>
    %483 = arith.addf %476, %482 : vector<16x128xf32>
    %c0_483 = arith.constant 0 : index
    %c19_484 = arith.constant 19 : index
    %c3_485 = arith.constant 3 : index
    %c0_486 = arith.constant 0 : index
    %484 = vector.load %arg1[%c0_483, %c19_484, %c3_485, %c0_486] : memref<1x32x8x4xf32, #tpu.memory_space<vmem>>, vector<1x4x4x4xf32>
    %485 = vector.shape_cast %484 : vector<1x4x4x4xf32> to vector<16x4xf32>
    %486 = arith.truncf %485 : vector<16x4xf32> to vector<16x4xbf16>
    %c69 = arith.constant 69 : index
    %c0_487 = arith.constant 0 : index
    %c0_488 = arith.constant 0 : index
    %487 = vector.load %arg2[%c69, %c0_487, %c0_488] : memref<81x4x128xbf16, #tpu.memory_space<vmem>>, vector<1x4x128xbf16>
    %488 = vector.shape_cast %487 : vector<1x4x128xbf16> to vector<4x128xbf16>
    %cst_489 = arith.constant dense<0.000000e+00> : vector<16x128xf32>
    %489 = tpu.matmul %486, %488, %cst_489 {dimension_numbers = #tpu.dot_dimension_numbers<[1], [0], [0], [1], [0, 0, 1, 1], [], []>} : vector<16x4xbf16>, vector<4x128xbf16>, vector<16x128xf32> -> vector<16x128xf32>
    %490 = arith.addf %483, %489 : vector<16x128xf32>
    %c0_490 = arith.constant 0 : index
    %c27_491 = arith.constant 27 : index
    %c3_492 = arith.constant 3 : index
    %c0_493 = arith.constant 0 : index
    %491 = vector.load %arg1[%c0_490, %c27_491, %c3_492, %c0_493] : memref<1x32x8x4xf32, #tpu.memory_space<vmem>>, vector<1x4x4x4xf32>
    %492 = vector.shape_cast %491 : vector<1x4x4x4xf32> to vector<16x4xf32>
    %493 = arith.truncf %492 : vector<16x4xf32> to vector<16x4xbf16>
    %c70 = arith.constant 70 : index
    %c0_494 = arith.constant 0 : index
    %c0_495 = arith.constant 0 : index
    %494 = vector.load %arg2[%c70, %c0_494, %c0_495] : memref<81x4x128xbf16, #tpu.memory_space<vmem>>, vector<1x4x128xbf16>
    %495 = vector.shape_cast %494 : vector<1x4x128xbf16> to vector<4x128xbf16>
    %cst_496 = arith.constant dense<0.000000e+00> : vector<16x128xf32>
    %496 = tpu.matmul %493, %495, %cst_496 {dimension_numbers = #tpu.dot_dimension_numbers<[1], [0], [0], [1], [0, 0, 1, 1], [], []>} : vector<16x4xbf16>, vector<4x128xbf16>, vector<16x128xf32> -> vector<16x128xf32>
    %497 = arith.addf %490, %496 : vector<16x128xf32>
    %c0_497 = arith.constant 0 : index
    %c19_498 = arith.constant 19 : index
    %c4_499 = arith.constant 4 : index
    %c0_500 = arith.constant 0 : index
    %498 = vector.load %arg1[%c0_497, %c19_498, %c4_499, %c0_500] : memref<1x32x8x4xf32, #tpu.memory_space<vmem>>, vector<1x4x4x4xf32>
    %499 = vector.shape_cast %498 : vector<1x4x4x4xf32> to vector<16x4xf32>
    %500 = arith.truncf %499 : vector<16x4xf32> to vector<16x4xbf16>
    %c71 = arith.constant 71 : index
    %c0_501 = arith.constant 0 : index
    %c0_502 = arith.constant 0 : index
    %501 = vector.load %arg2[%c71, %c0_501, %c0_502] : memref<81x4x128xbf16, #tpu.memory_space<vmem>>, vector<1x4x128xbf16>
    %502 = vector.shape_cast %501 : vector<1x4x128xbf16> to vector<4x128xbf16>
    %cst_503 = arith.constant dense<0.000000e+00> : vector<16x128xf32>
    %503 = tpu.matmul %500, %502, %cst_503 {dimension_numbers = #tpu.dot_dimension_numbers<[1], [0], [0], [1], [0, 0, 1, 1], [], []>} : vector<16x4xbf16>, vector<4x128xbf16>, vector<16x128xf32> -> vector<16x128xf32>
    %504 = arith.addf %497, %503 : vector<16x128xf32>
    %c0_504 = arith.constant 0 : index
    %c4_505 = arith.constant 4 : index
    %c0_506 = arith.constant 0 : index
    %c0_507 = arith.constant 0 : index
    %505 = vector.load %arg1[%c0_504, %c4_505, %c0_506, %c0_507] : memref<1x32x8x4xf32, #tpu.memory_space<vmem>>, vector<1x4x4x4xf32>
    %506 = vector.shape_cast %505 : vector<1x4x4x4xf32> to vector<16x4xf32>
    %507 = arith.truncf %506 : vector<16x4xf32> to vector<16x4xbf16>
    %c72 = arith.constant 72 : index
    %c0_508 = arith.constant 0 : index
    %c0_509 = arith.constant 0 : index
    %508 = vector.load %arg2[%c72, %c0_508, %c0_509] : memref<81x4x128xbf16, #tpu.memory_space<vmem>>, vector<1x4x128xbf16>
    %509 = vector.shape_cast %508 : vector<1x4x128xbf16> to vector<4x128xbf16>
    %cst_510 = arith.constant dense<0.000000e+00> : vector<16x128xf32>
    %510 = tpu.matmul %507, %509, %cst_510 {dimension_numbers = #tpu.dot_dimension_numbers<[1], [0], [0], [1], [0, 0, 1, 1], [], []>} : vector<16x4xbf16>, vector<4x128xbf16>, vector<16x128xf32> -> vector<16x128xf32>
    %511 = arith.addf %504, %510 : vector<16x128xf32>
    %c0_511 = arith.constant 0 : index
    %c12_512 = arith.constant 12 : index
    %c0_513 = arith.constant 0 : index
    %c0_514 = arith.constant 0 : index
    %512 = vector.load %arg1[%c0_511, %c12_512, %c0_513, %c0_514] : memref<1x32x8x4xf32, #tpu.memory_space<vmem>>, vector<1x4x4x4xf32>
    %513 = vector.shape_cast %512 : vector<1x4x4x4xf32> to vector<16x4xf32>
    %514 = arith.truncf %513 : vector<16x4xf32> to vector<16x4xbf16>
    %c73 = arith.constant 73 : index
    %c0_515 = arith.constant 0 : index
    %c0_516 = arith.constant 0 : index
    %515 = vector.load %arg2[%c73, %c0_515, %c0_516] : memref<81x4x128xbf16, #tpu.memory_space<vmem>>, vector<1x4x128xbf16>
    %516 = vector.shape_cast %515 : vector<1x4x128xbf16> to vector<4x128xbf16>
    %cst_517 = arith.constant dense<0.000000e+00> : vector<16x128xf32>
    %517 = tpu.matmul %514, %516, %cst_517 {dimension_numbers = #tpu.dot_dimension_numbers<[1], [0], [0], [1], [0, 0, 1, 1], [], []>} : vector<16x4xbf16>, vector<4x128xbf16>, vector<16x128xf32> -> vector<16x128xf32>
    %518 = arith.addf %511, %517 : vector<16x128xf32>
    %c0_518 = arith.constant 0 : index
    %c4_519 = arith.constant 4 : index
    %c1_520 = arith.constant 1 : index
    %c0_521 = arith.constant 0 : index
    %519 = vector.load %arg1[%c0_518, %c4_519, %c1_520, %c0_521] : memref<1x32x8x4xf32, #tpu.memory_space<vmem>>, vector<1x4x4x4xf32>
    %520 = vector.shape_cast %519 : vector<1x4x4x4xf32> to vector<16x4xf32>
    %521 = arith.truncf %520 : vector<16x4xf32> to vector<16x4xbf16>
    %c74 = arith.constant 74 : index
    %c0_522 = arith.constant 0 : index
    %c0_523 = arith.constant 0 : index
    %522 = vector.load %arg2[%c74, %c0_522, %c0_523] : memref<81x4x128xbf16, #tpu.memory_space<vmem>>, vector<1x4x128xbf16>
    %523 = vector.shape_cast %522 : vector<1x4x128xbf16> to vector<4x128xbf16>
    %cst_524 = arith.constant dense<0.000000e+00> : vector<16x128xf32>
    %524 = tpu.matmul %521, %523, %cst_524 {dimension_numbers = #tpu.dot_dimension_numbers<[1], [0], [0], [1], [0, 0, 1, 1], [], []>} : vector<16x4xbf16>, vector<4x128xbf16>, vector<16x128xf32> -> vector<16x128xf32>
    %525 = arith.addf %518, %524 : vector<16x128xf32>
    %c0_525 = arith.constant 0 : index
    %c12_526 = arith.constant 12 : index
    %c1_527 = arith.constant 1 : index
    %c0_528 = arith.constant 0 : index
    %526 = vector.load %arg1[%c0_525, %c12_526, %c1_527, %c0_528] : memref<1x32x8x4xf32, #tpu.memory_space<vmem>>, vector<1x4x4x4xf32>
    %527 = vector.shape_cast %526 : vector<1x4x4x4xf32> to vector<16x4xf32>
    %528 = arith.truncf %527 : vector<16x4xf32> to vector<16x4xbf16>
    %c75 = arith.constant 75 : index
    %c0_529 = arith.constant 0 : index
    %c0_530 = arith.constant 0 : index
    %529 = vector.load %arg2[%c75, %c0_529, %c0_530] : memref<81x4x128xbf16, #tpu.memory_space<vmem>>, vector<1x4x128xbf16>
    %530 = vector.shape_cast %529 : vector<1x4x128xbf16> to vector<4x128xbf16>
    %cst_531 = arith.constant dense<0.000000e+00> : vector<16x128xf32>
    %531 = tpu.matmul %528, %530, %cst_531 {dimension_numbers = #tpu.dot_dimension_numbers<[1], [0], [0], [1], [0, 0, 1, 1], [], []>} : vector<16x4xbf16>, vector<4x128xbf16>, vector<16x128xf32> -> vector<16x128xf32>
    %532 = arith.addf %525, %531 : vector<16x128xf32>
    %c0_532 = arith.constant 0 : index
    %c4_533 = arith.constant 4 : index
    %c2_534 = arith.constant 2 : index
    %c0_535 = arith.constant 0 : index
    %533 = vector.load %arg1[%c0_532, %c4_533, %c2_534, %c0_535] : memref<1x32x8x4xf32, #tpu.memory_space<vmem>>, vector<1x4x4x4xf32>
    %534 = vector.shape_cast %533 : vector<1x4x4x4xf32> to vector<16x4xf32>
    %535 = arith.truncf %534 : vector<16x4xf32> to vector<16x4xbf16>
    %c76 = arith.constant 76 : index
    %c0_536 = arith.constant 0 : index
    %c0_537 = arith.constant 0 : index
    %536 = vector.load %arg2[%c76, %c0_536, %c0_537] : memref<81x4x128xbf16, #tpu.memory_space<vmem>>, vector<1x4x128xbf16>
    %537 = vector.shape_cast %536 : vector<1x4x128xbf16> to vector<4x128xbf16>
    %cst_538 = arith.constant dense<0.000000e+00> : vector<16x128xf32>
    %538 = tpu.matmul %535, %537, %cst_538 {dimension_numbers = #tpu.dot_dimension_numbers<[1], [0], [0], [1], [0, 0, 1, 1], [], []>} : vector<16x4xbf16>, vector<4x128xbf16>, vector<16x128xf32> -> vector<16x128xf32>
    %539 = arith.addf %532, %538 : vector<16x128xf32>
    %c0_539 = arith.constant 0 : index
    %c12_540 = arith.constant 12 : index
    %c2_541 = arith.constant 2 : index
    %c0_542 = arith.constant 0 : index
    %540 = vector.load %arg1[%c0_539, %c12_540, %c2_541, %c0_542] : memref<1x32x8x4xf32, #tpu.memory_space<vmem>>, vector<1x4x4x4xf32>
    %541 = vector.shape_cast %540 : vector<1x4x4x4xf32> to vector<16x4xf32>
    %542 = arith.truncf %541 : vector<16x4xf32> to vector<16x4xbf16>
    %c77 = arith.constant 77 : index
    %c0_543 = arith.constant 0 : index
    %c0_544 = arith.constant 0 : index
    %543 = vector.load %arg2[%c77, %c0_543, %c0_544] : memref<81x4x128xbf16, #tpu.memory_space<vmem>>, vector<1x4x128xbf16>
    %544 = vector.shape_cast %543 : vector<1x4x128xbf16> to vector<4x128xbf16>
    %cst_545 = arith.constant dense<0.000000e+00> : vector<16x128xf32>
    %545 = tpu.matmul %542, %544, %cst_545 {dimension_numbers = #tpu.dot_dimension_numbers<[1], [0], [0], [1], [0, 0, 1, 1], [], []>} : vector<16x4xbf16>, vector<4x128xbf16>, vector<16x128xf32> -> vector<16x128xf32>
    %546 = arith.addf %539, %545 : vector<16x128xf32>
    %c0_546 = arith.constant 0 : index
    %c4_547 = arith.constant 4 : index
    %c3_548 = arith.constant 3 : index
    %c0_549 = arith.constant 0 : index
    %547 = vector.load %arg1[%c0_546, %c4_547, %c3_548, %c0_549] : memref<1x32x8x4xf32, #tpu.memory_space<vmem>>, vector<1x4x4x4xf32>
    %548 = vector.shape_cast %547 : vector<1x4x4x4xf32> to vector<16x4xf32>
    %549 = arith.truncf %548 : vector<16x4xf32> to vector<16x4xbf16>
    %c78 = arith.constant 78 : index
    %c0_550 = arith.constant 0 : index
    %c0_551 = arith.constant 0 : index
    %550 = vector.load %arg2[%c78, %c0_550, %c0_551] : memref<81x4x128xbf16, #tpu.memory_space<vmem>>, vector<1x4x128xbf16>
    %551 = vector.shape_cast %550 : vector<1x4x128xbf16> to vector<4x128xbf16>
    %cst_552 = arith.constant dense<0.000000e+00> : vector<16x128xf32>
    %552 = tpu.matmul %549, %551, %cst_552 {dimension_numbers = #tpu.dot_dimension_numbers<[1], [0], [0], [1], [0, 0, 1, 1], [], []>} : vector<16x4xbf16>, vector<4x128xbf16>, vector<16x128xf32> -> vector<16x128xf32>
    %553 = arith.addf %546, %552 : vector<16x128xf32>
    %c0_553 = arith.constant 0 : index
    %c12_554 = arith.constant 12 : index
    %c3_555 = arith.constant 3 : index
    %c0_556 = arith.constant 0 : index
    %554 = vector.load %arg1[%c0_553, %c12_554, %c3_555, %c0_556] : memref<1x32x8x4xf32, #tpu.memory_space<vmem>>, vector<1x4x4x4xf32>
    %555 = vector.shape_cast %554 : vector<1x4x4x4xf32> to vector<16x4xf32>
    %556 = arith.truncf %555 : vector<16x4xf32> to vector<16x4xbf16>
    %c79 = arith.constant 79 : index
    %c0_557 = arith.constant 0 : index
    %c0_558 = arith.constant 0 : index
    %557 = vector.load %arg2[%c79, %c0_557, %c0_558] : memref<81x4x128xbf16, #tpu.memory_space<vmem>>, vector<1x4x128xbf16>
    %558 = vector.shape_cast %557 : vector<1x4x128xbf16> to vector<4x128xbf16>
    %cst_559 = arith.constant dense<0.000000e+00> : vector<16x128xf32>
    %559 = tpu.matmul %556, %558, %cst_559 {dimension_numbers = #tpu.dot_dimension_numbers<[1], [0], [0], [1], [0, 0, 1, 1], [], []>} : vector<16x4xbf16>, vector<4x128xbf16>, vector<16x128xf32> -> vector<16x128xf32>
    %560 = arith.addf %553, %559 : vector<16x128xf32>
    %c0_560 = arith.constant 0 : index
    %c4_561 = arith.constant 4 : index
    %c4_562 = arith.constant 4 : index
    %c0_563 = arith.constant 0 : index
    %561 = vector.load %arg1[%c0_560, %c4_561, %c4_562, %c0_563] : memref<1x32x8x4xf32, #tpu.memory_space<vmem>>, vector<1x4x4x4xf32>
    %562 = vector.shape_cast %561 : vector<1x4x4x4xf32> to vector<16x4xf32>
    %563 = arith.truncf %562 : vector<16x4xf32> to vector<16x4xbf16>
    %c80 = arith.constant 80 : index
    %c0_564 = arith.constant 0 : index
    %c0_565 = arith.constant 0 : index
    %564 = vector.load %arg2[%c80, %c0_564, %c0_565] : memref<81x4x128xbf16, #tpu.memory_space<vmem>>, vector<1x4x128xbf16>
    %565 = vector.shape_cast %564 : vector<1x4x128xbf16> to vector<4x128xbf16>
    %cst_566 = arith.constant dense<0.000000e+00> : vector<16x128xf32>
    %566 = tpu.matmul %563, %565, %cst_566 {dimension_numbers = #tpu.dot_dimension_numbers<[1], [0], [0], [1], [0, 0, 1, 1], [], []>} : vector<16x4xbf16>, vector<4x128xbf16>, vector<16x128xf32> -> vector<16x128xf32>
    %567 = arith.addf %560, %566 : vector<16x128xf32>
    %c0_567 = arith.constant 0 : index
    %c0_568 = arith.constant 0 : index
    %568 = vector.load %arg3[%c0_567, %c0_568] : memref<1x128xf32, #tpu.memory_space<vmem>>, vector<1x128xf32>
    %569 = vector.broadcast %568 : vector<1x128xf32> to vector<16x128xf32>
    %570 = arith.addf %567, %569 : vector<16x128xf32>
    %571 = arith.mulf %570, %570 : vector<16x128xf32>
    %572 = arith.truncf %571 : vector<16x128xf32> to vector<16x128xbf16>
    %c0_569 = arith.constant 0 : index
    %c0_570 = arith.constant 0 : index
    %573 = vector.load %arg4[%c0_569, %c0_570] : memref<128x128xbf16, #tpu.memory_space<vmem>>, vector<128x128xbf16>
    %cst_571 = arith.constant dense<0.000000e+00> : vector<16x128xf32>
    %574 = tpu.matmul %572, %573, %cst_571 {dimension_numbers = #tpu.dot_dimension_numbers<[1], [0], [0], [1], [0, 0, 1, 1], [], []>} : vector<16x128xbf16>, vector<128x128xbf16>, vector<16x128xf32> -> vector<16x128xf32>
    %575 = arith.truncf %574 : vector<16x128xf32> to vector<16x128xbf16>
    %c0_572 = arith.constant 0 : index
    %c0_573 = arith.constant 0 : index
    %576 = vector.load %arg5[%c0_572, %c0_573] : memref<128x128xbf16, #tpu.memory_space<vmem>>, vector<128x128xbf16>
    %cst_574 = arith.constant dense<0.000000e+00> : vector<16x128xf32>
    %577 = tpu.matmul %575, %576, %cst_574 {dimension_numbers = #tpu.dot_dimension_numbers<[1], [0], [0], [1], [0, 0, 1, 1], [], []>} : vector<16x128xbf16>, vector<128x128xbf16>, vector<16x128xf32> -> vector<16x128xf32>
    %cst_575 = arith.constant 9.99999996E-13 : f32
    %578 = vector.broadcast %cst_575 : f32 to vector<16x128xf32>
    %579 = arith.addf %577, %578 : vector<16x128xf32>
    %580 = math.rsqrt %579 : vector<16x128xf32>
    %581 = arith.mulf %577, %580 : vector<16x128xf32>
    %cst_576 = arith.constant 1.000000e+00 : f32
    %582 = vector.broadcast %cst_576 : f32 to vector<16x128xf32>
    %583 = arith.addf %582, %577 : vector<16x128xf32>
    %584 = tpu.reciprocal %583 {approx = true} : vector<16x128xf32> -> vector<16x128xf32>
    %585 = arith.mulf %581, %584 : vector<16x128xf32>
    %586 = arith.mulf %570, %585 : vector<16x128xf32>
    %587 = vector.shape_cast %586 : vector<16x128xf32> to vector<1x16x128xf32>
    %c0_577 = arith.constant 0 : index
    %c0_578 = arith.constant 0 : index
    %c0_579 = arith.constant 0 : index
    %588 = vector.load %arg6[%c0_577, %c0_578, %c0_579] : memref<1x16x128xf32, #tpu.memory_space<vmem>>, vector<1x16x128xf32>
    tpu.vector_store %arg6[%c0_577, %c0_578, %c0_579], %587 {strides = array<i32>} : memref<1x16x128xf32, #tpu.memory_space<vmem>>, vector<1x16x128xf32>,
    return
  }
  func.func @transform_0(%arg0: i32) -> (i32, i32, i32, i32) {
    %c0_i32 = arith.constant 0 : i32
    %c0_i32_0 = arith.constant 0 : i32
    %c0_i32_1 = arith.constant 0 : i32
    %c0_i32_2 = arith.constant 0 : i32
    return %arg0, %c0_i32, %c0_i32_0, %c0_i32_1 : i32, i32, i32, i32
  }
  func.func @transform_1(%arg0: i32) -> (i32, i32, i32) {
    %c0_i32 = arith.constant 0 : i32
    %c0_i32_0 = arith.constant 0 : i32
    %c0_i32_1 = arith.constant 0 : i32
    %c0_i32_2 = arith.constant 0 : i32
    return %c0_i32, %c0_i32_0, %c0_i32_1 : i32, i32, i32
  }
  func.func @transform_2(%arg0: i32) -> (i32, i32) {
    %c0_i32 = arith.constant 0 : i32
    %c0_i32_0 = arith.constant 0 : i32
    %c0_i32_1 = arith.constant 0 : i32
    return %c0_i32, %c0_i32_0 : i32, i32
  }
  func.func @transform_3(%arg0: i32) -> (i32, i32) {
    %c0_i32 = arith.constant 0 : i32
    %c0_i32_0 = arith.constant 0 : i32
    %c0_i32_1 = arith.constant 0 : i32
    return %c0_i32, %c0_i32_0 : i32, i32
  }
  func.func @transform_4(%arg0: i32) -> (i32, i32) {
    %c0_i32 = arith.constant 0 : i32
    %c0_i32_0 = arith.constant 0 : i32
    %c0_i32_1 = arith.constant 0 : i32
    return %c0_i32, %c0_i32_0 : i32, i32
  }
  func.func @transform_5(%arg0: i32) -> (i32, i32, i32) {
    %c0_i32 = arith.constant 0 : i32
    %c0_i32_0 = arith.constant 0 : i32
    %c0_i32_1 = arith.constant 0 : i32
    return %arg0, %c0_i32, %c0_i32_0 : i32, i32, i32
  }
}

</mosaic_0001>

<bundles_post_ra>
// kernel: primary_capsule_forward.1
= control target key start
LH: loop header
LB: loop body
LE: loop exit
PB: predicated region body
PF: predicated region fallthrough
CT: control target
= control target key end

     0   :  { %s4672_s18 = smov 0   ;;  %s5520_s0 = inlined_call_operand.vmem [shape: f32[2,32,8,4], index: 0, kind: input, shape index: {}]   ;;  %s5521_s1 = inlined_call_operand.vmem [shape: bf16[81,4,128], index: 1, kind: input, shape index: {}]   ;;  %s5522_s2 = inlined_call_operand.vmem [shape: f32[1,128], index: 2, kind: input, shape index: {}]   ;;  %s5523_s3 = inlined_call_operand.vmem [shape: bf16[128,128], index: 3, kind: input, shape index: {}]   ;;  %s5524_s4 = inlined_call_operand.vmem [shape: bf16[128,128], index: 4, kind: input, shape index: {}]   ;;  %s5525_s5 = inlined_call_operand.vmem [shape: f32[2,16,128], index: 5, kind: output, shape index: {}]  }
   0x1 LB: > { %s4059_s19 = sadd.s32 4294967295, %s4640_s18   ;;  %p4063_p0 = scmp.ge.s32.totalorder %s4640_s18, 1  ;;  %s4640_s18 = sphi %s4672_s18, %s15_s18  }
   0x2   : > { %p187_p1 = scmp.lt.s32.totalorder %s4640_s18, 3 }
   0x4   : > { %p188_p2 = pnand %p4063_p0, %p187_p1 }
   0x5   : > { %p215_p3 = scmp.lt.s32.totalorder (!%p188_p2), %s4059_s19, 1 }
   0x6   : > { %191 = sbr.rel (%p188_p2) target bundleno = 1193 (0x4a9), region = 40 }
   0xb   : > { %v246_v0 = vld [vmem:[%s5521_s1] sm:$0x3]  ;;  %vm274_vm0 = vcmask 1041408   ;;  %v4072_v2 = vld [vmem:[%s5521_s1 + $0x2] sm:$0x3]  ;;  %s5527_s19 = smov (!%p215_p3, %s4059_s19), 1 }
   0xc   : > { %v296_v1 = vsel %vm274_vm0, %v246_v0, 0  ;;  %v4075_v3 = vld [vmem:[%s5521_s1 + $0x4] sm:$0x3]  ;;  %v276_v4 = vsel %vm274_vm0, %v4072_v2, 0  ;;  %s4599_s26 = sshll.u32 %s5527_s19, 8  ;;  %vm270_vm1 = vcmask 31744  }
   0xd   : > { %305 = vmatpush.bf16.msra.mxu3 %v296_v1  ;;  %v338_v5 = vsel %vm274_vm0, %v4075_v3, 0  ;;  %285 = vmatpush.bf16.msra.mxu0 %v276_v4  ;;  %s4698_s29 = scalar_lea.vmem %s5520_s0, %s4599_s26  ;;  %v4081_v10 = vld [vmem:[%s5521_s1 + $0x6] sm:$0x3]  ;;  %v4083_v17 = vld [vmem:[%s5521_s1 + $0x8] sm:$0x3]  ;;  %s4600_s17 = sshll.u32 %s5527_s19, 4 }
   0xe   : > { %347 = vmatpush.bf16.msra.mxu2 %v338_v5  ;;  %v226_v6 = vld [vmem:[%s4698_s29] sm:$0xf]  ;;  %v227_v7 = vld [vmem:[%s4698_s29 + $0x8] sm:$0xf]  ;;  %v228_v8 = vld [vmem:[%s4698_s29 + $0x10] sm:$0xf]  ;;  %s224_s22 = scalar_lea.vmem %s5525_s5, %s4600_s17 }
   0xf   : > { %v229_v9 = vld [vmem:[%s4698_s29 + $0x18] sm:$0xf]  ;;  %234 = vst [vmem:[#allocation1] ss:$2 sm:$0xff] %v226_v6  ;;  %v382_v11 = vsel %vm274_vm0, %v4081_v10, 0  ;;  %v426_v18 = vsel %vm274_vm0, %v4083_v17, 0 }
  0x10   : > { %236 = vst [vmem:[#allocation1 + $0x1] ss:$2 sm:$0xff] %v227_v7  ;;  %v4068_v12 = vld [vmem:[%s4698_s29 + $0x40] sm:$0xf]  ;;  %v4069_v13 = vld [vmem:[%s4698_s29 + $0x48] sm:$0xf] }
  0x11   : > { %238 = vst [vmem:[#allocation1 + $0x10] ss:$2 sm:$0xff] %v228_v8  ;;  %391 = vmatpush.bf16.msrb.mxu3 %v382_v11  ;;  %v4070_v14 = vld [vmem:[%s4698_s29 + $0x50] sm:$0xf]  ;;  %v4071_v15 = vld [vmem:[%s4698_s29 + $0x58] sm:$0xf]  ;;  %435 = vmatpush.bf16.msrb.mxu0 %v426_v18 }
  0x12   : > { %240 = vst [vmem:[#allocation1 + $0x11] ss:$2 sm:$0xff] %v229_v9  ;;  %v4091_v19 = vld [vmem:[%s5521_s1 + $0xc] sm:$0x3]  ;;  %v312_v23 = vld [vmem:[%s4698_s29 + $0x1] sm:$0xf] }
  0x13   : > { %v514_v21 = vsel %vm274_vm0, %v4091_v19, 0  ;;  %v313_v24 = vld [vmem:[%s4698_s29 + $0x9] sm:$0xf]  ;;  %v314_v26 = vld [vmem:[%s4698_s29 + $0x11] sm:$0xf] }
  0x14   : > { %523 = vmatpush.bf16.msrb.mxu2 %v514_v21  ;;  %v315_v27 = vld [vmem:[%s4698_s29 + $0x19] sm:$0xf]  ;;  %v4077_v30 = vld [vmem:[%s4698_s29 + $0x41] sm:$0xf]  ;;  %v4078_v31 = vld [vmem:[%s4698_s29 + $0x49] sm:$0xf] }
  0x15   : > { %v4079_v33 = vld [vmem:[%s4698_s29 + $0x51] sm:$0xf]  ;;  %v4080_v34 = vld [vmem:[%s4698_s29 + $0x59] sm:$0xf]  ;;  %v400_v37 = vld [vmem:[%s4698_s29 + $0x2] sm:$0xf] }
  0x16   : > { %v401_v38 = vld [vmem:[%s4698_s29 + $0xa] sm:$0xf]  ;;  %v402_v39 = vld [vmem:[%s4698_s29 + $0x12] sm:$0xf]  ;;  %v403_v40 = vld [vmem:[%s4698_s29 + $0x1a] sm:$0xf] }
  0x17   : > { %v241_v16 = vld.sshfl [vmem:[#allocation1] sm:$0xff pattern:$0x75316420]  ;;  %v4089_v42 = vld [vmem:[%s5521_s1 + $0xa] sm:$0x3] }
  0x18   : > { %256 = vst [vmem:[#allocation1] ss:$2 sm:$0xff] %v4068_v12  ;;  %v470_v43 = vsel %vm274_vm0, %v4089_v42, 0  ;;  %v4097_v44 = vld [vmem:[%s5521_s1 + $0xe] sm:$0x3] }
  0x19   : > { %v242_v20 = vld.sshfl [vmem:[#allocation1 + $0x10] sm:$0xff pattern:$0x75316420]  ;;  %258 = vst [vmem:[#allocation1 + $0x1] ss:$2 sm:$0xff] %v4069_v13  ;;  %479 = vmatpush.bf16.msra.mxu1 %v470_v43  ;;  %v558_v46 = vsel %vm274_vm0, %v4097_v44, 0 }
  0x1a   : > { %v245_v22 = vpack.c.bf16 %v242_v20, %v241_v16  ;;  %260 = vst [vmem:[#allocation1 + $0x10] ss:$2 sm:$0xff] %v4070_v14  ;;  %v4085_v48 = vld [vmem:[%s4698_s29 + $0x42] sm:$0xf]  ;;  %v4086_v49 = vld [vmem:[%s4698_s29 + $0x4a] sm:$0xf] }
  0x1b   : > { %262 = vst [vmem:[#allocation1 + $0x11] ss:$2 sm:$0xff] %v4071_v15  ;;  %v4087_v50 = vld [vmem:[%s4698_s29 + $0x52] sm:$0xf]  ;;  %v4088_v51 = vld [vmem:[%s4698_s29 + $0x5a] sm:$0xf] }
  0x1c   : > { %4074 = vmatmul.msk.bf16.vlgmr.msra.gmra.mxu3 %vm270_vm1, %v245_v22  ;;  %v4099_v53 = vld [vmem:[%s5521_s1 + $0x10] sm:$0x3]  ;;  %v4111_v55 = vld [vmem:[%s5521_s1 + $0x14] sm:$0x3]  ;;  %v488_v59 = vld [vmem:[%s4698_s29 + $0x3] sm:$0xf] }
  0x1d   : > { %567 = vmatpush.bf16.msra.mxu3 %v558_v46  ;;  %v602_v54 = vsel %vm274_vm0, %v4099_v53, 0  ;;  %v692_v57 = vsel %vm274_vm0, %v4111_v55, 0  ;;  %v489_v60 = vld [vmem:[%s4698_s29 + $0xb] sm:$0xf]  ;;  %v490_v62 = vld [vmem:[%s4698_s29 + $0x13] sm:$0xf] }
  0x1e   : > { %v491_v63 = vld [vmem:[%s4698_s29 + $0x1b] sm:$0xf]  ;;  %v4093_v2 = vld [vmem:[%s4698_s29 + $0x43] sm:$0xf]  ;;  %v4094_v3 = vld [vmem:[%s4698_s29 + $0x4b] sm:$0xf] }
  0x1f   : > { %v4095_v5 = vld [vmem:[%s4698_s29 + $0x53] sm:$0xf]  ;;  %v4096_v6 = vld [vmem:[%s4698_s29 + $0x5b] sm:$0xf]  ;;  %v576_v9 = vld [vmem:[%s4698_s29 + $0x4] sm:$0xf] }
  0x20   : > { %v263_v25 = vld.sshfl [vmem:[#allocation1] sm:$0xff pattern:$0x75316420]  ;;  %v577_v10 = vld [vmem:[%s4698_s29 + $0xc] sm:$0xf] }
  0x21   : > { %320 = vst [vmem:[#allocation1] ss:$2 sm:$0xff] %v312_v23  ;;  %v578_v11 = vld [vmem:[%s4698_s29 + $0x14] sm:$0xf]  ;;  %v579_v12 = vld [vmem:[%s4698_s29 + $0x1c] sm:$0xf] }
  0x22   : > { %v264_v28 = vld.sshfl [vmem:[#allocation1 + $0x10] sm:$0xff pattern:$0x75316420]  ;;  %322 = vst [vmem:[#allocation1 + $0x1] ss:$2 sm:$0xff] %v313_v24 }
  0x23   : > { %v267_v29 = vpack.c.bf16 %v264_v28, %v263_v25  ;;  %324 = vst [vmem:[#allocation1 + $0x10] ss:$2 sm:$0xff] %v314_v26  ;;  %v4105_v14 = vld [vmem:[%s5521_s1 + $0x12] sm:$0x3]  ;;  %v4117_v16 = vld [vmem:[%s5521_s1 + $0x16] sm:$0x3] }
  0x24   : > { %326 = vst [vmem:[#allocation1 + $0x11] ss:$2 sm:$0xff] %v315_v27  ;;  %v647_v15 = vsel %vm274_vm0, %v4105_v14, 0  ;;  %v736_v18 = vsel %vm274_vm0, %v4117_v16, 0  ;;  %v4101_v20 = vld [vmem:[%s4698_s29 + $0x80] sm:$0xf] }
  0x25   : > { %4073 = vmatmul.msk.bf16.vlgmr.msra.gmra.mxu0 %vm270_vm1, %v267_v29  ;;  %656 = vmatpush.bf16.msrb.mxu1 %v647_v15  ;;  %v4102_v21 = vld [vmem:[%s4698_s29 + $0x88] sm:$0xf]  ;;  %v4103_v22 = vld [vmem:[%s4698_s29 + $0x90] sm:$0xf]  ;;  %v4104_v23 = vld [vmem:[%s4698_s29 + $0x98] sm:$0xf] }
  0x26   : > { %611 = vmatpush.bf16.msra.mxu0 %v602_v54  ;;  %v4123_v25 = vld [vmem:[%s5521_s1 + $0x18] sm:$0x3]  ;;  %v4135_v27 = vld [vmem:[%s5521_s1 + $0x1c] sm:$0x3]  ;;  %v4120_v46 = vld [vmem:[%s4698_s29 + $0xc9] sm:$0xf] }
  0x27   : > { %v780_v26 = vsel %vm274_vm0, %v4123_v25, 0  ;;  %v868_v29 = vsel %vm274_vm0, %v4135_v27, 0  ;;  %v4116_v42 = vld [vmem:[%s4698_s29 + $0x99] sm:$0xf] }
  0x28   : > { %v4140_v14 = vld [vmem:[%s4698_s29 + $0x9b] sm:$0xf] }
  0x29   : > { %v327_v32 = vld.sshfl [vmem:[#allocation1] sm:$0xff pattern:$0x75316420] }
  0x2a   : > { %364 = vst [vmem:[#allocation1] ss:$2 sm:$0xff] %v4077_v30 }
  0x2b   : > { %v328_v35 = vld.sshfl [vmem:[#allocation1 + $0x10] sm:$0xff pattern:$0x75316420]  ;;  %366 = vst [vmem:[#allocation1 + $0x1] ss:$2 sm:$0xff] %v4078_v31 }
  0x2c   : > { %v331_v36 = vpack.c.bf16 %v328_v35, %v327_v32  ;;  %368 = vst [vmem:[#allocation1 + $0x10] ss:$2 sm:$0xff] %v4079_v33  ;;  %v4107_v31 = vld [vmem:[%s4698_s29 + $0xc0] sm:$0xf]  ;;  %v4108_v32 = vld [vmem:[%s4698_s29 + $0xc8] sm:$0xf] }
  0x2d   : > { %370 = vst [vmem:[#allocation1 + $0x11] ss:$2 sm:$0xff] %v4080_v34  ;;  %v4109_v34 = vld [vmem:[%s4698_s29 + $0xd0] sm:$0xf]  ;;  %v4110_v35 = vld [vmem:[%s4698_s29 + $0xd8] sm:$0xf] }
  0x2e   : > { %4076 = vmatmul.msk.bf16.vlgmr.msra.gmra.mxu2 %vm270_vm1, %v331_v36 }
  0x2f   : > { %701 = vmatpush.bf16.msra.mxu2 %v692_v57  ;;  %v4126_v57 = vld [vmem:[%s4698_s29 + $0x8a] sm:$0xf] }
  0x32   : > { %v371_v41 = vld.sshfl [vmem:[#allocation1] sm:$0xff pattern:$0x75316420] }
  0x33   : > { %408 = vst [vmem:[#allocation1] ss:$2 sm:$0xff] %v400_v37 }
  0x34   : > { %v372_v45 = vld.sshfl [vmem:[#allocation1 + $0x10] sm:$0xff pattern:$0x75316420]  ;;  %410 = vst [vmem:[#allocation1 + $0x1] ss:$2 sm:$0xff] %v401_v38 }
  0x35   : > { %v375_v47 = vpack.c.bf16 %v372_v45, %v371_v41  ;;  %412 = vst [vmem:[#allocation1 + $0x10] ss:$2 sm:$0xff] %v402_v39  ;;  %v4113_v38 = vld [vmem:[%s4698_s29 + $0x81] sm:$0xf]  ;;  %v4114_v39 = vld [vmem:[%s4698_s29 + $0x89] sm:$0xf] }
  0x36   : > { %414 = vst [vmem:[#allocation1 + $0x11] ss:$2 sm:$0xff] %v403_v40  ;;  %v4115_v41 = vld [vmem:[%s4698_s29 + $0x91] sm:$0xf]  ;;  %v4119_v45 = vld [vmem:[%s4698_s29 + $0xc1] sm:$0xf] }
  0x37   : > { %4082 = vmatmul.msk.bf16.vlgmr.msrb.gmra.mxu3 %vm270_vm1, %v375_v47  ;;  %v4121_v47 = vld [vmem:[%s4698_s29 + $0xd1] sm:$0xf] }
  0x38   : > { %745 = vmatpush.bf16.msrb.mxu3 %v736_v18  ;;  %v4144_v18 = vld [vmem:[%s4698_s29 + $0xcb] sm:$0xf] }
  0x3b   : > { %v415_v52 = vld.sshfl [vmem:[#allocation1] sm:$0xff pattern:$0x75316420] }
  0x3c   : > { %452 = vst [vmem:[#allocation1] ss:$2 sm:$0xff] %v4085_v48  ;;  %v4122_v48 = vld [vmem:[%s4698_s29 + $0xd9] sm:$0xf] }
  0x3d   : > { %v416_v56 = vld.sshfl [vmem:[#allocation1 + $0x10] sm:$0xff pattern:$0x75316420]  ;;  %454 = vst [vmem:[#allocation1 + $0x1] ss:$2 sm:$0xff] %v4086_v49 }
  0x3e   : > { %v419_v58 = vpack.c.bf16 %v416_v56, %v415_v52  ;;  %456 = vst [vmem:[#allocation1 + $0x10] ss:$2 sm:$0xff] %v4087_v50  ;;  %v4129_v50 = vld [vmem:[%s5521_s1 + $0x1a] sm:$0x3]  ;;  %v4141_v52 = vld [vmem:[%s5521_s1 + $0x1e] sm:$0x3] }
  0x3f   : > { %458 = vst [vmem:[#allocation1 + $0x11] ss:$2 sm:$0xff] %v4088_v51  ;;  %v824_v51 = vsel %vm274_vm0, %v4129_v50, 0  ;;  %v912_v54 = vsel %vm274_vm0, %v4141_v52, 0  ;;  %v4125_v56 = vld [vmem:[%s4698_s29 + $0x82] sm:$0xf] }
  0x40   : > { %4084 = vmatmul.msk.bf16.vlgmr.msrb.gmra.mxu0 %vm270_vm1, %v419_v58  ;;  %v4127_v58 = vld [vmem:[%s4698_s29 + $0x92] sm:$0xf]  ;;  %v4164_v50 = vld [vmem:[%s4698_s29 + $0x60] sm:$0xf] }
  0x41   : > { %789 = vmatpush.bf16.msrb.mxu0 %v780_v26 }
  0x44   : > { %v459_v61 = vld.sshfl [vmem:[#allocation1] sm:$0xff pattern:$0x75316420] }
  0x45   : > { %496 = vst [vmem:[#allocation1] ss:$2 sm:$0xff] %v488_v59  ;;  %v4128_v59 = vld [vmem:[%s4698_s29 + $0x9a] sm:$0xf] }
  0x46   : > { %v460_v0 = vld.sshfl [vmem:[#allocation1 + $0x10] sm:$0xff pattern:$0x75316420]  ;;  %498 = vst [vmem:[#allocation1 + $0x1] ss:$2 sm:$0xff] %v489_v60 }
  0x47   : > { %500 = vst [vmem:[#allocation1 + $0x10] ss:$2 sm:$0xff] %v490_v62  ;;  %v463_v1 = vpack.c.bf16 %v460_v0, %v459_v61  ;;  %v4147_v61 = vld [vmem:[%s5521_s1 + $0x20] sm:$0x3] }
  0x48   : > { %502 = vst [vmem:[#allocation1 + $0x11] ss:$2 sm:$0xff] %v491_v63  ;;  %v956_v62 = vsel %vm274_vm0, %v4147_v61, 0  ;;  %v4159_v63 = vld [vmem:[%s5521_s1 + $0x24] sm:$0x3] }
  0x49   : > { %4090 = vmatmul.msk.bf16.vlgmr.msra.gmra.mxu1 %vm270_vm1, %v463_v1  ;;  %v1045_v1 = vsel %vm274_vm0, %v4159_v63, 0 }
  0x4a   : > { %833 = vmatpush.bf16.msra.mxu1 %v824_v51 }
  0x4d   : > { %v503_v4 = vld.sshfl [vmem:[#allocation1] sm:$0xff pattern:$0x75316420] }
  0x4e   : > { %540 = vst [vmem:[#allocation1] ss:$2 sm:$0xff] %v4093_v2 }
  0x4f   : > { %v504_v7 = vld.sshfl [vmem:[#allocation1 + $0x10] sm:$0xff pattern:$0x75316420]  ;;  %542 = vst [vmem:[#allocation1 + $0x1] ss:$2 sm:$0xff] %v4094_v3 }
  0x50   : > { %v507_v8 = vpack.c.bf16 %v504_v7, %v503_v4  ;;  %544 = vst [vmem:[#allocation1 + $0x10] ss:$2 sm:$0xff] %v4095_v5  ;;  %v4131_v3 = vld [vmem:[%s4698_s29 + $0xc2] sm:$0xf]  ;;  %v4132_v4 = vld [vmem:[%s4698_s29 + $0xca] sm:$0xf] }
  0x51   : > { %546 = vst [vmem:[#allocation1 + $0x11] ss:$2 sm:$0xff] %v4096_v6  ;;  %v4133_v6 = vld [vmem:[%s4698_s29 + $0xd2] sm:$0xf]  ;;  %v4134_v7 = vld [vmem:[%s4698_s29 + $0xda] sm:$0xf] }
  0x52   : > { %4092 = vmatmul.msk.bf16.vlgmr.msrb.gmra.mxu2 %vm270_vm1, %v507_v8 }
  0x53   : > { %877 = vmatpush.bf16.msrb.mxu2 %v868_v29  ;;  %v4150_v29 = vld [vmem:[%s4698_s29 + $0x8c] sm:$0xf] }
  0x56   : > { %v547_v13 = vld.sshfl [vmem:[#allocation1] sm:$0xff pattern:$0x75316420] }
  0x57   : > { %584 = vst [vmem:[#allocation1] ss:$2 sm:$0xff] %v576_v9 }
  0x58   : > { %v548_v17 = vld.sshfl [vmem:[#allocation1 + $0x10] sm:$0xff pattern:$0x75316420]  ;;  %586 = vst [vmem:[#allocation1 + $0x1] ss:$2 sm:$0xff] %v577_v10 }
  0x59   : > { %v551_v19 = vpack.c.bf16 %v548_v17, %v547_v13  ;;  %588 = vst [vmem:[#allocation1 + $0x10] ss:$2 sm:$0xff] %v578_v11  ;;  %v4137_v10 = vld [vmem:[%s4698_s29 + $0x83] sm:$0xf]  ;;  %v4138_v11 = vld [vmem:[%s4698_s29 + $0x8b] sm:$0xf] }
  0x5a   : > { %590 = vst [vmem:[#allocation1 + $0x11] ss:$2 sm:$0xff] %v579_v12  ;;  %v4139_v13 = vld [vmem:[%s4698_s29 + $0x93] sm:$0xf]  ;;  %v4143_v17 = vld [vmem:[%s4698_s29 + $0xc3] sm:$0xf] }
  0x5b   : > { %4098 = vmatmul.msk.bf16.vlgmr.msra.gmra.mxu3 %vm270_vm1, %v551_v19  ;;  %v4145_v19 = vld [vmem:[%s4698_s29 + $0xd3] sm:$0xf] }
  0x5c   : > { %921 = vmatpush.bf16.msra.mxu3 %v912_v54  ;;  %v4168_v54 = vld [vmem:[%s4698_s29 + $0x11] sm:$0xf] }
  0x5f   : > { %v591_v24 = vld.sshfl [vmem:[#allocation1] sm:$0xff pattern:$0x75316420] }
  0x60   : > { %629 = vst [vmem:[#allocation1] ss:$2 sm:$0xff] %v4101_v20  ;;  %v4146_v20 = vld [vmem:[%s4698_s29 + $0xdb] sm:$0xf] }
  0x61   : > { %v592_v28 = vld.sshfl [vmem:[#allocation1 + $0x10] sm:$0xff pattern:$0x75316420]  ;;  %631 = vst [vmem:[#allocation1 + $0x1] ss:$2 sm:$0xff] %v4102_v21 }
  0x62   : > { %v595_v30 = vpack.c.bf16 %v592_v28, %v591_v24  ;;  %633 = vst [vmem:[#allocation1 + $0x10] ss:$2 sm:$0xff] %v4103_v22  ;;  %v4153_v22 = vld [vmem:[%s5521_s1 + $0x22] sm:$0x3]  ;;  %v4165_v24 = vld [vmem:[%s5521_s1 + $0x26] sm:$0x3] }
  0x63   : > { %635 = vst [vmem:[#allocation1 + $0x11] ss:$2 sm:$0xff] %v4104_v23  ;;  %v1000_v23 = vsel %vm274_vm0, %v4153_v22, 0  ;;  %v1090_v26 = vsel %vm274_vm0, %v4165_v24, 0  ;;  %v4149_v28 = vld [vmem:[%s4698_s29 + $0x84] sm:$0xf] }
  0x64   : > { %4100 = vmatmul.msk.bf16.vlgmr.msra.gmra.mxu0 %vm270_vm1, %v595_v30  ;;  %v4151_v30 = vld [vmem:[%s4698_s29 + $0x94] sm:$0xf]  ;;  %v4188_v22 = vld [vmem:[%s4698_s29 + $0x62] sm:$0xf] }
  0x65   : > { %965 = vmatpush.bf16.msra.mxu0 %v956_v62 }
  0x68   : > { %v636_v33 = vld.sshfl [vmem:[#allocation1] sm:$0xff pattern:$0x75316420] }
  0x69   : > { %674 = vst [vmem:[#allocation1] ss:$2 sm:$0xff] %v4107_v31  ;;  %v4152_v31 = vld [vmem:[%s4698_s29 + $0x9c] sm:$0xf] }
  0x6a   : > { %v637_v36 = vld.sshfl [vmem:[#allocation1 + $0x10] sm:$0xff pattern:$0x75316420]  ;;  %676 = vst [vmem:[#allocation1 + $0x1] ss:$2 sm:$0xff] %v4108_v32 }
  0x6b   : > { %678 = vst [vmem:[#allocation1 + $0x10] ss:$2 sm:$0xff] %v4109_v34  ;;  %v640_v37 = vpack.c.bf16 %v637_v36, %v636_v33  ;;  %v4171_v33 = vld [vmem:[%s5521_s1 + $0x28] sm:$0x3] }
  0x6c   : > { %680 = vst [vmem:[#allocation1 + $0x11] ss:$2 sm:$0xff] %v4110_v35  ;;  %v1134_v34 = vsel %vm274_vm0, %v4171_v33, 0  ;;  %v4183_v35 = vld [vmem:[%s5521_s1 + $0x2c] sm:$0x3] }
  0x6d   : > { %4106 = vmatmul.msk.bf16.vlgmr.msrb.gmra.mxu1 %vm270_vm1, %v640_v37  ;;  %v1222_v37 = vsel %vm274_vm0, %v4183_v35, 0 }
  0x6e   : > { %1009 = vmatpush.bf16.msrb.mxu1 %v1000_v23 }
  0x71   : > { %v681_v40 = vld.sshfl [vmem:[#allocation1] sm:$0xff pattern:$0x75316420] }
  0x72   : > { %718 = vst [vmem:[#allocation1] ss:$2 sm:$0xff] %v4113_v38 }
  0x73   : > { %v682_v43 = vld.sshfl [vmem:[#allocation1 + $0x10] sm:$0xff pattern:$0x75316420]  ;;  %720 = vst [vmem:[#allocation1 + $0x1] ss:$2 sm:$0xff] %v4114_v39 }
  0x74   : > { %v685_v44 = vpack.c.bf16 %v682_v43, %v681_v40  ;;  %722 = vst [vmem:[#allocation1 + $0x10] ss:$2 sm:$0xff] %v4115_v41  ;;  %v4155_v39 = vld [vmem:[%s4698_s29 + $0x8] sm:$0xf]  ;;  %v4156_v40 = vld [vmem:[%s4698_s29 + $0x10] sm:$0xf] }
  0x75   : > { %724 = vst [vmem:[#allocation1 + $0x11] ss:$2 sm:$0xff] %v4116_v42  ;;  %v4157_v42 = vld [vmem:[%s4698_s29 + $0x18] sm:$0xf]  ;;  %v4158_v43 = vld [vmem:[%s4698_s29 + $0x20] sm:$0xf] }
  0x76   : > { %4112 = vmatmul.msk.bf16.vlgmr.msra.gmra.mxu2 %vm270_vm1, %v685_v44 }
  0x77   : > { %1054 = vmatpush.bf16.msra.mxu2 %v1045_v1  ;;  %v4174_v1 = vld [vmem:[%s4698_s29 + $0x51] sm:$0xf] }
  0x7a   : > { %v725_v49 = vld.sshfl [vmem:[#allocation1] sm:$0xff pattern:$0x75316420] }
  0x7b   : > { %762 = vst [vmem:[#allocation1] ss:$2 sm:$0xff] %v4119_v45 }
  0x7c   : > { %v726_v53 = vld.sshfl [vmem:[#allocation1 + $0x10] sm:$0xff pattern:$0x75316420]  ;;  %764 = vst [vmem:[#allocation1 + $0x1] ss:$2 sm:$0xff] %v4120_v46 }
  0x7d   : > { %v729_v55 = vpack.c.bf16 %v726_v53, %v725_v49  ;;  %766 = vst [vmem:[#allocation1 + $0x10] ss:$2 sm:$0xff] %v4121_v47  ;;  %v4161_v46 = vld [vmem:[%s4698_s29 + $0x48] sm:$0xf]  ;;  %v4162_v47 = vld [vmem:[%s4698_s29 + $0x50] sm:$0xf] }
  0x7e   : > { %768 = vst [vmem:[#allocation1 + $0x11] ss:$2 sm:$0xff] %v4122_v48  ;;  %v4163_v49 = vld [vmem:[%s4698_s29 + $0x58] sm:$0xf]  ;;  %v4167_v53 = vld [vmem:[%s4698_s29 + $0x9] sm:$0xf] }
  0x7f   : > { %4118 = vmatmul.msk.bf16.vlgmr.msrb.gmra.mxu3 %vm270_vm1, %v729_v55  ;;  %v4169_v55 = vld [vmem:[%s4698_s29 + $0x19] sm:$0xf] }
  0x80   : > { %1099 = vmatpush.bf16.msrb.mxu3 %v1090_v26  ;;  %v4192_v26 = vld [vmem:[%s4698_s29 + $0x13] sm:$0xf] }
  0x83   : > { %v769_v60 = vld.sshfl [vmem:[#allocation1] sm:$0xff pattern:$0x75316420] }
  0x84   : > { %806 = vst [vmem:[#allocation1] ss:$2 sm:$0xff] %v4125_v56  ;;  %v4170_v56 = vld [vmem:[%s4698_s29 + $0x21] sm:$0xf] }
  0x85   : > { %v770_v0 = vld.sshfl [vmem:[#allocation1 + $0x10] sm:$0xff pattern:$0x75316420]  ;;  %808 = vst [vmem:[#allocation1 + $0x1] ss:$2 sm:$0xff] %v4126_v57 }
  0x86   : > { %v773_v2 = vpack.c.bf16 %v770_v0, %v769_v60  ;;  %810 = vst [vmem:[#allocation1 + $0x10] ss:$2 sm:$0xff] %v4127_v58  ;;  %v4177_v58 = vld [vmem:[%s5521_s1 + $0x2a] sm:$0x3]  ;;  %v4189_v60 = vld [vmem:[%s5521_s1 + $0x2e] sm:$0x3] }
  0x87   : > { %812 = vst [vmem:[#allocation1 + $0x11] ss:$2 sm:$0xff] %v4128_v59  ;;  %v1178_v59 = vsel %vm274_vm0, %v4177_v58, 0  ;;  %v1266_v62 = vsel %vm274_vm0, %v4189_v60, 0  ;;  %v4173_v0 = vld [vmem:[%s4698_s29 + $0x49] sm:$0xf] }
  0x88   : > { %4124 = vmatmul.msk.bf16.vlgmr.msrb.gmra.mxu0 %vm270_vm1, %v773_v2  ;;  %v4175_v2 = vld [vmem:[%s4698_s29 + $0x59] sm:$0xf]  ;;  %v4212_v58 = vld [vmem:[%s4698_s29 + $0xa0] sm:$0xf] }
  0x89   : > { %1143 = vmatpush.bf16.msrb.mxu0 %v1134_v34 }
  0x8c   : > { %v813_v5 = vld.sshfl [vmem:[#allocation1] sm:$0xff pattern:$0x75316420] }
  0x8d   : > { %850 = vst [vmem:[#allocation1] ss:$2 sm:$0xff] %v4131_v3  ;;  %v4176_v3 = vld [vmem:[%s4698_s29 + $0x61] sm:$0xf] }
  0x8e   : > { %v814_v8 = vld.sshfl [vmem:[#allocation1 + $0x10] sm:$0xff pattern:$0x75316420]  ;;  %852 = vst [vmem:[#allocation1 + $0x1] ss:$2 sm:$0xff] %v4132_v4 }
  0x8f   : > { %854 = vst [vmem:[#allocation1 + $0x10] ss:$2 sm:$0xff] %v4133_v6  ;;  %v817_v9 = vpack.c.bf16 %v814_v8, %v813_v5  ;;  %v4195_v5 = vld [vmem:[%s5521_s1 + $0x30] sm:$0x3] }
  0x90   : > { %856 = vst [vmem:[#allocation1 + $0x11] ss:$2 sm:$0xff] %v4134_v7  ;;  %v1310_v6 = vsel %vm274_vm0, %v4195_v5, 0  ;;  %v4207_v7 = vld [vmem:[%s5521_s1 + $0x34] sm:$0x3] }
  0x91   : > { %4130 = vmatmul.msk.bf16.vlgmr.msra.gmra.mxu1 %vm270_vm1, %v817_v9  ;;  %v1398_v9 = vsel %vm274_vm0, %v4207_v7, 0 }
  0x92   : > { %1187 = vmatpush.bf16.msra.mxu1 %v1178_v59 }
  0x95   : > { %v857_v12 = vld.sshfl [vmem:[#allocation1] sm:$0xff pattern:$0x75316420] }
  0x96   : > { %894 = vst [vmem:[#allocation1] ss:$2 sm:$0xff] %v4137_v10 }
  0x97   : > { %v858_v15 = vld.sshfl [vmem:[#allocation1 + $0x10] sm:$0xff pattern:$0x75316420]  ;;  %896 = vst [vmem:[#allocation1 + $0x1] ss:$2 sm:$0xff] %v4138_v11 }
  0x98   : > { %v861_v16 = vpack.c.bf16 %v858_v15, %v857_v12  ;;  %898 = vst [vmem:[#allocation1 + $0x10] ss:$2 sm:$0xff] %v4139_v13  ;;  %v4179_v11 = vld [vmem:[%s4698_s29 + $0xa] sm:$0xf]  ;;  %v4180_v12 = vld [vmem:[%s4698_s29 + $0x12] sm:$0xf] }
  0x99   : > { %900 = vst [vmem:[#allocation1 + $0x11] ss:$2 sm:$0xff] %v4140_v14  ;;  %v4181_v14 = vld [vmem:[%s4698_s29 + $0x1a] sm:$0xf]  ;;  %v4182_v15 = vld [vmem:[%s4698_s29 + $0x22] sm:$0xf] }
  0x9a   : > { %4136 = vmatmul.msk.bf16.vlgmr.msrb.gmra.mxu2 %vm270_vm1, %v861_v16 }
  0x9b   : > { %1231 = vmatpush.bf16.msrb.mxu2 %v1222_v37  ;;  %v4198_v37 = vld [vmem:[%s4698_s29 + $0x53] sm:$0xf] }
  0x9e   : > { %v901_v21 = vld.sshfl [vmem:[#allocation1] sm:$0xff pattern:$0x75316420] }
  0x9f   : > { %938 = vst [vmem:[#allocation1] ss:$2 sm:$0xff] %v4143_v17 }
  0xa0   : > { %v902_v25 = vld.sshfl [vmem:[#allocation1 + $0x10] sm:$0xff pattern:$0x75316420]  ;;  %940 = vst [vmem:[#allocation1 + $0x1] ss:$2 sm:$0xff] %v4144_v18 }
  0xa1   : > { %v905_v27 = vpack.c.bf16 %v902_v25, %v901_v21  ;;  %942 = vst [vmem:[#allocation1 + $0x10] ss:$2 sm:$0xff] %v4145_v19  ;;  %v4185_v18 = vld [vmem:[%s4698_s29 + $0x4a] sm:$0xf]  ;;  %v4186_v19 = vld [vmem:[%s4698_s29 + $0x52] sm:$0xf] }
  0xa2   : > { %944 = vst [vmem:[#allocation1 + $0x11] ss:$2 sm:$0xff] %v4146_v20  ;;  %v4187_v21 = vld [vmem:[%s4698_s29 + $0x5a] sm:$0xf]  ;;  %v4191_v25 = vld [vmem:[%s4698_s29 + $0xb] sm:$0xf] }
  0xa3   : > { %4142 = vmatmul.msk.bf16.vlgmr.msra.gmra.mxu3 %vm270_vm1, %v905_v27  ;;  %v4193_v27 = vld [vmem:[%s4698_s29 + $0x1b] sm:$0xf] }
  0xa4   : > { %1275 = vmatpush.bf16.msra.mxu3 %v1266_v62  ;;  %v4216_v62 = vld [vmem:[%s4698_s29 + $0xd0] sm:$0xf] }
  0xa7   : > { %v945_v32 = vld.sshfl [vmem:[#allocation1] sm:$0xff pattern:$0x75316420] }
  0xa8   : > { %982 = vst [vmem:[#allocation1] ss:$2 sm:$0xff] %v4149_v28  ;;  %v4194_v28 = vld [vmem:[%s4698_s29 + $0x23] sm:$0xf] }
  0xa9   : > { %v946_v36 = vld.sshfl [vmem:[#allocation1 + $0x10] sm:$0xff pattern:$0x75316420]  ;;  %984 = vst [vmem:[#allocation1 + $0x1] ss:$2 sm:$0xff] %v4150_v29 }
  0xaa   : > { %v949_v38 = vpack.c.bf16 %v946_v36, %v945_v32  ;;  %986 = vst [vmem:[#allocation1 + $0x10] ss:$2 sm:$0xff] %v4151_v30  ;;  %v4201_v30 = vld [vmem:[%s5521_s1 + $0x32] sm:$0x3]  ;;  %v4213_v32 = vld [vmem:[%s5521_s1 + $0x36] sm:$0x3] }
  0xab   : > { %988 = vst [vmem:[#allocation1 + $0x11] ss:$2 sm:$0xff] %v4152_v31  ;;  %v1354_v31 = vsel %vm274_vm0, %v4201_v30, 0  ;;  %v1443_v34 = vsel %vm274_vm0, %v4213_v32, 0  ;;  %v4197_v36 = vld [vmem:[%s4698_s29 + $0x4b] sm:$0xf] }
  0xac   : > { %4148 = vmatmul.msk.bf16.vlgmr.msra.gmra.mxu0 %vm270_vm1, %v949_v38  ;;  %v4199_v38 = vld [vmem:[%s4698_s29 + $0x5b] sm:$0xf]  ;;  %v4234_v30 = vld [vmem:[%s4698_s29 + $0x92] sm:$0xf] }
  0xad   : > { %1319 = vmatpush.bf16.msra.mxu0 %v1310_v6  ;;  %v4235_v32 = vld [vmem:[%s4698_s29 + $0x9a] sm:$0xf] }
  0xb0   : > { %v989_v41 = vld.sshfl [vmem:[#allocation1] sm:$0xff pattern:$0x75316420] }
  0xb1   : > { %1027 = vst [vmem:[#allocation1] ss:$2 sm:$0xff] %v4155_v39  ;;  %v4200_v39 = vld [vmem:[%s4698_s29 + $0x63] sm:$0xf] }
  0xb2   : > { %v990_v44 = vld.sshfl [vmem:[#allocation1 + $0x10] sm:$0xff pattern:$0x75316420]  ;;  %1029 = vst [vmem:[#allocation1 + $0x1] ss:$2 sm:$0xff] %v4156_v40 }
  0xb3   : > { %1031 = vst [vmem:[#allocation1 + $0x10] ss:$2 sm:$0xff] %v4157_v42  ;;  %v993_v45 = vpack.c.bf16 %v990_v44, %v989_v41  ;;  %v4219_v41 = vld [vmem:[%s5521_s1 + $0x38] sm:$0x3] }
  0xb4   : > { %1033 = vst [vmem:[#allocation1 + $0x11] ss:$2 sm:$0xff] %v4158_v43  ;;  %v1488_v42 = vsel %vm274_vm0, %v4219_v41, 0  ;;  %v4231_v43 = vld [vmem:[%s5521_s1 + $0x3c] sm:$0x3] }
  0xb5   : > { %4154 = vmatmul.msk.bf16.vlgmr.msrb.gmra.mxu1 %vm270_vm1, %v993_v45  ;;  %v1576_v45 = vsel %vm274_vm0, %v4231_v43, 0 }
  0xb6   : > { %1363 = vmatpush.bf16.msrb.mxu1 %v1354_v31 }
  0xb9   : > { %v1034_v48 = vld.sshfl [vmem:[#allocation1] sm:$0xff pattern:$0x75316420] }
  0xba   : > { %1072 = vst [vmem:[#allocation1] ss:$2 sm:$0xff] %v4161_v46 }
  0xbb   : > { %v1035_v51 = vld.sshfl [vmem:[#allocation1 + $0x10] sm:$0xff pattern:$0x75316420]  ;;  %1074 = vst [vmem:[#allocation1 + $0x1] ss:$2 sm:$0xff] %v4162_v47 }
  0xbc   : > { %v1038_v52 = vpack.c.bf16 %v1035_v51, %v1034_v48  ;;  %1076 = vst [vmem:[#allocation1 + $0x10] ss:$2 sm:$0xff] %v4163_v49  ;;  %v4203_v47 = vld [vmem:[%s4698_s29 + $0xc] sm:$0xf]  ;;  %v4204_v48 = vld [vmem:[%s4698_s29 + $0x14] sm:$0xf] }
  0xbd   : > { %1078 = vst [vmem:[#allocation1 + $0x11] ss:$2 sm:$0xff] %v4164_v50  ;;  %v4205_v50 = vld [vmem:[%s4698_s29 + $0x1c] sm:$0xf]  ;;  %v4206_v51 = vld [vmem:[%s4698_s29 + $0x24] sm:$0xf] }
  0xbe   : > { %4160 = vmatmul.msk.bf16.vlgmr.msra.gmra.mxu2 %vm270_vm1, %v1038_v52 }
  0xbf   : > { %1407 = vmatpush.bf16.msra.mxu2 %v1398_v9  ;;  %v4222_v9 = vld [vmem:[%s4698_s29 + $0x91] sm:$0xf] }
  0xc2   : > { %v1079_v57 = vld.sshfl [vmem:[#allocation1] sm:$0xff pattern:$0x75316420] }
  0xc3   : > { %1116 = vst [vmem:[#allocation1] ss:$2 sm:$0xff] %v4167_v53 }
  0xc4   : > { %v1080_v61 = vld.sshfl [vmem:[#allocation1 + $0x10] sm:$0xff pattern:$0x75316420]  ;;  %1118 = vst [vmem:[#allocation1 + $0x1] ss:$2 sm:$0xff] %v4168_v54 }
  0xc5   : > { %v1083_v63 = vpack.c.bf16 %v1080_v61, %v1079_v57  ;;  %1120 = vst [vmem:[#allocation1 + $0x10] ss:$2 sm:$0xff] %v4169_v55  ;;  %v4209_v54 = vld [vmem:[%s4698_s29 + $0x88] sm:$0xf]  ;;  %v4210_v55 = vld [vmem:[%s4698_s29 + $0x90] sm:$0xf] }
  0xc6   : > { %1122 = vst [vmem:[#allocation1 + $0x11] ss:$2 sm:$0xff] %v4170_v56  ;;  %v4211_v57 = vld [vmem:[%s4698_s29 + $0x98] sm:$0xf]  ;;  %v4215_v61 = vld [vmem:[%s4698_s29 + $0xc8] sm:$0xf] }
  0xc7   : > { %4166 = vmatmul.msk.bf16.vlgmr.msrb.gmra.mxu3 %vm270_vm1, %v1083_v63  ;;  %v4217_v63 = vld [vmem:[%s4698_s29 + $0xd8] sm:$0xf] }
  0xc8   : > { %1452 = vmatpush.bf16.msrb.mxu3 %v1443_v34 }
  0xcb   : > { %v1123_v4 = vld.sshfl [vmem:[#allocation1] sm:$0xff pattern:$0x75316420] }
  0xcc   : > { %1160 = vst [vmem:[#allocation1] ss:$2 sm:$0xff] %v4173_v0  ;;  %v4218_v0 = vld [vmem:[%s4698_s29 + $0xe0] sm:$0xf] }
  0xcd   : > { %v1124_v8 = vld.sshfl [vmem:[#allocation1 + $0x10] sm:$0xff pattern:$0x75316420]  ;;  %1162 = vst [vmem:[#allocation1 + $0x1] ss:$2 sm:$0xff] %v4174_v1 }
  0xce   : > { %v1127_v10 = vpack.c.bf16 %v1124_v8, %v1123_v4  ;;  %1164 = vst [vmem:[#allocation1 + $0x10] ss:$2 sm:$0xff] %v4175_v2  ;;  %v4225_v2 = vld [vmem:[%s5521_s1 + $0x3a] sm:$0x3]  ;;  %v4237_v4 = vld [vmem:[%s5521_s1 + $0x3e] sm:$0x3] }
  0xcf   : > { %1166 = vst [vmem:[#allocation1 + $0x11] ss:$2 sm:$0xff] %v4176_v3  ;;  %v1532_v3 = vsel %vm274_vm0, %v4225_v2, 0  ;;  %v1620_v6 = vsel %vm274_vm0, %v4237_v4, 0  ;;  %v4221_v8 = vld [vmem:[%s4698_s29 + $0x89] sm:$0xf] }
  0xd0   : > { %4172 = vmatmul.msk.bf16.vlgmr.msrb.gmra.mxu0 %vm270_vm1, %v1127_v10  ;;  %v4223_v10 = vld [vmem:[%s4698_s29 + $0x99] sm:$0xf]  ;;  %v4251_v2 = vld [vmem:[%s4698_s29 + $0xcb] sm:$0xf] }
  0xd1   : > { %1497 = vmatpush.bf16.msrb.mxu0 %v1488_v42  ;;  %v4249_v42 = vld [vmem:[%s5521_s1 + $0x42] sm:$0x3] }
  0xd2   : > { %v1708_v43 = vsel %vm274_vm0, %v4249_v42, 0 }
  0xd4   : > { %v1167_v13 = vld.sshfl [vmem:[#allocation1] sm:$0xff pattern:$0x75316420] }
  0xd5   : > { %1204 = vst [vmem:[#allocation1] ss:$2 sm:$0xff] %v4179_v11  ;;  %v4224_v11 = vld [vmem:[%s4698_s29 + $0xa1] sm:$0xf] }
  0xd6   : > { %v1168_v16 = vld.sshfl [vmem:[#allocation1 + $0x10] sm:$0xff pattern:$0x75316420]  ;;  %1206 = vst [vmem:[#allocation1 + $0x1] ss:$2 sm:$0xff] %v4180_v12 }
  0xd7   : > { %1208 = vst [vmem:[#allocation1 + $0x10] ss:$2 sm:$0xff] %v4181_v14  ;;  %v1171_v17 = vpack.c.bf16 %v1168_v16, %v1167_v13  ;;  %v307_v13 = vpop.f32.mrf.mxu3  ;;  %v287_v14 = vpop.f32.mrf.mxu0 }
  0xd8   : > { %1210 = vst [vmem:[#allocation1 + $0x11] ss:$2 sm:$0xff] %v4182_v15  ;;  %v4243_v15 = vld [vmem:[%s5521_s1 + $0x40] sm:$0x3]  ;;  %v308_v16 = vadd.f32 %v307_v13, %v287_v14  ;;  %v4260_v13 = vld [vmem:[%s4698_s29 + $0xa4] sm:$0xf] }
  0xd9   : > { %4178 = vmatmul.msk.bf16.vlgmr.msra.gmra.mxu1 %vm270_vm1, %v1171_v17  ;;  %v1664_v17 = vsel %vm274_vm0, %v4243_v15, 0 }
  0xda   : > { %1541 = vmatpush.bf16.msra.mxu1 %v1532_v3  ;;  %v4252_v3 = vld [vmem:[%s4698_s29 + $0xd3] sm:$0xf] }
  0xdd   : > { %v1211_v20 = vld.sshfl [vmem:[#allocation1] sm:$0xff pattern:$0x75316420] }
  0xde   : > { %1248 = vst [vmem:[#allocation1] ss:$2 sm:$0xff] %v4185_v18  ;;  %v4255_v18 = vld [vmem:[%s5521_s1 + $0x44] sm:$0x3] }
  0xdf   : > { %v1212_v23 = vld.sshfl [vmem:[#allocation1 + $0x10] sm:$0xff pattern:$0x75316420]  ;;  %1250 = vst [vmem:[#allocation1 + $0x1] ss:$2 sm:$0xff] %v4186_v19  ;;  %v4987_v41 = vpop.f32.mrf.mxu3 }
  0xe0   : > { %v1215_v24 = vpack.c.bf16 %v1212_v23, %v1211_v20  ;;  %1252 = vst [vmem:[#allocation1 + $0x10] ss:$2 sm:$0xff] %v4187_v21  ;;  %v1752_v20 = vsel %vm274_vm0, %v4255_v18, 0  ;;  %v4228_v23 = vld [vmem:[%s4698_s29 + $0xd1] sm:$0xf] }
  0xe1   : > { %1254 = vst [vmem:[#allocation1 + $0x11] ss:$2 sm:$0xff] %v4188_v22  ;;  %v4227_v22 = vld [vmem:[%s4698_s29 + $0xc9] sm:$0xf]  ;;  %v4264_v18 = vld [vmem:[%s4698_s29 + $0x18] sm:$0xf] }
  0xe2   : > { %4184 = vmatmul.msk.bf16.vlgmr.msrb.gmra.mxu2 %vm270_vm1, %v1215_v24 }
  0xe3   : > { %1585 = vmatpush.bf16.msrb.mxu2 %v1576_v45  ;;  %v349_v45 = vpop.f32.mrf.mxu2 }
  0xe6   : > { %v1255_v29 = vld.sshfl [vmem:[#allocation1] sm:$0xff pattern:$0x75316420] }
  0xe7   : > { %1292 = vst [vmem:[#allocation1] ss:$2 sm:$0xff] %v4191_v25  ;;  %v4229_v25 = vld [vmem:[%s4698_s29 + $0xd9] sm:$0xf] }
  0xe8   : > { %v1256_v33 = vld.sshfl [vmem:[#allocation1 + $0x10] sm:$0xff pattern:$0x75316420]  ;;  %1294 = vst [vmem:[#allocation1 + $0x1] ss:$2 sm:$0xff] %v4192_v26 }
  0xe9   : > { %v1259_v35 = vpack.c.bf16 %v1256_v33, %v1255_v29  ;;  %1296 = vst [vmem:[#allocation1 + $0x10] ss:$2 sm:$0xff] %v4193_v27  ;;  %v4230_v26 = vld [vmem:[%s4698_s29 + $0xe1] sm:$0xf]  ;;  %v4233_v29 = vld [vmem:[%s4698_s29 + $0x8a] sm:$0xf] }
  0xea   : > { %1298 = vst [vmem:[#allocation1 + $0x11] ss:$2 sm:$0xff] %v4194_v28  ;;  %v4236_v33 = vld [vmem:[%s4698_s29 + $0xa2] sm:$0xf] }
  0xeb   : > { %4190 = vmatmul.msk.bf16.vlgmr.msra.gmra.mxu3 %vm270_vm1, %v1259_v35  ;;  %v5022_v14 = vpop.f32.mrf.mxu2 }
  0xec   : > { %1629 = vmatpush.bf16.msra.mxu3 %v1620_v6  ;;  %v4254_v6 = vld [vmem:[%s4698_s29 + $0xe3] sm:$0xf] }
  0xef   : > { %v1299_v40 = vld.sshfl [vmem:[#allocation1] sm:$0xff pattern:$0x75316420] }
  0xf0   : > { %1336 = vst [vmem:[#allocation1] ss:$2 sm:$0xff] %v4197_v36  ;;  %v4239_v36 = vld [vmem:[%s4698_s29 + $0xca] sm:$0xf] }
  0xf1   : > { %v1300_v44 = vld.sshfl [vmem:[#allocation1 + $0x10] sm:$0xff pattern:$0x75316420]  ;;  %1338 = vst [vmem:[#allocation1 + $0x1] ss:$2 sm:$0xff] %v4198_v37 }
  0xf2   : > { %v1303_v46 = vpack.c.bf16 %v1300_v44, %v1299_v40  ;;  %1340 = vst [vmem:[#allocation1 + $0x10] ss:$2 sm:$0xff] %v4199_v38  ;;  %v4240_v37 = vld [vmem:[%s4698_s29 + $0xd2] sm:$0xf]  ;;  %v4241_v38 = vld [vmem:[%s4698_s29 + $0xda] sm:$0xf]  ;;  %v4993_v44 = vpop.f32.mrf.mxu0 }
  0xf3   : > { %1342 = vst [vmem:[#allocation1 + $0x11] ss:$2 sm:$0xff] %v4200_v39  ;;  %v4242_v39 = vld [vmem:[%s4698_s29 + $0xe2] sm:$0xf] }
  0xf4   : > { %4196 = vmatmul.msk.bf16.vlgmr.msra.gmra.mxu0 %vm270_vm1, %v1303_v46  ;;  %v4261_v46 = vld [vmem:[%s5521_s1 + $0x46] sm:$0x3] }
  0xf5   : > { %1673 = vmatpush.bf16.msra.mxu0 %v1664_v17  ;;  %v4263_v17 = vld [vmem:[%s4698_s29 + $0x10] sm:$0xf] }
  0xf8   : > { %v1343_v49 = vld.sshfl [vmem:[#allocation1] sm:$0xff pattern:$0x75316420] }
  0xf9   : > { %1380 = vst [vmem:[#allocation1] ss:$2 sm:$0xff] %v4203_v47 }
  0xfa   : > { %v1344_v52 = vld.sshfl [vmem:[#allocation1 + $0x10] sm:$0xff pattern:$0x75316420]  ;;  %1382 = vst [vmem:[#allocation1 + $0x1] ss:$2 sm:$0xff] %v4204_v48  ;;  %v354_v48 = vadd.f32 %v349_v45, %v308_v16 }
  0xfb   : > { %1384 = vst [vmem:[#allocation1 + $0x10] ss:$2 sm:$0xff] %v4205_v50  ;;  %v1347_v53 = vpack.c.bf16 %v1344_v52, %v1343_v49  ;;  %v1796_v49 = vsel %vm274_vm0, %v4261_v46, 0  ;;  %v4246_v52 = vld [vmem:[%s4698_s29 + $0x93] sm:$0xf] }
  0xfc   : > { %1386 = vst [vmem:[#allocation1 + $0x11] ss:$2 sm:$0xff] %v4206_v51  ;;  %v4245_v51 = vld [vmem:[%s4698_s29 + $0x8b] sm:$0xf]  ;;  %v4303_v45 = vld [vmem:[%s5521_s1 + $0x54] sm:$0x3] }
  0xfd   : > { %4202 = vmatmul.msk.bf16.vlgmr.msrb.gmra.mxu1 %vm270_vm1, %v1347_v53  ;;  %v4247_v53 = vld [vmem:[%s4698_s29 + $0x9b] sm:$0xf] }
  0xfe   : > { %1717 = vmatpush.bf16.msrb.mxu1 %v1708_v43 }
 0x101   : > { %v1387_v56 = vld.sshfl [vmem:[#allocation1] sm:$0xff pattern:$0x75316420] }
 0x102   : > { %1425 = vst [vmem:[#allocation1] ss:$2 sm:$0xff] %v4209_v54  ;;  %v4248_v54 = vld [vmem:[%s4698_s29 + $0xa3] sm:$0xf] }
 0x103   : > { %v1388_v59 = vld.sshfl [vmem:[#allocation1 + $0x10] sm:$0xff pattern:$0x75316420]  ;;  %1427 = vst [vmem:[#allocation1 + $0x1] ss:$2 sm:$0xff] %v4210_v55 }
 0x104   : > { %v1391_v60 = vpack.c.bf16 %v1388_v59, %v1387_v56  ;;  %1429 = vst [vmem:[#allocation1 + $0x10] ss:$2 sm:$0xff] %v4211_v57  ;;  %v393_v56 = vpop.f32.mrf.mxu3  ;;  %v4267_v57 = vld [vmem:[%s5521_s1 + $0x48] sm:$0x3] }
 0x105   : > { %1431 = vst [vmem:[#allocation1 + $0x11] ss:$2 sm:$0xff] %v4212_v58  ;;  %v398_v58 = vadd.f32 %v393_v56, %v354_v48  ;;  %v1841_v59 = vsel %vm274_vm0, %v4267_v57, 0  ;;  %v2106_v48 = vsel %vm274_vm0, %v4303_v45, 0 }
 0x106   : > { %4208 = vmatmul.msk.bf16.vlgmr.msra.gmra.mxu2 %vm270_vm1, %v1391_v60  ;;  %v4279_v60 = vld [vmem:[%s5521_s1 + $0x4c] sm:$0x3] }
 0x107   : > { %1761 = vmatpush.bf16.msra.mxu2 %v1752_v20  ;;  %v4266_v20 = vld [vmem:[%s4698_s29 + $0x28] sm:$0xf] }
 0x10a   : > { %v1432_v1 = vld.sshfl [vmem:[#allocation1] sm:$0xff pattern:$0x75316420] }
 0x10b   : > { %1470 = vst [vmem:[#allocation1] ss:$2 sm:$0xff] %v4215_v61 }
 0x10c   : > { %v1433_v5 = vld.sshfl [vmem:[#allocation1 + $0x10] sm:$0xff pattern:$0x75316420]  ;;  %1472 = vst [vmem:[#allocation1 + $0x1] ss:$2 sm:$0xff] %v4216_v62  ;;  %v437_v62 = vpop.f32.mrf.mxu0 }
 0x10d   : > { %v1436_v7 = vpack.c.bf16 %v1433_v5, %v1432_v1  ;;  %1474 = vst [vmem:[#allocation1 + $0x10] ss:$2 sm:$0xff] %v4217_v63  ;;  %v1930_v63 = vsel %vm274_vm0, %v4279_v60, 0  ;;  %v442_v1 = vadd.f32 %v437_v62, %v398_v58  ;;  %v4253_v5 = vld [vmem:[%s4698_s29 + $0xdb] sm:$0xf] }
 0x10e   : > { %1476 = vst [vmem:[#allocation1 + $0x11] ss:$2 sm:$0xff] %v4218_v0  ;;  %v4281_v58 = vld [vmem:[%s4698_s29 + $0x51] sm:$0xf]  ;;  %v4283_v62 = vld [vmem:[%s4698_s29 + $0x61] sm:$0xf] }
 0x10f   : > { %4214 = vmatmul.msk.bf16.vlgmr.msrb.gmra.mxu3 %vm270_vm1, %v1436_v7 }
 0x110   : > { %1805 = vmatpush.bf16.msrb.mxu3 %v1796_v49 }
 0x113   : > { %v1477_v12 = vld.sshfl [vmem:[#allocation1] sm:$0xff pattern:$0x75316420] }
 0x114   : > { %1514 = vst [vmem:[#allocation1] ss:$2 sm:$0xff] %v4221_v8 }
 0x115   : > { %v1478_v19 = vld.sshfl [vmem:[#allocation1 + $0x10] sm:$0xff pattern:$0x75316420]  ;;  %1516 = vst [vmem:[#allocation1 + $0x1] ss:$2 sm:$0xff] %v4222_v9 }
 0x116   : > { %v1481_v21 = vpack.c.bf16 %v1478_v19, %v1477_v12  ;;  %1518 = vst [vmem:[#allocation1 + $0x10] ss:$2 sm:$0xff] %v4223_v10  ;;  %v4257_v9 = vld [vmem:[%s4698_s29 + $0x8c] sm:$0xf]  ;;  %v4258_v10 = vld [vmem:[%s4698_s29 + $0x94] sm:$0xf] }
 0x117   : > { %1520 = vst [vmem:[#allocation1 + $0x11] ss:$2 sm:$0xff] %v4224_v11  ;;  %v4259_v12 = vld [vmem:[%s4698_s29 + $0x9c] sm:$0xf]  ;;  %v4265_v19 = vld [vmem:[%s4698_s29 + $0x20] sm:$0xf] }
 0x118   : > { %4220 = vmatmul.msk.bf16.vlgmr.msrb.gmra.mxu0 %vm270_vm1, %v1481_v21 }
 0x119   : > { %1850 = vmatpush.bf16.msrb.mxu0 %v1841_v59  ;;  %v4282_v59 = vld [vmem:[%s4698_s29 + $0x59] sm:$0xf] }
 0x11c   : > { %v1521_v24 = vld.sshfl [vmem:[#allocation1] sm:$0xff pattern:$0x75316420] }
 0x11d   : > { %1558 = vst [vmem:[#allocation1] ss:$2 sm:$0xff] %v4227_v22  ;;  %v5029_v22 = vpop.f32.mrf.mxu3 }
 0x11e   : > { %v1522_v27 = vld.sshfl [vmem:[#allocation1 + $0x10] sm:$0xff pattern:$0x75316420]  ;;  %1560 = vst [vmem:[#allocation1 + $0x1] ss:$2 sm:$0xff] %v4228_v23  ;;  %v481_v23 = vpop.f32.mrf.mxu1 }
 0x11f   : > { %1562 = vst [vmem:[#allocation1 + $0x10] ss:$2 sm:$0xff] %v4229_v25  ;;  %v1525_v28 = vpack.c.bf16 %v1522_v27, %v1521_v24  ;;  %v4273_v24 = vld [vmem:[%s5521_s1 + $0x4a] sm:$0x3]  ;;  %v486_v25 = vadd.f32 %v481_v23, %v442_v1  ;;  %v5035_v27 = vpop.f32.mrf.mxu0  ;;  %v4294_v23 = vld [vmem:[%s4698_s29 + $0x5a] sm:$0xf] }
 0x120   : > { %1564 = vst [vmem:[#allocation1 + $0x11] ss:$2 sm:$0xff] %v4230_v26  ;;  %v1886_v26 = vsel %vm274_vm0, %v4273_v24, 0  ;;  %v4295_v24 = vld [vmem:[%s4698_s29 + $0x62] sm:$0xf] }
 0x121   : > { %4226 = vmatmul.msk.bf16.vlgmr.msra.gmra.mxu1 %vm270_vm1, %v1525_v28  ;;  %v4285_v28 = vld [vmem:[%s5521_s1 + $0x4e] sm:$0x3] }
 0x122   : > { %1895 = vmatpush.bf16.msra.mxu1 %v1886_v26 }
 0x125   : > { %v1565_v31 = vld.sshfl [vmem:[#allocation1] sm:$0xff pattern:$0x75316420] }
 0x126   : > { %1602 = vst [vmem:[#allocation1] ss:$2 sm:$0xff] %v4233_v29  ;;  %v5062_v60 = vpop.f32.mrf.mxu1 }
 0x127   : > { %v1566_v34 = vld.sshfl [vmem:[#allocation1 + $0x10] sm:$0xff pattern:$0x75316420]  ;;  %1604 = vst [vmem:[#allocation1 + $0x1] ss:$2 sm:$0xff] %v4234_v30  ;;  %v525_v30 = vpop.f32.mrf.mxu2 }
 0x128   : > { %v1569_v35 = vpack.c.bf16 %v1566_v34, %v1565_v31  ;;  %1606 = vst [vmem:[#allocation1 + $0x10] ss:$2 sm:$0xff] %v4235_v32  ;;  %v1974_v31 = vsel %vm274_vm0, %v4285_v28, 0  ;;  %v4269_v34 = vld [vmem:[%s4698_s29 + $0x50] sm:$0xf] }
 0x129   : > { %1608 = vst [vmem:[#allocation1 + $0x11] ss:$2 sm:$0xff] %v4236_v33  ;;  %v530_v33 = vadd.f32 %v525_v30, %v486_v25  ;;  %v4296_v25 = vld [vmem:[%s4698_s29 + $0x6a] sm:$0xf] }
 0x12a   : > { %4232 = vmatmul.msk.bf16.vlgmr.msrb.gmra.mxu2 %vm270_vm1, %v1569_v35  ;;  %v4270_v35 = vld [vmem:[%s4698_s29 + $0x58] sm:$0xf] }
 0x12b   : > { %1939 = vmatpush.bf16.msrb.mxu2 %v1930_v63  ;;  %v4284_v63 = vld [vmem:[%s4698_s29 + $0x69] sm:$0xf] }
 0x12e   : > { %v1609_v40 = vld.sshfl [vmem:[#allocation1] sm:$0xff pattern:$0x75316420] }
 0x12f   : > { %1646 = vst [vmem:[#allocation1] ss:$2 sm:$0xff] %v4239_v36  ;;  %v4271_v36 = vld [vmem:[%s4698_s29 + $0x60] sm:$0xf] }
 0x130   : > { %v1610_v47 = vld.sshfl [vmem:[#allocation1 + $0x10] sm:$0xff pattern:$0x75316420]  ;;  %1648 = vst [vmem:[#allocation1 + $0x1] ss:$2 sm:$0xff] %v4240_v37 }
 0x131   : > { %v1613_v50 = vpack.c.bf16 %v1610_v47, %v1609_v40  ;;  %1650 = vst [vmem:[#allocation1 + $0x10] ss:$2 sm:$0xff] %v4241_v38  ;;  %v4272_v37 = vld [vmem:[%s4698_s29 + $0x68] sm:$0xf]  ;;  %v4291_v40 = vld [vmem:[%s5521_s1 + $0x50] sm:$0x3]  ;;  %v613_v47 = vpop.f32.mrf.mxu0 }
 0x132   : > { %1652 = vst [vmem:[#allocation1 + $0x11] ss:$2 sm:$0xff] %v4242_v39  ;;  %v569_v39 = vpop.f32.mrf.mxu3  ;;  %v2018_v43 = vsel %vm274_vm0, %v4291_v40, 0 }
 0x133   : > { %4238 = vmatmul.msk.bf16.vlgmr.msra.gmra.mxu3 %vm270_vm1, %v1613_v50  ;;  %v574_v42 = vadd.f32 %v569_v39, %v530_v33  ;;  %v4300_v39 = vld [vmem:[%s4698_s29 + $0x1b] sm:$0xf] }
 0x134   : > { %1983 = vmatpush.bf16.msra.mxu3 %v1974_v31 }
 0x135   : > { %v618_v50 = vadd.f32 %v613_v47, %v574_v42  ;;  %v4301_v42 = vld [vmem:[%s4698_s29 + $0x23] sm:$0xf]  ;;  %v4305_v47 = vld [vmem:[%s4698_s29 + $0x53] sm:$0xf] }
 0x137   : > { %v1653_v55 = vld.sshfl [vmem:[#allocation1] sm:$0xff pattern:$0x75316420] }
 0x138   : > { %1690 = vst [vmem:[#allocation1] ss:$2 sm:$0xff] %v4245_v51  ;;  %v4275_v51 = vld [vmem:[%s4698_s29 + $0x11] sm:$0xf] }
 0x139   : > { %v1654_v61 = vld.sshfl [vmem:[#allocation1 + $0x10] sm:$0xff pattern:$0x75316420]  ;;  %1692 = vst [vmem:[#allocation1 + $0x1] ss:$2 sm:$0xff] %v4246_v52 }
 0x13a   : > { %v1657_v0 = vpack.c.bf16 %v1654_v61, %v1653_v55  ;;  %1694 = vst [vmem:[#allocation1 + $0x10] ss:$2 sm:$0xff] %v4247_v53  ;;  %v4276_v52 = vld [vmem:[%s4698_s29 + $0x19] sm:$0xf]  ;;  %v4278_v55 = vld [vmem:[%s4698_s29 + $0x29] sm:$0xf] }
 0x13b   : > { %1696 = vst [vmem:[#allocation1 + $0x11] ss:$2 sm:$0xff] %v4248_v54  ;;  %v4277_v54 = vld [vmem:[%s4698_s29 + $0x21] sm:$0xf] }
 0x13c   : > { %4244 = vmatmul.msk.bf16.vlgmr.msra.gmra.mxu0 %vm270_vm1, %v1657_v0  ;;  %v5066_v0 = vpop.f32.mrf.mxu2 }
 0x13d   : > { %2027 = vmatpush.bf16.msra.mxu0 %v2018_v43  ;;  %v4302_v43 = vld [vmem:[%s4698_s29 + $0x2b] sm:$0xf] }
 0x140   : > { %v1697_v4 = vld.sshfl [vmem:[#allocation1] sm:$0xff pattern:$0x75316420] }
 0x141   : > { %1734 = vst [vmem:[#allocation1] ss:$2 sm:$0xff] %v4251_v2 }
 0x142   : > { %v1698_v7 = vld.sshfl [vmem:[#allocation1 + $0x10] sm:$0xff pattern:$0x75316420]  ;;  %1736 = vst [vmem:[#allocation1 + $0x1] ss:$2 sm:$0xff] %v4252_v3 }
 0x143   : > { %1738 = vst [vmem:[#allocation1 + $0x10] ss:$2 sm:$0xff] %v4253_v5  ;;  %v1701_v8 = vpack.c.bf16 %v1698_v7, %v1697_v4  ;;  %v4287_v3 = vld [vmem:[%s4698_s29 + $0x12] sm:$0xf]  ;;  %v4288_v4 = vld [vmem:[%s4698_s29 + $0x1a] sm:$0xf] }
 0x144   : > { %1740 = vst [vmem:[#allocation1 + $0x11] ss:$2 sm:$0xff] %v4254_v6  ;;  %v4289_v5 = vld [vmem:[%s4698_s29 + $0x22] sm:$0xf]  ;;  %v4290_v6 = vld [vmem:[%s4698_s29 + $0x2a] sm:$0xf] }
 0x145   : > { %4250 = vmatmul.msk.bf16.vlgmr.msrb.gmra.mxu1 %vm270_vm1, %v1701_v8  ;;  %v5073_v8 = vpop.f32.mrf.mxu3 }
 0x149   : > { %v1741_v11 = vld.sshfl [vmem:[#allocation1] sm:$0xff pattern:$0x75316420] }
 0x14a   : > { %1778 = vst [vmem:[#allocation1] ss:$2 sm:$0xff] %v4257_v9  ;;  %v658_v9 = vpop.f32.mrf.mxu1 }
 0x14b   : > { %v1742_v15 = vld.sshfl [vmem:[#allocation1 + $0x10] sm:$0xff pattern:$0x75316420]  ;;  %1780 = vst [vmem:[#allocation1 + $0x1] ss:$2 sm:$0xff] %v4258_v10 }
 0x14c   : > { %v1745_v16 = vpack.c.bf16 %v1742_v15, %v1741_v11  ;;  %1782 = vst [vmem:[#allocation1 + $0x10] ss:$2 sm:$0xff] %v4259_v12  ;;  %v4297_v10 = vld [vmem:[%s5521_s1 + $0x52] sm:$0x3]  ;;  %v663_v11 = vadd.f32 %v658_v9, %v618_v50  ;;  %v4309_v15 = vld [vmem:[%s5521_s1 + $0x56] sm:$0x3]  ;;  %v310_v50 = vadd.f32 %v4987_v41, %v4993_v44 }
 0x14d   : > { %1784 = vst [vmem:[#allocation1 + $0x11] ss:$2 sm:$0xff] %v4260_v13  ;;  %v2062_v12 = vsel %vm274_vm0, %v4297_v10, 0  ;;  %v5079_v13 = vpop.f32.mrf.mxu0  ;;  %v747_v28 = vpop.f32.mrf.mxu3  ;;  %v4312_v44 = vld [vmem:[%s4698_s29 + $0x1c] sm:$0xf] }
 0x14e   : > { %4256 = vmatmul.msk.bf16.vlgmr.msra.gmra.mxu2 %vm270_vm1, %v1745_v16  ;;  %2071 = vmatpush.bf16.msrb.mxu1 %v2062_v12 }
 0x14f   : > { %2115 = vmatpush.bf16.msra.mxu2 %v2106_v48  ;;  %v4306_v48 = vld [vmem:[%s4698_s29 + $0x5b] sm:$0xf] }
 0x152   : > { %v1785_v21 = vld.sshfl [vmem:[#allocation1] sm:$0xff pattern:$0x75316420] }
 0x153   : > { %1823 = vst [vmem:[#allocation1] ss:$2 sm:$0xff] %v4263_v17  ;;  %v703_v17 = vpop.f32.mrf.mxu2 }
 0x154   : > { %v1786_v29 = vld.sshfl [vmem:[#allocation1 + $0x10] sm:$0xff pattern:$0x75316420]  ;;  %1825 = vst [vmem:[#allocation1 + $0x1] ss:$2 sm:$0xff] %v4264_v18  ;;  %v2150_v18 = vsel %vm274_vm0, %v4309_v15, 0 }
 0x155   : > { %v1789_v32 = vpack.c.bf16 %v1786_v29, %v1785_v21  ;;  %1827 = vst [vmem:[#allocation1 + $0x10] ss:$2 sm:$0xff] %v4265_v19  ;;  %v4293_v21 = vld [vmem:[%s4698_s29 + $0x52] sm:$0xf]  ;;  %v4315_v29 = vld [vmem:[%s5521_s1 + $0x58] sm:$0x3] }
 0x156   : > { %1829 = vst [vmem:[#allocation1 + $0x11] ss:$2 sm:$0xff] %v4266_v20  ;;  %v708_v20 = vadd.f32 %v703_v17, %v663_v11  ;;  %v2194_v31 = vsel %vm274_vm0, %v4315_v29, 0  ;;  %v4317_v15 = vld [vmem:[%s4698_s29 + $0x90] sm:$0xf] }
 0x157   : > { %4262 = vmatmul.msk.bf16.vlgmr.msrb.gmra.mxu3 %vm270_vm1, %v1789_v32  ;;  %v4327_v32 = vld [vmem:[%s5521_s1 + $0x5c] sm:$0x3]  ;;  %v4319_v17 = vld [vmem:[%s4698_s29 + $0xa0] sm:$0xf] }
 0x158   : > { %2159 = vmatpush.bf16.msrb.mxu3 %v2150_v18  ;;  %v752_v30 = vadd.f32 %v747_v28, %v708_v20  ;;  %v4320_v18 = vld [vmem:[%s4698_s29 + $0xa8] sm:$0xf] }
 0x15b   : > { %v1830_v38 = vld.sshfl [vmem:[#allocation1] sm:$0xff pattern:$0x75316420] }
 0x15c   : > { %1868 = vst [vmem:[#allocation1] ss:$2 sm:$0xff] %v4269_v34  ;;  %v791_v34 = vpop.f32.mrf.mxu0 }
 0x15d   : > { %v1831_v46 = vld.sshfl [vmem:[#allocation1 + $0x10] sm:$0xff pattern:$0x75316420]  ;;  %1870 = vst [vmem:[#allocation1 + $0x1] ss:$2 sm:$0xff] %v4270_v35  ;;  %v2284_v35 = vsel %vm274_vm0, %v4327_v32, 0 }
 0x15e   : > { %v1834_v49 = vpack.c.bf16 %v1831_v46, %v1830_v38  ;;  %1872 = vst [vmem:[#allocation1 + $0x10] ss:$2 sm:$0xff] %v4271_v36  ;;  %v4299_v38 = vld [vmem:[%s4698_s29 + $0x13] sm:$0xf]  ;;  %v4324_v32 = vld [vmem:[%s4698_s29 + $0xd8] sm:$0xf] }
 0x15f   : > { %1874 = vst [vmem:[#allocation1 + $0x11] ss:$2 sm:$0xff] %v4272_v37  ;;  %v796_v37 = vadd.f32 %v791_v34, %v752_v30  ;;  %v4325_v34 = vld [vmem:[%s4698_s29 + $0xe0] sm:$0xf] }
 0x160   : > { %4268 = vmatmul.msk.bf16.vlgmr.msrb.gmra.mxu0 %vm270_vm1, %v1834_v49  ;;  %v5106_v49 = vpop.f32.mrf.mxu1 }
 0x161   : > { %2203 = vmatpush.bf16.msrb.mxu0 %v2194_v31 }
 0x164   : > { %v1875_v53 = vld.sshfl [vmem:[#allocation1] sm:$0xff pattern:$0x75316420] }
 0x165   : > { %1912 = vst [vmem:[#allocation1] ss:$2 sm:$0xff] %v4275_v51 }
 0x166   : > { %v1876_v56 = vld.sshfl [vmem:[#allocation1 + $0x10] sm:$0xff pattern:$0x75316420]  ;;  %1914 = vst [vmem:[#allocation1 + $0x1] ss:$2 sm:$0xff] %v4276_v52 }
 0x167   : > { %1916 = vst [vmem:[#allocation1 + $0x10] ss:$2 sm:$0xff] %v4277_v54  ;;  %v1879_v57 = vpack.c.bf16 %v1876_v56, %v1875_v53  ;;  %v4307_v52 = vld [vmem:[%s4698_s29 + $0x63] sm:$0xf]  ;;  %v4308_v53 = vld [vmem:[%s4698_s29 + $0x6b] sm:$0xf]  ;;  %v5112_v54 = vpop.f32.mrf.mxu2 }
 0x168   : > { %1918 = vst [vmem:[#allocation1 + $0x11] ss:$2 sm:$0xff] %v4278_v55 }
 0x169   : > { %4274 = vmatmul.msk.bf16.vlgmr.msra.gmra.mxu1 %vm270_vm1, %v1879_v57  ;;  %v355_v57 = vadd.f32 %v5022_v14, %v310_v50 }
 0x16b   : > { %v399_v41 = vadd.f32 %v5029_v22, %v355_v57  ;;  %v4333_v22 = vld [vmem:[%s5521_s1 + $0x5e] sm:$0x3] }
 0x16d   : > { %v1919_v61 = vld.sshfl [vmem:[#allocation1] sm:$0xff pattern:$0x75316420]  ;;  %v443_v9 = vadd.f32 %v5035_v27, %v399_v41 }
 0x16e   : > { %1956 = vst [vmem:[#allocation1] ss:$2 sm:$0xff] %v4281_v58  ;;  %v4311_v58 = vld [vmem:[%s4698_s29 + $0x14] sm:$0xf]  ;;  %v4345_v41 = vld [vmem:[%s5521_s1 + $0x62] sm:$0x3] }
 0x16f   : > { %v1920_v1 = vld.sshfl [vmem:[#allocation1 + $0x10] sm:$0xff pattern:$0x75316420]  ;;  %1958 = vst [vmem:[#allocation1 + $0x1] ss:$2 sm:$0xff] %v4282_v59  ;;  %v487_v12 = vadd.f32 %v5062_v60, %v443_v9 }
 0x170   : > { %v1923_v2 = vpack.c.bf16 %v1920_v1, %v1919_v61  ;;  %1960 = vst [vmem:[#allocation1 + $0x10] ss:$2 sm:$0xff] %v4283_v62  ;;  %v4313_v59 = vld [vmem:[%s4698_s29 + $0x24] sm:$0xf]  ;;  %v4314_v61 = vld [vmem:[%s4698_s29 + $0x2c] sm:$0xf]  ;;  %v835_v1 = vpop.f32.mrf.mxu1 }
 0x171   : > { %1962 = vst [vmem:[#allocation1 + $0x11] ss:$2 sm:$0xff] %v4284_v63  ;;  %v5121_v63 = vpop.f32.mrf.mxu3  ;;  %v4351_v60 = vld [vmem:[%s5521_s1 + $0x64] sm:$0x3] }
 0x172   : > { %4280 = vmatmul.msk.bf16.vlgmr.msrb.gmra.mxu2 %vm270_vm1, %v1923_v2  ;;  %v4321_v2 = vld [vmem:[%s5521_s1 + $0x5a] sm:$0x3]  ;;  %v2460_v28 = vsel %vm274_vm0, %v4351_v60, 0 }
 0x173   : > { %2293 = vmatpush.bf16.msrb.mxu2 %v2284_v35  ;;  %v2239_v14 = vsel %vm274_vm0, %v4321_v2, 0 }
 0x174   : > { %2248 = vmatpush.bf16.msra.mxu1 %v2239_v14 }
 0x176   : > { %v1963_v7 = vld.sshfl [vmem:[#allocation1] sm:$0xff pattern:$0x75316420] }
 0x177   : > { %2000 = vst [vmem:[#allocation1] ss:$2 sm:$0xff] %v4287_v3  ;;  %v840_v3 = vadd.f32 %v835_v1, %v796_v37 }
 0x178   : > { %v1964_v16 = vld.sshfl [vmem:[#allocation1 + $0x10] sm:$0xff pattern:$0x75316420]  ;;  %2002 = vst [vmem:[#allocation1 + $0x1] ss:$2 sm:$0xff] %v4288_v4  ;;  %v5127_v4 = vpop.f32.mrf.mxu0 }
 0x179   : > { %v1967_v19 = vpack.c.bf16 %v1964_v16, %v1963_v7  ;;  %2004 = vst [vmem:[#allocation1 + $0x10] ss:$2 sm:$0xff] %v4289_v5  ;;  %v2328_v7 = vsel %vm274_vm0, %v4333_v22, 0  ;;  %v4318_v16 = vld [vmem:[%s4698_s29 + $0x98] sm:$0xf]  ;;  %v923_v20 = vpop.f32.mrf.mxu3 }
 0x17a   : > { %2006 = vst [vmem:[#allocation1 + $0x11] ss:$2 sm:$0xff] %v4290_v6  ;;  %v879_v6 = vpop.f32.mrf.mxu2 }
 0x17b   : > { %4286 = vmatmul.msk.bf16.vlgmr.msra.gmra.mxu3 %vm270_vm1, %v1967_v19  ;;  %v884_v11 = vadd.f32 %v879_v6, %v840_v3  ;;  %v4342_v6 = vld [vmem:[%s4698_s29 + $0x9a] sm:$0xf] }
 0x17c   : > { %2337 = vmatpush.bf16.msra.mxu3 %v2328_v7  ;;  %v4343_v7 = vld [vmem:[%s4698_s29 + $0xa2] sm:$0xf] }
 0x17d   : > { %v928_v27 = vadd.f32 %v923_v20, %v884_v11 }
 0x17f   : > { %v2007_v26 = vld.sshfl [vmem:[#allocation1] sm:$0xff pattern:$0x75316420] }
 0x180   : > { %2044 = vst [vmem:[#allocation1] ss:$2 sm:$0xff] %v4293_v21  ;;  %v4339_v21 = vld [vmem:[%s5521_s1 + $0x60] sm:$0x3] }
 0x181   : > { %v2008_v33 = vld.sshfl [vmem:[#allocation1 + $0x10] sm:$0xff pattern:$0x75316420]  ;;  %2046 = vst [vmem:[#allocation1 + $0x1] ss:$2 sm:$0xff] %v4294_v23  ;;  %v2372_v23 = vsel %vm274_vm0, %v4339_v21, 0  ;;  %v925_v57 = vpop.f32.mrf.mxu3 }
 0x182   : > { %v2011_v36 = vpack.c.bf16 %v2008_v33, %v2007_v26  ;;  %2048 = vst [vmem:[#allocation1 + $0x10] ss:$2 sm:$0xff] %v4295_v24  ;;  %v531_v24 = vadd.f32 %v5066_v0, %v487_v12  ;;  %v967_v26 = vpop.f32.mrf.mxu0  ;;  %v4323_v0 = vld [vmem:[%s4698_s29 + $0xd0] sm:$0xf]  ;;  %v4363_v12 = vld [vmem:[%s5521_s1 + $0x68] sm:$0x3] }
 0x183   : > { %2050 = vst [vmem:[#allocation1 + $0x11] ss:$2 sm:$0xff] %v4296_v25  ;;  %v972_v30 = vadd.f32 %v967_v26, %v928_v27  ;;  %v4349_v26 = vld [vmem:[%s4698_s29 + $0xe2] sm:$0xf] }
 0x184   : > { %4292 = vmatmul.msk.bf16.vlgmr.msra.gmra.mxu0 %vm270_vm1, %v2011_v36  ;;  %v575_v31 = vadd.f32 %v5073_v8, %v531_v24  ;;  %v4326_v36 = vld [vmem:[%s4698_s29 + $0xe8] sm:$0xf]  ;;  %v4329_v8 = vld [vmem:[%s4698_s29 + $0x91] sm:$0xf] }
 0x185   : > { %2381 = vmatpush.bf16.msra.mxu0 %v2372_v23  ;;  %v4347_v24 = vld [vmem:[%s4698_s29 + $0xd2] sm:$0xf] }
 0x186   : > { %v619_v35 = vadd.f32 %v5079_v13, %v575_v31  ;;  %v4369_v31 = vld [vmem:[%s5521_s1 + $0x6a] sm:$0x3] }
 0x188   : > { %v2051_v40 = vld.sshfl [vmem:[#allocation1] sm:$0xff pattern:$0x75316420] }
 0x189   : > { %2088 = vst [vmem:[#allocation1] ss:$2 sm:$0xff] %v4299_v38  ;;  %v1101_v11 = vpop.f32.mrf.mxu3 }
 0x18a   : > { %v2052_v45 = vld.sshfl [vmem:[#allocation1 + $0x10] sm:$0xff pattern:$0x75316420]  ;;  %2090 = vst [vmem:[#allocation1 + $0x1] ss:$2 sm:$0xff] %v4300_v39  ;;  %v664_v39 = vadd.f32 %v5106_v49, %v619_v35 }
 0x18b   : > { %2092 = vst [vmem:[#allocation1 + $0x10] ss:$2 sm:$0xff] %v4301_v42  ;;  %v2055_v46 = vpack.c.bf16 %v2052_v45, %v2051_v40  ;;  %v4330_v40 = vld [vmem:[%s4698_s29 + $0x99] sm:$0xf]  ;;  %v837_v42 = vpop.f32.mrf.mxu1  ;;  %v4331_v45 = vld [vmem:[%s4698_s29 + $0xa1] sm:$0xf] }
 0x18c   : > { %2094 = vst [vmem:[#allocation1 + $0x11] ss:$2 sm:$0xff] %v4302_v43  ;;  %v709_v43 = vadd.f32 %v5112_v54, %v664_v39  ;;  %v4337_v54 = vld [vmem:[%s4698_s29 + $0xe1] sm:$0xf] }
 0x18d   : > { %4298 = vmatmul.msk.bf16.vlgmr.msrb.gmra.mxu1 %vm270_vm1, %v2055_v46  ;;  %v881_v46 = vpop.f32.mrf.mxu2 }
 0x18e   : > { %v753_v49 = vadd.f32 %v5121_v63, %v709_v43  ;;  %v4357_v63 = vld [vmem:[%s5521_s1 + $0x66] sm:$0x3] }
 0x18f   : > { %v2504_v2 = vsel %vm274_vm0, %v4357_v63, 0  ;;  %v4355_v43 = vld [vmem:[%s4698_s29 + $0xa3] sm:$0xf] }
 0x191   : > { %v2095_v51 = vld.sshfl [vmem:[#allocation1] sm:$0xff pattern:$0x75316420] }
 0x192   : > { %2132 = vst [vmem:[#allocation1] ss:$2 sm:$0xff] %v4305_v47  ;;  %v4332_v47 = vld [vmem:[%s4698_s29 + $0xa9] sm:$0xf] }
 0x193   : > { %v2096_v55 = vld.sshfl [vmem:[#allocation1 + $0x10] sm:$0xff pattern:$0x75316420]  ;;  %2134 = vst [vmem:[#allocation1 + $0x1] ss:$2 sm:$0xff] %v4306_v48 }
 0x194   : > { %v2099_v56 = vpack.c.bf16 %v2096_v55, %v2095_v51  ;;  %2136 = vst [vmem:[#allocation1 + $0x10] ss:$2 sm:$0xff] %v4307_v52  ;;  %v4335_v51 = vld [vmem:[%s4698_s29 + $0xd1] sm:$0xf]  ;;  %v797_v52 = vadd.f32 %v5127_v4, %v753_v49  ;;  %v4338_v55 = vld [vmem:[%s4698_s29 + $0xe9] sm:$0xf] }
 0x195   : > { %2138 = vst [vmem:[#allocation1 + $0x11] ss:$2 sm:$0xff] %v4308_v53  ;;  %v4336_v53 = vld [vmem:[%s4698_s29 + $0xd9] sm:$0xf] }
 0x196   : > { %4304 = vmatmul.msk.bf16.vlgmr.msra.gmra.mxu2 %vm270_vm1, %v2099_v56  ;;  %v841_v14 = vadd.f32 %v837_v42, %v797_v52  ;;  %v4354_v42 = vld [vmem:[%s4698_s29 + $0x9b] sm:$0xf] }
 0x197   : > { %2469 = vmatpush.bf16.msra.mxu2 %v2460_v28 }
 0x198   : > { %v885_v22 = vadd.f32 %v881_v46, %v841_v14 }
 0x19a   : > { %v2139_v62 = vld.sshfl [vmem:[#allocation1] sm:$0xff pattern:$0x75316420]  ;;  %v929_v21 = vadd.f32 %v925_v57, %v885_v22 }
 0x19b   : > { %2176 = vst [vmem:[#allocation1] ss:$2 sm:$0xff] %v4311_v58  ;;  %v1011_v58 = vpop.f32.mrf.mxu1 }
 0x19c   : > { %v2140_v5 = vld.sshfl [vmem:[#allocation1 + $0x10] sm:$0xff pattern:$0x75316420]  ;;  %2178 = vst [vmem:[#allocation1 + $0x1] ss:$2 sm:$0xff] %v4312_v44  ;;  %v1016_v44 = vadd.f32 %v1011_v58, %v972_v30 }
 0x19d   : > { %v2143_v10 = vpack.c.bf16 %v2140_v5, %v2139_v62  ;;  %2180 = vst [vmem:[#allocation1 + $0x10] ss:$2 sm:$0xff] %v4313_v59  ;;  %v2416_v59 = vsel %vm274_vm0, %v4345_v41, 0  ;;  %v1056_v62 = vpop.f32.mrf.mxu2  ;;  %v4341_v5 = vld [vmem:[%s4698_s29 + $0x92] sm:$0xf] }
 0x19e   : > { %2182 = vst [vmem:[#allocation1 + $0x11] ss:$2 sm:$0xff] %v4314_v61  ;;  %v969_v61 = vpop.f32.mrf.mxu0  ;;  %2425 = vmatpush.bf16.msrb.mxu1 %v2416_v59  ;;  %v1061_v4 = vadd.f32 %v1056_v62, %v1016_v44  ;;  %v4359_v58 = vld [vmem:[%s4698_s29 + $0xd3] sm:$0xf]  ;;  %v4360_v41 = vld [vmem:[%s4698_s29 + $0xdb] sm:$0xf] }
 0x19f   : > { %4310 = vmatmul.msk.bf16.vlgmr.msrb.gmra.mxu3 %vm270_vm1, %v2143_v10  ;;  %v973_v60 = vadd.f32 %v969_v61, %v929_v21  ;;  %v4361_v44 = vld [vmem:[%s4698_s29 + $0xe3] sm:$0xf] }
 0x1a0   : > { %2513 = vmatpush.bf16.msrb.mxu3 %v2504_v2  ;;  %v4362_v2 = vld [vmem:[%s4698_s29 + $0xeb] sm:$0xf] }
 0x1a3   : > { %v2183_v19 = vld.sshfl [vmem:[#allocation1] sm:$0xff pattern:$0x75316420]  ;;  %v1013_v10 = vpop.f32.mrf.mxu1 }
 0x1a4   : > { %2221 = vst [vmem:[#allocation1] ss:$2 sm:$0xff] %v4317_v15  ;;  %v4344_v15 = vld [vmem:[%s4698_s29 + $0xaa] sm:$0xf] }
 0x1a5   : > { %v2184_v25 = vld.sshfl [vmem:[#allocation1 + $0x10] sm:$0xff pattern:$0x75316420]  ;;  %2223 = vst [vmem:[#allocation1 + $0x1] ss:$2 sm:$0xff] %v4318_v16  ;;  %v1106_v16 = vadd.f32 %v1101_v11, %v1061_v4 }
 0x1a6   : > { %v2187_v29 = vpack.c.bf16 %v2184_v25, %v2183_v19  ;;  %2225 = vst [vmem:[#allocation1 + $0x10] ss:$2 sm:$0xff] %v4319_v17  ;;  %v1058_v17 = vpop.f32.mrf.mxu2  ;;  %v2548_v19 = vsel %vm274_vm0, %v4363_v12, 0  ;;  %v4348_v25 = vld [vmem:[%s4698_s29 + $0xda] sm:$0xf] }
 0x1a7   : > { %2227 = vst [vmem:[#allocation1 + $0x11] ss:$2 sm:$0xff] %v4320_v18  ;;  %v1145_v18 = vpop.f32.mrf.mxu0  ;;  %v4366_v12 = vld [vmem:[%s4698_s29 + $0x9c] sm:$0xf] }
 0x1a8   : > { %4316 = vmatmul.msk.bf16.vlgmr.msrb.gmra.mxu0 %vm270_vm1, %v2187_v29  ;;  %v1150_v23 = vadd.f32 %v1145_v18, %v1106_v16  ;;  %v1103_v29 = vpop.f32.mrf.mxu3 }
 0x1a9   : > { %2557 = vmatpush.bf16.msrb.mxu0 %v2548_v19  ;;  %v4387_v19 = vld [vmem:[%s5521_s1 + $0x70] sm:$0x3] }
 0x1ab   : > { %v1189_v30 = vpop.f32.mrf.mxu1 }
 0x1ac   : > { %v2228_v33 = vld.sshfl [vmem:[#allocation1] sm:$0xff pattern:$0x75316420] }
 0x1ad   : > { %2266 = vst [vmem:[#allocation1] ss:$2 sm:$0xff] %v4323_v0  ;;  %v4350_v0 = vld [vmem:[%s4698_s29 + $0xea] sm:$0xf] }
 0x1ae   : > { %v2229_v37 = vld.sshfl [vmem:[#allocation1 + $0x10] sm:$0xff pattern:$0x75316420]  ;;  %2268 = vst [vmem:[#allocation1 + $0x1] ss:$2 sm:$0xff] %v4324_v32  ;;  %v1017_v32 = vadd.f32 %v1013_v10, %v973_v60  ;;  %v1233_v35 = vpop.f32.mrf.mxu2  ;;  %v2726_v60 = vsel %vm274_vm0, %v4387_v19, 0 }
 0x1af   : > { %2270 = vst [vmem:[#allocation1 + $0x10] ss:$2 sm:$0xff] %v4325_v34  ;;  %v2232_v38 = vpack.c.bf16 %v2229_v37, %v2228_v33  ;;  %v1194_v33 = vadd.f32 %v1189_v30, %v1150_v23  ;;  %v1147_v34 = vpop.f32.mrf.mxu0  ;;  %v4365_v10 = vld [vmem:[%s4698_s29 + $0x94] sm:$0xf]  ;;  %v4371_v30 = vld [vmem:[%s4698_s29 + $0x18] sm:$0xf] }
 0x1b0   : > { %2272 = vst [vmem:[#allocation1 + $0x11] ss:$2 sm:$0xff] %v4326_v36  ;;  %v2592_v36 = vsel %vm274_vm0, %v4369_v31, 0  ;;  %v4372_v31 = vld [vmem:[%s4698_s29 + $0x20] sm:$0xf] }
 0x1b1   : > { %4322 = vmatmul.msk.bf16.vlgmr.msra.gmra.mxu1 %vm270_vm1, %v2232_v38  ;;  %v1238_v39 = vadd.f32 %v1233_v35, %v1194_v33  ;;  %v4393_v35 = vld [vmem:[%s5521_s1 + $0x72] sm:$0x3]  ;;  %v4390_v19 = vld [vmem:[%s4698_s29 + $0x61] sm:$0xf] }
 0x1b2   : > { %2601 = vmatpush.bf16.msra.mxu1 %v2592_v36  ;;  %v4374_v36 = vld [vmem:[%s4698_s29 + $0x30] sm:$0xf] }
 0x1b3   : > { %v1191_v46 = vpop.f32.mrf.mxu1 }
 0x1b5   : > { %v2273_v13 = vld.sshfl [vmem:[#allocation1] sm:$0xff pattern:$0x75316420] }
 0x1b6   : > { %2310 = vst [vmem:[#allocation1] ss:$2 sm:$0xff] %v4329_v8  ;;  %v1062_v8 = vadd.f32 %v1058_v17, %v1017_v32 }
 0x1b7   : > { %v2274_v48 = vld.sshfl [vmem:[#allocation1 + $0x10] sm:$0xff pattern:$0x75316420]  ;;  %2312 = vst [vmem:[#allocation1 + $0x1] ss:$2 sm:$0xff] %v4330_v40  ;;  %v1321_v52 = vpop.f32.mrf.mxu0 }
 0x1b8   : > { %v2277_v50 = vpack.c.bf16 %v2274_v48, %v2273_v13  ;;  %2314 = vst [vmem:[#allocation1 + $0x10] ss:$2 sm:$0xff] %v4331_v45  ;;  %v4353_v40 = vld [vmem:[%s4698_s29 + $0x93] sm:$0xf]  ;;  %v1107_v45 = vadd.f32 %v1103_v29, %v1062_v8  ;;  %v4375_v48 = vld [vmem:[%s5521_s1 + $0x6c] sm:$0x3] }
 0x1b9   : > { %2316 = vst [vmem:[#allocation1 + $0x11] ss:$2 sm:$0xff] %v4332_v47  ;;  %v1277_v47 = vpop.f32.mrf.mxu3 }
 0x1ba   : > { %4328 = vmatmul.msk.bf16.vlgmr.msrb.gmra.mxu2 %vm270_vm1, %v2277_v50  ;;  %v4356_v50 = vld [vmem:[%s4698_s29 + $0xab] sm:$0xf]  ;;  %v1282_v49 = vadd.f32 %v1277_v47, %v1238_v39  ;;  %v1151_v57 = vadd.f32 %v1147_v34, %v1107_v45  ;;  %v4378_v47 = vld [vmem:[%s4698_s29 + $0x60] sm:$0xf] }
 0x1bb   : > { %v1365_v63 = vpop.f32.mrf.mxu1 }
 0x1bc   : > { %v1195_v59 = vadd.f32 %v1191_v46, %v1151_v57  ;;  %v4377_v46 = vld [vmem:[%s4698_s29 + $0x58] sm:$0xf] }
 0x1be   : > { %v2317_v56 = vld.sshfl [vmem:[#allocation1] sm:$0xff pattern:$0x75316420] }
 0x1bf   : > { %2354 = vst [vmem:[#allocation1] ss:$2 sm:$0xff] %v4335_v51  ;;  %v1235_v51 = vpop.f32.mrf.mxu2  ;;  %v1323_v14 = vpop.f32.mrf.mxu0 }
 0x1c0   : > { %v2318_v1 = vld.sshfl [vmem:[#allocation1 + $0x10] sm:$0xff pattern:$0x75316420]  ;;  %2356 = vst [vmem:[#allocation1 + $0x1] ss:$2 sm:$0xff] %v4336_v53  ;;  %v2637_v53 = vsel %vm274_vm0, %v4375_v48, 0 }
 0x1c1   : > { %v2321_v3 = vpack.c.bf16 %v2318_v1, %v2317_v56  ;;  %2358 = vst [vmem:[#allocation1 + $0x10] ss:$2 sm:$0xff] %v4337_v54  ;;  %2646 = vmatpush.bf16.msrb.mxu2 %v2637_v53  ;;  %v1326_v56 = vadd.f32 %v1321_v52, %v1282_v49  ;;  %v1279_v62 = vpop.f32.mrf.mxu3  ;;  %v4381_v1 = vld [vmem:[%s5521_s1 + $0x6e] sm:$0x3]  ;;  %v4379_v48 = vld [vmem:[%s4698_s29 + $0x68] sm:$0xf] }
 0x1c2   : > { %2360 = vst [vmem:[#allocation1 + $0x11] ss:$2 sm:$0xff] %v4338_v55  ;;  %v2682_v22 = vsel %vm274_vm0, %v4381_v1, 0  ;;  %v4399_v53 = vld [vmem:[%s5521_s1 + $0x74] sm:$0x3] }
 0x1c3   : > { %4334 = vmatmul.msk.bf16.vlgmr.msra.gmra.mxu3 %vm270_vm1, %v2321_v3  ;;  %v1370_v3 = vadd.f32 %v1365_v63, %v1326_v56  ;;  %v1367_v17 = vpop.f32.mrf.mxu1  ;;  %v4384_v63 = vld [vmem:[%s4698_s29 + $0x21] sm:$0xf]  ;;  %v4385_v1 = vld [vmem:[%s4698_s29 + $0x29] sm:$0xf] }
 0x1c4   : > { %2691 = vmatpush.bf16.msra.mxu3 %v2682_v22  ;;  %v4405_v22 = vld [vmem:[%s5521_s1 + $0x76] sm:$0x3] }
 0x1c7   : > { %v2361_v9 = vld.sshfl [vmem:[#allocation1] sm:$0xff pattern:$0x75316420]  ;;  %v1409_v4 = vpop.f32.mrf.mxu2  ;;  %v1499_v23 = vpop.f32.mrf.mxu0 }
 0x1c8   : > { %2398 = vst [vmem:[#allocation1] ss:$2 sm:$0xff] %v4341_v5 }
 0x1c9   : > { %v2362_v20 = vld.sshfl [vmem:[#allocation1 + $0x10] sm:$0xff pattern:$0x75316420]  ;;  %2400 = vst [vmem:[#allocation1 + $0x1] ss:$2 sm:$0xff] %v4342_v6  ;;  %v1454_v18 = vpop.f32.mrf.mxu3 }
 0x1ca   : > { %v2365_v27 = vpack.c.bf16 %v2362_v20, %v2361_v9  ;;  %2402 = vst [vmem:[#allocation1 + $0x10] ss:$2 sm:$0xff] %v4343_v7  ;;  %v1239_v7 = vadd.f32 %v1235_v51, %v1195_v59  ;;  %v1414_v9 = vadd.f32 %v1409_v4, %v1370_v3  ;;  %v4368_v20 = vld [vmem:[%s4698_s29 + $0xac] sm:$0xf] }
 0x1cb   : > { %2404 = vst [vmem:[#allocation1 + $0x11] ss:$2 sm:$0xff] %v4344_v15  ;;  %v4367_v15 = vld [vmem:[%s4698_s29 + $0xa4] sm:$0xf]  ;;  %v1543_v34 = vpop.f32.mrf.mxu1 }
 0x1cc   : > { %4340 = vmatmul.msk.bf16.vlgmr.msra.gmra.mxu0 %vm270_vm1, %v2365_v27  ;;  %v1283_v11 = vadd.f32 %v1279_v62, %v1239_v7  ;;  %v1459_v21 = vadd.f32 %v1454_v18, %v1414_v9  ;;  %v4383_v62 = vld [vmem:[%s4698_s29 + $0x19] sm:$0xf] }
 0x1cd   : > { %2735 = vmatpush.bf16.msra.mxu0 %v2726_v60  ;;  %v4411_v60 = vld [vmem:[%s5521_s1 + $0x78] sm:$0x3] }
 0x1cf   : > { %v1411_v27 = vpop.f32.mrf.mxu2  ;;  %v1501_v39 = vpop.f32.mrf.mxu0 }
 0x1d0   : > { %v2405_v28 = vld.sshfl [vmem:[#allocation1] sm:$0xff pattern:$0x75316420] }
 0x1d1   : > { %2442 = vst [vmem:[#allocation1] ss:$2 sm:$0xff] %v4347_v24  ;;  %v1456_v33 = vpop.f32.mrf.mxu3 }
 0x1d2   : > { %v2406_v37 = vld.sshfl [vmem:[#allocation1 + $0x10] sm:$0xff pattern:$0x75316420]  ;;  %2444 = vst [vmem:[#allocation1 + $0x1] ss:$2 sm:$0xff] %v4348_v25  ;;  %v1327_v25 = vadd.f32 %v1323_v14, %v1283_v11 }
 0x1d3   : > { %2446 = vst [vmem:[#allocation1 + $0x10] ss:$2 sm:$0xff] %v4349_v26  ;;  %v2409_v38 = vpack.c.bf16 %v2406_v37, %v2405_v28  ;;  %v1504_v28 = vadd.f32 %v1499_v23, %v1459_v21  ;;  %v1545_v51 = vpop.f32.mrf.mxu1 }
 0x1d4   : > { %2448 = vst [vmem:[#allocation1 + $0x11] ss:$2 sm:$0xff] %v4350_v0  ;;  %v1371_v29 = vadd.f32 %v1367_v17, %v1327_v25  ;;  %v4373_v0 = vld [vmem:[%s4698_s29 + $0x28] sm:$0xf]  ;;  %v4389_v17 = vld [vmem:[%s4698_s29 + $0x59] sm:$0xf] }
 0x1d5   : > { %4346 = vmatmul.msk.bf16.vlgmr.msrb.gmra.mxu1 %vm270_vm1, %v2409_v38  ;;  %v1548_v38 = vadd.f32 %v1543_v34, %v1504_v28  ;;  %v4395_v34 = vld [vmem:[%s4698_s29 + $0x1a] sm:$0xf] }
 0x1d6   : > { %v1415_v37 = vadd.f32 %v1411_v27, %v1371_v29  ;;  %v2902_v29 = vsel %vm274_vm0, %v4411_v60, 0  ;;  %v4415_v60 = vld [vmem:[%s4698_s29 + $0x6b] sm:$0xf] }
 0x1d7   : > { %v1587_v8 = vpop.f32.mrf.mxu2  ;;  %v1675_v57 = vpop.f32.mrf.mxu0 }
 0x1d8   : > { %v1460_v45 = vadd.f32 %v1456_v33, %v1415_v37 }
 0x1d9   : > { %v2449_v13 = vld.sshfl [vmem:[#allocation1] sm:$0xff pattern:$0x75316420]  ;;  %v1631_v52 = vpop.f32.mrf.mxu3 }
 0x1da   : > { %2486 = vst [vmem:[#allocation1] ss:$2 sm:$0xff] %v4353_v40  ;;  %v2770_v40 = vsel %vm274_vm0, %v4393_v35, 0  ;;  %v1505_v49 = vadd.f32 %v1501_v39, %v1460_v45  ;;  %v4396_v35 = vld [vmem:[%s4698_s29 + $0x22] sm:$0xf] }
 0x1db   : > { %v2450_v54 = vld.sshfl [vmem:[#allocation1 + $0x10] sm:$0xff pattern:$0x75316420]  ;;  %2488 = vst [vmem:[#allocation1 + $0x1] ss:$2 sm:$0xff] %v4354_v42  ;;  %2779 = vmatpush.bf16.msrb.mxu1 %v2770_v40  ;;  %v1719_v4 = vpop.f32.mrf.mxu1 }
 0x1dc   : > { %v2453_v55 = vpack.c.bf16 %v2450_v54, %v2449_v13  ;;  %2490 = vst [vmem:[#allocation1 + $0x10] ss:$2 sm:$0xff] %v4355_v43  ;;  %v1592_v13 = vadd.f32 %v1587_v8, %v1548_v38  ;;  %v4380_v54 = vld [vmem:[%s4698_s29 + $0x70] sm:$0xf]  ;;  %v4417_v8 = vld [vmem:[%s5521_s1 + $0x7a] sm:$0x3] }
 0x1dd   : > { %2492 = vst [vmem:[#allocation1 + $0x11] ss:$2 sm:$0xff] %v4356_v50  ;;  %v4398_v40 = vld [vmem:[%s4698_s29 + $0x32] sm:$0xf] }
 0x1de   : > { %4352 = vmatmul.msk.bf16.vlgmr.msra.gmra.mxu2 %vm270_vm1, %v2453_v55  ;;  %v1636_v55 = vadd.f32 %v1631_v52, %v1592_v13  ;;  %v4402_v52 = vld [vmem:[%s4698_s29 + $0x62] sm:$0xf] }
 0x1df   : > { %v1589_v56 = vpop.f32.mrf.mxu2  ;;  %v1677_v7 = vpop.f32.mrf.mxu0 }
 0x1e0   : > { %v1680_v59 = vadd.f32 %v1675_v57, %v1636_v55  ;;  %v4423_v57 = vld [vmem:[%s5521_s1 + $0x7c] sm:$0x3] }
 0x1e1   : > { %v1633_v14 = vpop.f32.mrf.mxu3 }
 0x1e2   : > { %v2493_v61 = vld.sshfl [vmem:[#allocation1] sm:$0xff pattern:$0x75316420] }
 0x1e3   : > { %2530 = vst [vmem:[#allocation1] ss:$2 sm:$0xff] %v4359_v58  ;;  %v2814_v58 = vsel %vm274_vm0, %v4399_v53, 0  ;;  %v1721_v27 = vpop.f32.mrf.mxu1  ;;  %v4403_v53 = vld [vmem:[%s4698_s29 + $0x6a] sm:$0xf] }
 0x1e4   : > { %v2494_v5 = vld.sshfl [vmem:[#allocation1 + $0x10] sm:$0xff pattern:$0x75316420]  ;;  %2532 = vst [vmem:[#allocation1 + $0x1] ss:$2 sm:$0xff] %v4360_v41  ;;  %2823 = vmatpush.bf16.msra.mxu2 %v2814_v58 }
 0x1e5   : > { %v2497_v6 = vpack.c.bf16 %v2494_v5, %v2493_v61  ;;  %2534 = vst [vmem:[#allocation1 + $0x10] ss:$2 sm:$0xff] %v4361_v44  ;;  %v1549_v61 = vadd.f32 %v1545_v51, %v1505_v49  ;;  %v4386_v5 = vld [vmem:[%s4698_s29 + $0x31] sm:$0xf]  ;;  %v4401_v51 = vld [vmem:[%s4698_s29 + $0x5a] sm:$0xf] }
 0x1e6   : > { %2536 = vst [vmem:[#allocation1 + $0x11] ss:$2 sm:$0xff] %v4362_v2  ;;  %v4404_v58 = vld [vmem:[%s4698_s29 + $0x72] sm:$0xf] }
 0x1e7   : > { %4358 = vmatmul.msk.bf16.vlgmr.msrb.gmra.mxu3 %vm270_vm1, %v2497_v6  ;;  %v1593_v2 = vadd.f32 %v1589_v56, %v1549_v61  ;;  %v1724_v6 = vadd.f32 %v1719_v4, %v1680_v59  ;;  %v1763_v9 = vpop.f32.mrf.mxu2  ;;  %v1852_v28 = vpop.f32.mrf.mxu0  ;;  %v4408_v4 = vld [vmem:[%s4698_s29 + $0x23] sm:$0xf] }
 0x1e9   : > { %v1807_v23 = vpop.f32.mrf.mxu3 }
 0x1eb   : > { %v2537_v16 = vld.sshfl [vmem:[#allocation1] sm:$0xff pattern:$0x75316420]  ;;  %v1897_v39 = vpop.f32.mrf.mxu1 }
 0x1ec   : > { %2574 = vst [vmem:[#allocation1] ss:$2 sm:$0xff] %v4365_v10  ;;  %v2858_v10 = vsel %vm274_vm0, %v4405_v22, 0  ;;  %v4409_v22 = vld [vmem:[%s4698_s29 + $0x2b] sm:$0xf] }
 0x1ed   : > { %v2538_v24 = vld.sshfl [vmem:[#allocation1 + $0x10] sm:$0xff pattern:$0x75316420]  ;;  %2576 = vst [vmem:[#allocation1 + $0x1] ss:$2 sm:$0xff] %v4366_v12  ;;  %2867 = vmatpush.bf16.msrb.mxu3 %v2858_v10 }
 0x1ee   : > { %v2541_v26 = vpack.c.bf16 %v2538_v24, %v2537_v16  ;;  %2578 = vst [vmem:[#allocation1 + $0x10] ss:$2 sm:$0xff] %v4367_v15  ;;  %v1637_v15 = vadd.f32 %v1633_v14, %v1593_v2  ;;  %v1768_v16 = vadd.f32 %v1763_v9, %v1724_v6  ;;  %v4392_v24 = vld [vmem:[%s4698_s29 + $0x71] sm:$0xf]  ;;  %v4407_v14 = vld [vmem:[%s4698_s29 + $0x1b] sm:$0xf] }
 0x1ef   : > { %2580 = vst [vmem:[#allocation1 + $0x11] ss:$2 sm:$0xff] %v4368_v20  ;;  %v4391_v20 = vld [vmem:[%s4698_s29 + $0x69] sm:$0xf]  ;;  %v1854_v13 = vpop.f32.mrf.mxu0  ;;  %v4429_v9 = vld [vmem:[%s5521_s1 + $0x7e] sm:$0x3] }
 0x1f0   : > { %4364 = vmatmul.msk.bf16.vlgmr.msrb.gmra.mxu0 %vm270_vm1, %v2541_v26  ;;  %v1681_v18 = vadd.f32 %v1677_v7, %v1637_v15  ;;  %v1812_v25 = vadd.f32 %v1807_v23, %v1768_v16  ;;  %v1765_v26 = vpop.f32.mrf.mxu2  ;;  %v4410_v10 = vld [vmem:[%s4698_s29 + $0x33] sm:$0xf]  ;;  %v4414_v23 = vld [vmem:[%s4698_s29 + $0x63] sm:$0xf] }
 0x1f1   : > { %2911 = vmatpush.bf16.msrb.mxu0 %v2902_v29  ;;  %v1809_v38 = vpop.f32.mrf.mxu3  ;;  %v4416_v29 = vld [vmem:[%s4698_s29 + $0x73] sm:$0xf] }
 0x1f3   : > { %v1899_v55 = vpop.f32.mrf.mxu1 }
 0x1f4   : > { %v2581_v32 = vld.sshfl [vmem:[#allocation1] sm:$0xff pattern:$0x75316420] }
 0x1f5   : > { %2619 = vst [vmem:[#allocation1] ss:$2 sm:$0xff] %v4371_v30 }
 0x1f6   : > { %v2582_v42 = vld.sshfl [vmem:[#allocation1 + $0x10] sm:$0xff pattern:$0x75316420]  ;;  %2621 = vst [vmem:[#allocation1 + $0x1] ss:$2 sm:$0xff] %v4372_v31  ;;  %v1725_v31 = vadd.f32 %v1721_v27, %v1681_v18 }
 0x1f7   : > { %v2585_v43 = vpack.c.bf16 %v2582_v42, %v2581_v32  ;;  %2623 = vst [vmem:[#allocation1 + $0x10] ss:$2 sm:$0xff] %v4373_v0  ;;  %v1857_v32 = vadd.f32 %v1852_v28, %v1812_v25  ;;  %v4413_v27 = vld [vmem:[%s4698_s29 + $0x5b] sm:$0xf]  ;;  %v4435_v28 = vld [vmem:[%s5521_s1 + $0x80] sm:$0x3] }
 0x1f8   : > { %2625 = vst [vmem:[#allocation1 + $0x11] ss:$2 sm:$0xff] %v4374_v36  ;;  %v1769_v33 = vadd.f32 %v1765_v26, %v1725_v31  ;;  %v4397_v36 = vld [vmem:[%s4698_s29 + $0x2a] sm:$0xf]  ;;  %v1941_v45 = vpop.f32.mrf.mxu2 }
 0x1f9   : > { %4370 = vmatmul.msk.bf16.vlgmr.msra.gmra.mxu1 %vm270_vm1, %v2585_v43  ;;  %v1902_v43 = vadd.f32 %v1897_v39, %v1857_v32  ;;  %v4420_v39 = vld [vmem:[%s4698_s29 + $0x24] sm:$0xf] }
 0x1fa   : > { %v1813_v42 = vadd.f32 %v1809_v38, %v1769_v33  ;;  %v3080_v33 = vsel %vm274_vm0, %v4435_v28, 0  ;;  %v4419_v38 = vld [vmem:[%s4698_s29 + $0x1c] sm:$0xf]  ;;  %v4459_v28 = vld [vmem:[%s5521_s1 + $0x88] sm:$0x3] }
 0x1fb   : > { %v1946_v49 = vadd.f32 %v1941_v45, %v1902_v43  ;;  %v4422_v45 = vld [vmem:[%s4698_s29 + $0x34] sm:$0xf] }
 0x1fd   : > { %v2626_v50 = vld.sshfl [vmem:[#allocation1] sm:$0xff pattern:$0x75316420] }
 0x1fe   : > { %2664 = vst [vmem:[#allocation1] ss:$2 sm:$0xff] %v4377_v46  ;;  %v2946_v46 = vsel %vm274_vm0, %v4417_v8, 0  ;;  %v1985_v56 = vpop.f32.mrf.mxu3  ;;  %v4421_v8 = vld [vmem:[%s4698_s29 + $0x2c] sm:$0xf] }
 0x1ff   : > { %v2627_v41 = vld.sshfl [vmem:[#allocation1 + $0x10] sm:$0xff pattern:$0x75316420]  ;;  %2666 = vst [vmem:[#allocation1 + $0x1] ss:$2 sm:$0xff] %v4378_v47  ;;  %2955 = vmatpush.bf16.msra.mxu1 %v2946_v46 }
 0x200   : > { %v2630_v44 = vpack.c.bf16 %v2627_v41, %v2626_v50  ;;  %2668 = vst [vmem:[#allocation1 + $0x10] ss:$2 sm:$0xff] %v4379_v48  ;;  %v1858_v50 = vadd.f32 %v1854_v13, %v1813_v42  ;;  %v1943_v59 = vpop.f32.mrf.mxu2  ;;  %v4441_v13 = vld [vmem:[%s5521_s1 + $0x82] sm:$0x3] }
 0x201   : > { %2670 = vst [vmem:[#allocation1 + $0x11] ss:$2 sm:$0xff] %v4380_v54  ;;  %v2029_v61 = vpop.f32.mrf.mxu0 }
 0x202   : > { %4376 = vmatmul.msk.bf16.vlgmr.msrb.gmra.mxu2 %vm270_vm1, %v2630_v44  ;;  %v1903_v41 = vadd.f32 %v1899_v55, %v1858_v50  ;;  %v1990_v44 = vadd.f32 %v1985_v56, %v1946_v49  ;;  %v3124_v50 = vsel %vm274_vm0, %v4441_v13, 0  ;;  %v4425_v55 = vld [vmem:[%s4698_s29 + $0x98] sm:$0xf]  ;;  %v4426_v56 = vld [vmem:[%s4698_s29 + $0xa0] sm:$0xf] }
 0x203   : > { %v4450_v13 = vld [vmem:[%s4698_s29 + $0xa2] sm:$0xf] }
 0x204   : > { %v1947_v2 = vadd.f32 %v1943_v59, %v1903_v41  ;;  %v4428_v59 = vld [vmem:[%s4698_s29 + $0xb0] sm:$0xf] }
 0x206   : > { %v2671_v3 = vld.sshfl [vmem:[#allocation1] sm:$0xff pattern:$0x75316420]  ;;  %v1987_v6 = vpop.f32.mrf.mxu3 }
 0x207   : > { %2708 = vst [vmem:[#allocation1] ss:$2 sm:$0xff] %v4383_v62  ;;  %v2990_v62 = vsel %vm274_vm0, %v4423_v57, 0  ;;  %v4427_v57 = vld [vmem:[%s4698_s29 + $0xa8] sm:$0xf] }
 0x208   : > { %v2672_v11 = vld.sshfl [vmem:[#allocation1 + $0x10] sm:$0xff pattern:$0x75316420]  ;;  %2710 = vst [vmem:[#allocation1 + $0x1] ss:$2 sm:$0xff] %v4384_v63  ;;  %2999 = vmatpush.bf16.msrb.mxu2 %v2990_v62 }
 0x209   : > { %v2675_v12 = vpack.c.bf16 %v2672_v11, %v2671_v3  ;;  %2712 = vst [vmem:[#allocation1 + $0x10] ss:$2 sm:$0xff] %v4385_v1  ;;  %v2034_v3 = vadd.f32 %v2029_v61, %v1990_v44  ;;  %v1991_v11 = vadd.f32 %v1987_v6, %v1947_v2  ;;  %v2031_v15 = vpop.f32.mrf.mxu0  ;;  %v4447_v44 = vld [vmem:[%s5521_s1 + $0x84] sm:$0x3]  ;;  %v4431_v6 = vld [vmem:[%s4698_s29 + $0xd8] sm:$0xf] }
 0x20a   : > { %2714 = vst [vmem:[#allocation1 + $0x11] ss:$2 sm:$0xff] %v4386_v5  ;;  %v2073_v7 = vpop.f32.mrf.mxu1 }
 0x20b   : > { %4382 = vmatmul.msk.bf16.vlgmr.msra.gmra.mxu3 %vm270_vm1, %v2675_v12  ;;  %v2078_v12 = vadd.f32 %v2073_v7, %v2034_v3  ;;  %v4432_v7 = vld [vmem:[%s4698_s29 + $0xe0] sm:$0xf] }
 0x20f   : > { %v2715_v21 = vld.sshfl [vmem:[#allocation1] sm:$0xff pattern:$0x75316420] }
 0x210   : > { %2752 = vst [vmem:[#allocation1] ss:$2 sm:$0xff] %v4389_v17  ;;  %v3035_v17 = vsel %vm274_vm0, %v4429_v9, 0  ;;  %v4433_v9 = vld [vmem:[%s4698_s29 + $0xe8] sm:$0xf] }
 0x211   : > { %v2716_v30 = vld.sshfl [vmem:[#allocation1 + $0x10] sm:$0xff pattern:$0x75316420]  ;;  %2754 = vst [vmem:[#allocation1 + $0x1] ss:$2 sm:$0xff] %v4390_v19  ;;  %3044 = vmatpush.bf16.msra.mxu3 %v3035_v17 }
 0x212   : > { %v2719_v0 = vpack.c.bf16 %v2716_v30, %v2715_v21  ;;  %2756 = vst [vmem:[#allocation1 + $0x10] ss:$2 sm:$0xff] %v4391_v20  ;;  %v2035_v20 = vadd.f32 %v2031_v15, %v1991_v11  ;;  %v2075_v25 = vpop.f32.mrf.mxu1  ;;  %v4434_v15 = vld [vmem:[%s4698_s29 + $0xf0] sm:$0xf] }
 0x213   : > { %2758 = vst [vmem:[#allocation1 + $0x11] ss:$2 sm:$0xff] %v4392_v24 }
 0x214   : > { %4388 = vmatmul.msk.bf16.vlgmr.msra.gmra.mxu0 %vm270_vm1, %v2719_v0  ;;  %v2079_v30 = vadd.f32 %v2075_v25, %v2035_v20  ;;  %v4439_v25 = vld [vmem:[%s4698_s29 + $0xa9] sm:$0xf] }
 0x215   : > { %3089 = vmatpush.bf16.msra.mxu0 %v3080_v33  ;;  %v4444_v33 = vld [vmem:[%s4698_s29 + $0xe1] sm:$0xf] }
 0x218   : > { %v2759_v37 = vld.sshfl [vmem:[#allocation1] sm:$0xff pattern:$0x75316420] }
 0x219   : > { %2796 = vst [vmem:[#allocation1] ss:$2 sm:$0xff] %v4395_v34  ;;  %v2117_v16 = vpop.f32.mrf.mxu2 }
 0x21a   : > { %v2760_v47 = vld.sshfl [vmem:[#allocation1 + $0x10] sm:$0xff pattern:$0x75316420]  ;;  %2798 = vst [vmem:[#allocation1 + $0x1] ss:$2 sm:$0xff] %v4396_v35  ;;  %v2122_v21 = vadd.f32 %v2117_v16, %v2078_v12 }
 0x21b   : > { %v2763_v48 = vpack.c.bf16 %v2760_v47, %v2759_v37  ;;  %2800 = vst [vmem:[#allocation1 + $0x10] ss:$2 sm:$0xff] %v4397_v36  ;;  %v4453_v12 = vld [vmem:[%s5521_s1 + $0x86] sm:$0x3] }
 0x21c   : > { %2802 = vst [vmem:[#allocation1 + $0x11] ss:$2 sm:$0xff] %v4398_v40  ;;  %v3212_v17 = vsel %vm274_vm0, %v4453_v12, 0 }
 0x21d   : > { %4394 = vmatmul.msk.bf16.vlgmr.msrb.gmra.mxu1 %vm270_vm1, %v2763_v48 }
 0x21e   : > { %3133 = vmatpush.bf16.msrb.mxu1 %v3124_v50 }
 0x221   : > { %v2803_v54 = vld.sshfl [vmem:[#allocation1] sm:$0xff pattern:$0x75316420]  ;;  %v2119_v0 = vpop.f32.mrf.mxu2 }
 0x222   : > { %2840 = vst [vmem:[#allocation1] ss:$2 sm:$0xff] %v4401_v51  ;;  %v2161_v26 = vpop.f32.mrf.mxu3  ;;  %v2123_v36 = vadd.f32 %v2119_v0, %v2079_v30  ;;  %v3256_v30 = vsel %vm274_vm0, %v4459_v28, 0 }
 0x223   : > { %v2804_v63 = vld.sshfl [vmem:[#allocation1 + $0x10] sm:$0xff pattern:$0x75316420]  ;;  %2842 = vst [vmem:[#allocation1 + $0x1] ss:$2 sm:$0xff] %v4402_v52  ;;  %v2166_v31 = vadd.f32 %v2161_v26, %v2122_v21 }
 0x224   : > { %v2807_v1 = vpack.c.bf16 %v2804_v63, %v2803_v54  ;;  %2844 = vst [vmem:[#allocation1 + $0x10] ss:$2 sm:$0xff] %v4403_v53  ;;  %v3168_v63 = vsel %vm274_vm0, %v4447_v44, 0  ;;  %v4477_v44 = vld [vmem:[%s5521_s1 + $0x8e] sm:$0x3] }
 0x225   : > { %2846 = vst [vmem:[#allocation1 + $0x11] ss:$2 sm:$0xff] %v4404_v58  ;;  %v2205_v32 = vpop.f32.mrf.mxu0 }
 0x226   : > { %4400 = vmatmul.msk.bf16.vlgmr.msra.gmra.mxu2 %vm270_vm1, %v2807_v1  ;;  %v2210_v37 = vadd.f32 %v2205_v32, %v2166_v31  ;;  %v4443_v32 = vld [vmem:[%s4698_s29 + $0xd9] sm:$0xf] }
 0x227   : > { %3177 = vmatpush.bf16.msra.mxu2 %v3168_v63 }
 0x22a   : > { %v2847_v5 = vld.sshfl [vmem:[#allocation1] sm:$0xff pattern:$0x75316420]  ;;  %v2163_v42 = vpop.f32.mrf.mxu3 }
 0x22b   : > { %2884 = vst [vmem:[#allocation1] ss:$2 sm:$0xff] %v4407_v14  ;;  %v2167_v46 = vadd.f32 %v2163_v42, %v2123_v36  ;;  %v4465_v36 = vld [vmem:[%s5521_s1 + $0x8a] sm:$0x3] }
 0x22c   : > { %v2848_v18 = vld.sshfl [vmem:[#allocation1 + $0x10] sm:$0xff pattern:$0x75316420]  ;;  %2886 = vst [vmem:[#allocation1 + $0x1] ss:$2 sm:$0xff] %v4408_v4 }
 0x22d   : > { %v2851_v19 = vpack.c.bf16 %v2848_v18, %v2847_v5  ;;  %2888 = vst [vmem:[#allocation1 + $0x10] ss:$2 sm:$0xff] %v4409_v22  ;;  %v2207_v51 = vpop.f32.mrf.mxu0 }
 0x22e   : > { %2890 = vst [vmem:[#allocation1 + $0x11] ss:$2 sm:$0xff] %v4410_v10  ;;  %v2250_v43 = vpop.f32.mrf.mxu1  ;;  %v2211_v53 = vadd.f32 %v2207_v51, %v2167_v46 }
 0x22f   : > { %4406 = vmatmul.msk.bf16.vlgmr.msrb.gmra.mxu3 %vm270_vm1, %v2851_v19  ;;  %v2255_v47 = vadd.f32 %v2250_v43, %v2210_v37  ;;  %v4446_v37 = vld [vmem:[%s4698_s29 + $0xf1] sm:$0xf]  ;;  %v4449_v43 = vld [vmem:[%s4698_s29 + $0x9a] sm:$0xf] }
 0x230   : > { %3221 = vmatpush.bf16.msrb.mxu3 %v3212_v17 }
 0x233   : > { %v2891_v24 = vld.sshfl [vmem:[#allocation1] sm:$0xff pattern:$0x75316420] }
 0x234   : > { %2928 = vst [vmem:[#allocation1] ss:$2 sm:$0xff] %v4413_v27 }
 0x235   : > { %v2892_v34 = vld.sshfl [vmem:[#allocation1 + $0x10] sm:$0xff pattern:$0x75316420]  ;;  %2930 = vst [vmem:[#allocation1 + $0x1] ss:$2 sm:$0xff] %v4414_v23 }
 0x236   : > { %v2895_v35 = vpack.c.bf16 %v2892_v34, %v2891_v24  ;;  %2932 = vst [vmem:[#allocation1 + $0x10] ss:$2 sm:$0xff] %v4415_v60  ;;  %v2252_v41 = vpop.f32.mrf.mxu1  ;;  %v4437_v60 = vld [vmem:[%s4698_s29 + $0x99] sm:$0xf]  ;;  %v4438_v24 = vld [vmem:[%s4698_s29 + $0xa1] sm:$0xf] }
 0x237   : > { %2934 = vst [vmem:[#allocation1 + $0x11] ss:$2 sm:$0xff] %v4416_v29  ;;  %v2256_v61 = vadd.f32 %v2252_v41, %v2211_v53  ;;  %v4440_v29 = vld [vmem:[%s4698_s29 + $0xb1] sm:$0xf]  ;;  %v4445_v34 = vld [vmem:[%s4698_s29 + $0xe9] sm:$0xf] }
 0x238   : > { %4412 = vmatmul.msk.bf16.vlgmr.msrb.gmra.mxu0 %vm270_vm1, %v2895_v35 }
 0x239   : > { %3265 = vmatpush.bf16.msrb.mxu0 %v3256_v30  ;;  %v4479_v30 = vld [vmem:[%s4698_s29 + $0x20] sm:$0xf] }
 0x23c   : > { %v2935_v40 = vld.sshfl [vmem:[#allocation1] sm:$0xff pattern:$0x75316420] }
 0x23d   : > { %2972 = vst [vmem:[#allocation1] ss:$2 sm:$0xff] %v4419_v38  ;;  %v2295_v48 = vpop.f32.mrf.mxu2 }
 0x23e   : > { %v2936_v49 = vld.sshfl [vmem:[#allocation1 + $0x10] sm:$0xff pattern:$0x75316420]  ;;  %2974 = vst [vmem:[#allocation1 + $0x1] ss:$2 sm:$0xff] %v4420_v39  ;;  %v2300_v54 = vadd.f32 %v2295_v48, %v2255_v47  ;;  %v3300_v39 = vsel %vm274_vm0, %v4465_v36, 0 }
 0x23f   : > { %v2939_v52 = vpack.c.bf16 %v2936_v49, %v2935_v40  ;;  %2976 = vst [vmem:[#allocation1 + $0x10] ss:$2 sm:$0xff] %v4421_v8  ;;  %v4471_v47 = vld [vmem:[%s5521_s1 + $0x8c] sm:$0x3]  ;;  %v4452_v48 = vld [vmem:[%s4698_s29 + $0xb2] sm:$0xf] }
 0x240   : > { %2978 = vst [vmem:[#allocation1 + $0x11] ss:$2 sm:$0xff] %v4422_v45  ;;  %v4451_v45 = vld [vmem:[%s4698_s29 + $0xaa] sm:$0xf]  ;;  %v3344_v49 = vsel %vm274_vm0, %v4471_v47, 0 }
 0x241   : > { %4418 = vmatmul.msk.bf16.vlgmr.msra.gmra.mxu1 %vm270_vm1, %v2939_v52  ;;  %v4491_v47 = vld [vmem:[%s4698_s29 + $0x21] sm:$0xf] }
 0x242   : > { %3309 = vmatpush.bf16.msra.mxu1 %v3300_v39  ;;  %v4486_v39 = vld [vmem:[%s4698_s29 + $0x68] sm:$0xf] }
 0x245   : > { %v2979_v58 = vld.sshfl [vmem:[#allocation1] sm:$0xff pattern:$0x75316420]  ;;  %v2297_v3 = vpop.f32.mrf.mxu2 }
 0x246   : > { %3017 = vst [vmem:[#allocation1] ss:$2 sm:$0xff] %v4425_v55  ;;  %v2339_v62 = vpop.f32.mrf.mxu3  ;;  %v2301_v4 = vadd.f32 %v2297_v3, %v2256_v61  ;;  %v3388_v61 = vsel %vm274_vm0, %v4477_v44, 0  ;;  %v4463_v3 = vld [vmem:[%s4698_s29 + $0xab] sm:$0xf] }
 0x247   : > { %v2980_v1 = vld.sshfl [vmem:[#allocation1 + $0x10] sm:$0xff pattern:$0x75316420]  ;;  %3019 = vst [vmem:[#allocation1 + $0x1] ss:$2 sm:$0xff] %v4426_v56  ;;  %v2344_v2 = vadd.f32 %v2339_v62, %v2300_v54 }
 0x248   : > { %v2983_v14 = vpack.c.bf16 %v2980_v1, %v2979_v58  ;;  %3021 = vst [vmem:[#allocation1 + $0x10] ss:$2 sm:$0xff] %v4427_v57  ;;  %v4455_v56 = vld [vmem:[%s4698_s29 + $0xda] sm:$0xf]  ;;  %v4456_v57 = vld [vmem:[%s4698_s29 + $0xe2] sm:$0xf] }
 0x249   : > { %3023 = vst [vmem:[#allocation1 + $0x11] ss:$2 sm:$0xff] %v4428_v59  ;;  %v2383_v22 = vpop.f32.mrf.mxu0  ;;  %v4457_v58 = vld [vmem:[%s4698_s29 + $0xea] sm:$0xf]  ;;  %v4458_v59 = vld [vmem:[%s4698_s29 + $0xf2] sm:$0xf] }
 0x24a   : > { %4424 = vmatmul.msk.bf16.vlgmr.msrb.gmra.mxu2 %vm270_vm1, %v2983_v14  ;;  %v2388_v5 = vadd.f32 %v2383_v22, %v2344_v2  ;;  %v4461_v1 = vld [vmem:[%s4698_s29 + $0x9b] sm:$0xf]  ;;  %v4462_v2 = vld [vmem:[%s4698_s29 + $0xa3] sm:$0xf]  ;;  %v4464_v22 = vld [vmem:[%s4698_s29 + $0xb3] sm:$0xf] }
 0x24b   : > { %3353 = vmatpush.bf16.msrb.mxu2 %v3344_v49  ;;  %v4494_v49 = vld [vmem:[%s4698_s29 + $0x39] sm:$0xf]  ;;  %v4498_v44 = vld [vmem:[%s4698_s29 + $0x69] sm:$0xf] }
 0x24e   : > { %v3024_v10 = vld.sshfl [vmem:[#allocation1] sm:$0xff pattern:$0x75316420]  ;;  %v2341_v11 = vpop.f32.mrf.mxu3 }
 0x24f   : > { %3062 = vst [vmem:[#allocation1] ss:$2 sm:$0xff] %v4431_v6  ;;  %v2345_v16 = vadd.f32 %v2341_v11, %v2301_v4  ;;  %v4483_v4 = vld [vmem:[%s5521_s1 + $0x90] sm:$0x3]  ;;  %v4469_v11 = vld [vmem:[%s4698_s29 + $0xeb] sm:$0xf] }
 0x250   : > { %v3025_v18 = vld.sshfl [vmem:[#allocation1 + $0x10] sm:$0xff pattern:$0x75316420]  ;;  %3064 = vst [vmem:[#allocation1 + $0x1] ss:$2 sm:$0xff] %v4432_v7 }
 0x251   : > { %v3028_v19 = vpack.c.bf16 %v3025_v18, %v3024_v10  ;;  %3066 = vst [vmem:[#allocation1 + $0x10] ss:$2 sm:$0xff] %v4433_v9  ;;  %v2385_v20 = vpop.f32.mrf.mxu0  ;;  %v4467_v9 = vld [vmem:[%s4698_s29 + $0xdb] sm:$0xf]  ;;  %v4468_v10 = vld [vmem:[%s4698_s29 + $0xe3] sm:$0xf] }
 0x252   : > { %3068 = vst [vmem:[#allocation1 + $0x11] ss:$2 sm:$0xff] %v4434_v15  ;;  %v2427_v21 = vpop.f32.mrf.mxu1  ;;  %v5322_v27 = vadd.f32 %v2385_v20, %v2345_v16  ;;  %v4489_v15 = vld [vmem:[%s5521_s1 + $0x92] sm:$0x3]  ;;  %v4473_v20 = vld [vmem:[%s4698_s29 + $0x9c] sm:$0xf] }
 0x253   : > { %4430 = vmatmul.msk.bf16.vlgmr.msra.gmra.mxu3 %vm270_vm1, %v3028_v19  ;;  %v2432_v23 = vadd.f32 %v2427_v21, %v2388_v5  ;;  %v3433_v5 = vsel %vm274_vm0, %v4483_v4, 0  ;;  %v4470_v16 = vld [vmem:[%s4698_s29 + $0xf3] sm:$0xf]  ;;  %v3478_v17 = vsel %vm274_vm0, %v4489_v15, 0  ;;  %v4474_v21 = vld [vmem:[%s4698_s29 + $0xa4] sm:$0xf] }
 0x254   : > { %3397 = vmatpush.bf16.msra.mxu3 %v3388_v61  ;;  %v4504_v4 = vld [vmem:[%s4698_s29 + $0x2a] sm:$0xf] }
 0x255   : > { %v4510_v15 = vld [vmem:[%s4698_s29 + $0x6a] sm:$0xf] }
 0x257   : > { %v3069_v26 = vld.sshfl [vmem:[#allocation1] sm:$0xff pattern:$0x75316420] }
 0x258   : > { %3106 = vst [vmem:[#allocation1] ss:$2 sm:$0xff] %v4437_v60 }
 0x259   : > { %v3070_v31 = vld.sshfl [vmem:[#allocation1 + $0x10] sm:$0xff pattern:$0x75316420]  ;;  %3108 = vst [vmem:[#allocation1 + $0x1] ss:$2 sm:$0xff] %v4438_v24 }
 0x25a   : > { %v3073_v0 = vpack.c.bf16 %v3070_v31, %v3069_v26  ;;  %3110 = vst [vmem:[#allocation1 + $0x10] ss:$2 sm:$0xff] %v4439_v25  ;;  %v4495_v24 = vld [vmem:[%s5521_s1 + $0x94] sm:$0x3]  ;;  %v4480_v31 = vld [vmem:[%s4698_s29 + $0x28] sm:$0xf] }
 0x25b   : > { %3112 = vst [vmem:[#allocation1 + $0x11] ss:$2 sm:$0xff] %v4440_v29  ;;  %v4476_v25 = vld [vmem:[%s4698_s29 + $0xb4] sm:$0xf]  ;;  %v3522_v26 = vsel %vm274_vm0, %v4495_v24, 0 }
 0x25c   : > { %4436 = vmatmul.msk.bf16.vlgmr.msra.gmra.mxu0 %vm270_vm1, %v3073_v0  ;;  %v4481_v0 = vld [vmem:[%s4698_s29 + $0x30] sm:$0xf] }
 0x25d   : > { %3442 = vmatpush.bf16.msra.mxu0 %v3433_v5  ;;  %v4517_v24 = vld [vmem:[%s4698_s29 + $0x33] sm:$0xf] }
 0x260   : > { %v3113_v35 = vld.sshfl [vmem:[#allocation1] sm:$0xff pattern:$0x75316420] }
 0x261   : > { %3150 = vst [vmem:[#allocation1] ss:$2 sm:$0xff] %v4443_v32  ;;  %v2471_v38 = vpop.f32.mrf.mxu2 }
 0x262   : > { %v3114_v8 = vld.sshfl [vmem:[#allocation1 + $0x10] sm:$0xff pattern:$0x75316420]  ;;  %3152 = vst [vmem:[#allocation1 + $0x1] ss:$2 sm:$0xff] %v4444_v33  ;;  %v2476_v40 = vadd.f32 %v2471_v38, %v2432_v23 }
 0x263   : > { %v3117_v42 = vpack.c.bf16 %v3114_v8, %v3113_v35  ;;  %3154 = vst [vmem:[#allocation1 + $0x10] ss:$2 sm:$0xff] %v4445_v34  ;;  %v4475_v23 = vld [vmem:[%s4698_s29 + $0xac] sm:$0xf]  ;;  %v4501_v33 = vld [vmem:[%s5521_s1 + $0x96] sm:$0x3] }
 0x264   : > { %3156 = vst [vmem:[#allocation1 + $0x11] ss:$2 sm:$0xff] %v4446_v37  ;;  %v4482_v34 = vld [vmem:[%s4698_s29 + $0x38] sm:$0xf]  ;;  %v3566_v35 = vsel %vm274_vm0, %v4501_v33, 0 }
 0x265   : > { %4442 = vmatmul.msk.bf16.vlgmr.msrb.gmra.mxu1 %vm270_vm1, %v3117_v42  ;;  %v4485_v38 = vld [vmem:[%s4698_s29 + $0x60] sm:$0xf]  ;;  %v4487_v8 = vld [vmem:[%s4698_s29 + $0x70] sm:$0xf]  ;;  %v4507_v42 = vld [vmem:[%s5521_s1 + $0x98] sm:$0x3] }
 0x266   : > { %3487 = vmatpush.bf16.msrb.mxu1 %v3478_v17  ;;  %v4511_v17 = vld [vmem:[%s4698_s29 + $0x72] sm:$0xf] }
 0x269   : > { %v3157_v46 = vld.sshfl [vmem:[#allocation1] sm:$0xff pattern:$0x75316420] }
 0x26a   : > { %3194 = vst [vmem:[#allocation1] ss:$2 sm:$0xff] %v4449_v43  ;;  %v2515_v50 = vpop.f32.mrf.mxu3  ;;  %v4488_v43 = vld [vmem:[%s4698_s29 + $0x78] sm:$0xf] }
 0x26b   : > { %v3158_v51 = vld.sshfl [vmem:[#allocation1 + $0x10] sm:$0xff pattern:$0x75316420]  ;;  %3196 = vst [vmem:[#allocation1 + $0x1] ss:$2 sm:$0xff] %v4450_v13  ;;  %v2520_v52 = vadd.f32 %v2515_v50, %v2476_v40  ;;  %v3610_v13 = vsel %vm274_vm0, %v4507_v42, 0 }
 0x26c   : > { %v3161_v53 = vpack.c.bf16 %v3158_v51, %v3157_v46  ;;  %3198 = vst [vmem:[#allocation1 + $0x10] ss:$2 sm:$0xff] %v4451_v45  ;;  %v4493_v50 = vld [vmem:[%s4698_s29 + $0x31] sm:$0xf] }
 0x26d   : > { %3200 = vst [vmem:[#allocation1 + $0x11] ss:$2 sm:$0xff] %v4452_v48  ;;  %v2559_v54 = vpop.f32.mrf.mxu0  ;;  %v4492_v48 = vld [vmem:[%s4698_s29 + $0x29] sm:$0xf] }
 0x26e   : > { %4448 = vmatmul.msk.bf16.vlgmr.msra.gmra.mxu2 %vm270_vm1, %v3161_v53  ;;  %v5352_v55 = vadd.f32 %v2559_v54, %v2520_v52  ;;  %v4513_v52 = vld [vmem:[%s5521_s1 + $0x9a] sm:$0x3]  ;;  %v4519_v54 = vld [vmem:[%s5521_s1 + $0x9c] sm:$0x3] }
 0x26f   : > { %3531 = vmatpush.bf16.msra.mxu2 %v3522_v26  ;;  %v3654_v53 = vsel %vm274_vm0, %v4513_v52, 0 }
 0x272   : > { %v3201_v41 = vld.sshfl [vmem:[#allocation1] sm:$0xff pattern:$0x75316420] }
 0x273   : > { %3238 = vst [vmem:[#allocation1] ss:$2 sm:$0xff] %v4455_v56 }
 0x274   : > { %v3202_v62 = vld.sshfl [vmem:[#allocation1 + $0x10] sm:$0xff pattern:$0x75316420]  ;;  %3240 = vst [vmem:[#allocation1 + $0x1] ss:$2 sm:$0xff] %v4456_v57  ;;  %v3698_v57 = vsel %vm274_vm0, %v4519_v54, 0 }
 0x275   : > { %v3205_v63 = vpack.c.bf16 %v3202_v62, %v3201_v41  ;;  %3242 = vst [vmem:[#allocation1 + $0x10] ss:$2 sm:$0xff] %v4457_v58  ;;  %v4497_v41 = vld [vmem:[%s4698_s29 + $0x61] sm:$0xf]  ;;  %v4525_v62 = vld [vmem:[%s5521_s1 + $0x9e] sm:$0x3] }
 0x276   : > { %3244 = vst [vmem:[#allocation1 + $0x11] ss:$2 sm:$0xff] %v4458_v59  ;;  %v4499_v59 = vld [vmem:[%s4698_s29 + $0x71] sm:$0xf] }
 0x277   : > { %4454 = vmatmul.msk.bf16.vlgmr.msrb.gmra.mxu3 %vm270_vm1, %v3205_v63  ;;  %v4500_v63 = vld [vmem:[%s4698_s29 + $0x79] sm:$0xf] }
 0x278   : > { %3575 = vmatpush.bf16.msrb.mxu3 %v3566_v35  ;;  %v4527_v35 = vld [vmem:[%s4698_s29 + $0x24] sm:$0xf] }
 0x27b   : > { %v3245_v14 = vld.sshfl [vmem:[#allocation1] sm:$0xff pattern:$0x75316420] }
 0x27c   : > { %3282 = vst [vmem:[#allocation1] ss:$2 sm:$0xff] %v4461_v1  ;;  %v3742_v1 = vsel %vm274_vm0, %v4525_v62, 0 }
 0x27d   : > { %v3246_v6 = vld.sshfl [vmem:[#allocation1 + $0x10] sm:$0xff pattern:$0x75316420]  ;;  %3284 = vst [vmem:[#allocation1 + $0x1] ss:$2 sm:$0xff] %v4462_v2 }
 0x27e   : > { %v3249_v7 = vpack.c.bf16 %v3246_v6, %v3245_v14  ;;  %3286 = vst [vmem:[#allocation1 + $0x10] ss:$2 sm:$0xff] %v4463_v3  ;;  %v4503_v14 = vld [vmem:[%s4698_s29 + $0x22] sm:$0xf]  ;;  %v4531_v6 = vld [vmem:[%s5521_s1 + $0xa0] sm:$0x3] }
 0x27f   : > { %3288 = vst [vmem:[#allocation1 + $0x11] ss:$2 sm:$0xff] %v4464_v22  ;;  %v4505_v22 = vld [vmem:[%s4698_s29 + $0x32] sm:$0xf] }
 0x280   : > { %4460 = vmatmul.msk.bf16.vlgmr.msrb.gmra.mxu0 %vm270_vm1, %v3249_v7  ;;  %v4506_v7 = vld [vmem:[%s4698_s29 + $0x3a] sm:$0xf] }
 0x281   : > { %3619 = vmatpush.bf16.msrb.mxu0 %v3610_v13  ;;  %v2429_v13 = vpop.f32.mrf.mxu1 }
 0x284   : > { %v3289_v12 = vld.sshfl [vmem:[#allocation1] sm:$0xff pattern:$0x75316420] }
 0x285   : > { %3326 = vst [vmem:[#allocation1] ss:$2 sm:$0xff] %v4467_v9  ;;  %v3786_v9 = vsel %vm274_vm0, %v4531_v6, 0  ;;  %v2433_v6 = vadd.f32 %v2429_v13, %v5322_v27 }
 0x286   : > { %v3290_v18 = vld.sshfl [vmem:[#allocation1 + $0x10] sm:$0xff pattern:$0x75316420]  ;;  %3328 = vst [vmem:[#allocation1 + $0x1] ss:$2 sm:$0xff] %v4468_v10 }
 0x287   : > { %v3293_v19 = vpack.c.bf16 %v3290_v18, %v3289_v12  ;;  %3330 = vst [vmem:[#allocation1 + $0x10] ss:$2 sm:$0xff] %v4469_v11  ;;  %v4509_v12 = vld [vmem:[%s4698_s29 + $0x62] sm:$0xf]  ;;  %v4512_v18 = vld [vmem:[%s4698_s29 + $0x7a] sm:$0xf] }
 0x288   : > { %3332 = vst [vmem:[#allocation1 + $0x11] ss:$2 sm:$0xff] %v4470_v16 }
 0x289   : > { %4466 = vmatmul.msk.bf16.vlgmr.msra.gmra.mxu1 %vm270_vm1, %v3293_v19 }
 0x28a   : > { %3663 = vmatpush.bf16.msra.mxu1 %v3654_v53 }
 0x28d   : > { %v3333_v60 = vld.sshfl [vmem:[#allocation1] sm:$0xff pattern:$0x75316420] }
 0x28e   : > { %3370 = vst [vmem:[#allocation1] ss:$2 sm:$0xff] %v4473_v20 }
 0x28f   : > { %v3334_v28 = vld.sshfl [vmem:[#allocation1 + $0x10] sm:$0xff pattern:$0x75316420]  ;;  %3372 = vst [vmem:[#allocation1 + $0x1] ss:$2 sm:$0xff] %v4474_v21 }
 0x290   : > { %v3337_v29 = vpack.c.bf16 %v3334_v28, %v3333_v60  ;;  %3374 = vst [vmem:[#allocation1 + $0x10] ss:$2 sm:$0xff] %v4475_v23  ;;  %v4515_v21 = vld [vmem:[%s4698_s29 + $0x23] sm:$0xf]  ;;  %v4516_v23 = vld [vmem:[%s4698_s29 + $0x2b] sm:$0xf] }
 0x291   : > { %3376 = vst [vmem:[#allocation1 + $0x11] ss:$2 sm:$0xff] %v4476_v25  ;;  %v4518_v25 = vld [vmem:[%s4698_s29 + $0x3b] sm:$0xf] }
 0x292   : > { %4472 = vmatmul.msk.bf16.vlgmr.msrb.gmra.mxu2 %vm270_vm1, %v3337_v29  ;;  %v4521_v29 = vld [vmem:[%s4698_s29 + $0x63] sm:$0xf] }
 0x293   : > { %3707 = vmatpush.bf16.msrb.mxu2 %v3698_v57 }
 0x296   : > { %v3377_v32 = vld.sshfl [vmem:[#allocation1] sm:$0xff pattern:$0x75316420] }
 0x297   : > { %3415 = vst [vmem:[#allocation1] ss:$2 sm:$0xff] %v4479_v30  ;;  %v4522_v30 = vld [vmem:[%s4698_s29 + $0x6b] sm:$0xf] }
 0x298   : > { %v3378_v36 = vld.sshfl [vmem:[#allocation1 + $0x10] sm:$0xff pattern:$0x75316420]  ;;  %3417 = vst [vmem:[#allocation1 + $0x1] ss:$2 sm:$0xff] %v4480_v31 }
 0x299   : > { %v3381_v37 = vpack.c.bf16 %v3378_v36, %v3377_v32  ;;  %3419 = vst [vmem:[#allocation1 + $0x10] ss:$2 sm:$0xff] %v4481_v0  ;;  %v4523_v0 = vld [vmem:[%s4698_s29 + $0x73] sm:$0xf]  ;;  %v4524_v32 = vld [vmem:[%s4698_s29 + $0x7b] sm:$0xf] }
 0x29a   : > { %3421 = vst [vmem:[#allocation1 + $0x11] ss:$2 sm:$0xff] %v4482_v34  ;;  %v4528_v36 = vld [vmem:[%s4698_s29 + $0x2c] sm:$0xf] }
 0x29b   : > { %4478 = vmatmul.msk.bf16.vlgmr.msra.gmra.mxu3 %vm270_vm1, %v3381_v37 }
 0x29c   : > { %3751 = vmatpush.bf16.msra.mxu3 %v3742_v1 }
 0x29f   : > { %v3422_v40 = vld.sshfl [vmem:[#allocation1] sm:$0xff pattern:$0x75316420] }
 0x2a0   : > { %3460 = vst [vmem:[#allocation1] ss:$2 sm:$0xff] %v4485_v38  ;;  %v4529_v38 = vld [vmem:[%s4698_s29 + $0x34] sm:$0xf] }
 0x2a1   : > { %v3423_v45 = vld.sshfl [vmem:[#allocation1 + $0x10] sm:$0xff pattern:$0x75316420]  ;;  %3462 = vst [vmem:[#allocation1 + $0x1] ss:$2 sm:$0xff] %v4486_v39 }
 0x2a2   : > { %v3426_v46 = vpack.c.bf16 %v3423_v45, %v3422_v40  ;;  %3464 = vst [vmem:[#allocation1 + $0x10] ss:$2 sm:$0xff] %v4487_v8  ;;  %v4530_v39 = vld [vmem:[%s4698_s29 + $0x3c] sm:$0xf] }
 0x2a3   : > { %3466 = vst [vmem:[#allocation1 + $0x11] ss:$2 sm:$0xff] %v4488_v43 }
 0x2a4   : > { %4484 = vmatmul.msk.bf16.vlgmr.msra.gmra.mxu0 %vm270_vm1, %v3426_v46  ;;  %v2473_v46 = vpop.f32.mrf.mxu2 }
 0x2a5   : > { %3795 = vmatpush.bf16.msra.mxu0 %v3786_v9 }
 0x2a8   : > { %v3467_v51 = vld.sshfl [vmem:[#allocation1] sm:$0xff pattern:$0x75316420] }
 0x2a9   : > { %3504 = vst [vmem:[#allocation1] ss:$2 sm:$0xff] %v4491_v47  ;;  %v2517_v47 = vpop.f32.mrf.mxu3 }
 0x2aa   : > { %v3468_v56 = vld.sshfl [vmem:[#allocation1 + $0x10] sm:$0xff pattern:$0x75316420]  ;;  %3506 = vst [vmem:[#allocation1 + $0x1] ss:$2 sm:$0xff] %v4492_v48  ;;  %v2603_v48 = vpop.f32.mrf.mxu1 }
 0x2ab   : > { %v3471_v58 = vpack.c.bf16 %v3468_v56, %v3467_v51  ;;  %3508 = vst [vmem:[#allocation1 + $0x10] ss:$2 sm:$0xff] %v4493_v50 }
 0x2ac   : > { %3510 = vst [vmem:[#allocation1 + $0x11] ss:$2 sm:$0xff] %v4494_v49  ;;  %v2648_v50 = vpop.f32.mrf.mxu2  ;;  %v2561_v49 = vpop.f32.mrf.mxu0 }
 0x2ad   : > { %4490 = vmatmul.msk.bf16.vlgmr.msrb.gmra.mxu1 %vm270_vm1, %v3471_v58 }
 0x2b1   : > { %v3511_v61 = vld.sshfl [vmem:[#allocation1] sm:$0xff pattern:$0x75316420]  ;;  %v2693_v51 = vpop.f32.mrf.mxu3 }
 0x2b2   : > { %3548 = vst [vmem:[#allocation1] ss:$2 sm:$0xff] %v4497_v41  ;;  %v2605_v52 = vpop.f32.mrf.mxu1 }
 0x2b3   : > { %v3512_v2 = vld.sshfl [vmem:[#allocation1 + $0x10] sm:$0xff pattern:$0x75316420]  ;;  %3550 = vst [vmem:[#allocation1 + $0x1] ss:$2 sm:$0xff] %v4498_v44 }
 0x2b4   : > { %v3515_v3 = vpack.c.bf16 %v3512_v2, %v3511_v61  ;;  %3552 = vst [vmem:[#allocation1 + $0x10] ss:$2 sm:$0xff] %v4499_v59  ;;  %v2737_v53 = vpop.f32.mrf.mxu0  ;;  %v2650_v54 = vpop.f32.mrf.mxu2 }
 0x2b5   : > { %3554 = vst [vmem:[#allocation1 + $0x11] ss:$2 sm:$0xff] %v4500_v63 }
 0x2b6   : > { %4496 = vmatmul.msk.bf16.vlgmr.msra.gmra.mxu2 %vm270_vm1, %v3515_v3 }
 0x2b9   : > { %v2695_v56 = vpop.f32.mrf.mxu3 }
 0x2ba   : > { %v3555_v5 = vld.sshfl [vmem:[#allocation1] sm:$0xff pattern:$0x75316420]  ;;  %v2781_v57 = vpop.f32.mrf.mxu1 }
 0x2bb   : > { %3592 = vst [vmem:[#allocation1] ss:$2 sm:$0xff] %v4503_v14 }
 0x2bc   : > { %v3556_v10 = vld.sshfl [vmem:[#allocation1 + $0x10] sm:$0xff pattern:$0x75316420]  ;;  %3594 = vst [vmem:[#allocation1 + $0x1] ss:$2 sm:$0xff] %v4504_v4  ;;  %v2825_v58 = vpop.f32.mrf.mxu2  ;;  %v2739_v41 = vpop.f32.mrf.mxu0 }
 0x2bd   : > { %v3559_v11 = vpack.c.bf16 %v3556_v10, %v3555_v5  ;;  %3596 = vst [vmem:[#allocation1 + $0x10] ss:$2 sm:$0xff] %v4505_v22 }
 0x2be   : > { %3598 = vst [vmem:[#allocation1 + $0x11] ss:$2 sm:$0xff] %v4506_v7  ;;  %v2477_v7 = vadd.f32 %v2473_v46, %v2433_v6 }
 0x2bf   : > { %4502 = vmatmul.msk.bf16.vlgmr.msrb.gmra.mxu3 %vm270_vm1, %v3559_v11 }
 0x2c0   : > { %v2521_v11 = vadd.f32 %v2517_v47, %v2477_v7 }
 0x2c1   : > { %v2869_v44 = vpop.f32.mrf.mxu3 }
 0x2c2   : > { %v2783_v59 = vpop.f32.mrf.mxu1 }
 0x2c3   : > { %v3599_v16 = vld.sshfl [vmem:[#allocation1] sm:$0xff pattern:$0x75316420] }
 0x2c4   : > { %3636 = vst [vmem:[#allocation1] ss:$2 sm:$0xff] %v4509_v12  ;;  %v2913_v61 = vpop.f32.mrf.mxu0  ;;  %v2827_v62 = vpop.f32.mrf.mxu2  ;;  %v2608_v12 = vadd.f32 %v2603_v48, %v5352_v55  ;;  %v4608_v55 = vld [vmem:[%s5523_s3 + $0x38] sm:$0xff] }
 0x2c5   : > { %v3600_v19 = vld.sshfl [vmem:[#allocation1 + $0x10] sm:$0xff pattern:$0x75316420]  ;;  %3638 = vst [vmem:[#allocation1 + $0x1] ss:$2 sm:$0xff] %v4510_v15  ;;  %3877 = vmatpush.bf16.msrb.mxu1 %v4608_v55 }
 0x2c6   : > { %v3603_v20 = vpack.c.bf16 %v3600_v19, %v3599_v16  ;;  %3640 = vst [vmem:[#allocation1 + $0x10] ss:$2 sm:$0xff] %v4511_v17  ;;  %v2653_v17 = vadd.f32 %v2648_v50, %v2608_v12 }
 0x2c7   : > { %3642 = vst [vmem:[#allocation1 + $0x11] ss:$2 sm:$0xff] %v4512_v18  ;;  %v2565_v18 = vadd.f32 %v2561_v49, %v2521_v11  ;;  %v4605_v49 = vld [vmem:[%s5523_s3 + $0x20] sm:$0xff] }
 0x2c8   : > { %4508 = vmatmul.msk.bf16.vlgmr.msrb.gmra.mxu0 %vm270_vm1, %v3603_v20  ;;  %v2698_v19 = vadd.f32 %v2693_v51, %v2653_v17 }
 0x2c9   : > { %v2871_v63 = vpop.f32.mrf.mxu3  ;;  %v2609_v20 = vadd.f32 %v2605_v52, %v2565_v18 }
 0x2ca   : > { %v2957_v1 = vpop.f32.mrf.mxu1 }
 0x2cc   : > { %v3643_v60 = vld.sshfl [vmem:[#allocation1] sm:$0xff pattern:$0x75316420]  ;;  %v2915_v3 = vpop.f32.mrf.mxu0 }
 0x2cd   : > { %3680 = vst [vmem:[#allocation1] ss:$2 sm:$0xff] %v4515_v21  ;;  %v3001_v2 = vpop.f32.mrf.mxu2 }
 0x2ce   : > { %v3644_v26 = vld.sshfl [vmem:[#allocation1 + $0x10] sm:$0xff pattern:$0x75316420]  ;;  %3682 = vst [vmem:[#allocation1 + $0x1] ss:$2 sm:$0xff] %v4516_v23  ;;  %v2654_v23 = vadd.f32 %v2650_v54, %v2609_v20 }
 0x2cf   : > { %v3647_v28 = vpack.c.bf16 %v3644_v26, %v3643_v60  ;;  %3684 = vst [vmem:[#allocation1 + $0x10] ss:$2 sm:$0xff] %v4517_v24  ;;  %v2742_v60 = vadd.f32 %v2737_v53, %v2698_v19  ;;  %v4616_v19 = vld [vmem:[%s5524_s4 + $0x38] sm:$0xff] }
 0x2d0   : > { %3686 = vst [vmem:[#allocation1 + $0x11] ss:$2 sm:$0xff] %v4518_v25  ;;  %v2699_v25 = vadd.f32 %v2695_v56, %v2654_v23  ;;  %v4604_v56 = vld [vmem:[%s5523_s3 + $0x18] sm:$0xff]  ;;  %3956 = vmatpush.bf16.msra.mxu2 %v4616_v19  ;;  %v4615_v23 = vld [vmem:[%s5524_s4 + $0x30] sm:$0xff] }
 0x2d1   : > { %4514 = vmatmul.msk.bf16.vlgmr.msra.gmra.mxu1 %vm270_vm1, %v3647_v28  ;;  %v2786_v28 = vadd.f32 %v2781_v57, %v2742_v60 }
 0x2d2   : > { %v2959_v4 = vpop.f32.mrf.mxu1 }
 0x2d4   : > { %3957 = vmatpush.bf16.msra.mxu2 %v4615_v23 }
 0x2d5   : > { %v3687_v31 = vld.sshfl [vmem:[#allocation1] sm:$0xff pattern:$0x75316420]  ;;  %v3003_v5 = vpop.f32.mrf.mxu2 }
 0x2d6   : > { %3724 = vst [vmem:[#allocation1] ss:$2 sm:$0xff] %v4521_v29  ;;  %v3046_v14 = vpop.f32.mrf.mxu3  ;;  %v2830_v29 = vadd.f32 %v2825_v58, %v2786_v28 }
 0x2d7   : > { %v3688_v33 = vld.sshfl [vmem:[#allocation1 + $0x10] sm:$0xff pattern:$0x75316420]  ;;  %3726 = vst [vmem:[#allocation1 + $0x1] ss:$2 sm:$0xff] %v4522_v30  ;;  %v2743_v30 = vadd.f32 %v2739_v41, %v2699_v25 }
 0x2d8   : > { %v3691_v34 = vpack.c.bf16 %v3688_v33, %v3687_v31  ;;  %3728 = vst [vmem:[#allocation1 + $0x10] ss:$2 sm:$0xff] %v4523_v0  ;;  %v2874_v31 = vadd.f32 %v2869_v44, %v2830_v29  ;;  %v4614_v29 = vld [vmem:[%s5524_s4 + $0x28] sm:$0xff] }
 0x2d9   : > { %3730 = vst [vmem:[#allocation1 + $0x11] ss:$2 sm:$0xff] %v4524_v32  ;;  %v3091_v22 = vpop.f32.mrf.mxu0  ;;  %v2787_v0 = vadd.f32 %v2783_v59, %v2743_v30  ;;  %3958 = vmatpush.bf16.msra.mxu2 %v4614_v29 }
 0x2da   : > { %4520 = vmatmul.msk.bf16.vlgmr.msrb.gmra.mxu2 %vm270_vm1, %v3691_v34 }
 0x2db   : > { %v2831_v34 = vadd.f32 %v2827_v62, %v2787_v0  ;;  %v4603_v62 = vld [vmem:[%s5523_s3 + $0x10] sm:$0xff] }
 0x2de   : > { %v3731_v37 = vld.sshfl [vmem:[#allocation1] sm:$0xff pattern:$0x75316420]  ;;  %v3048_v9 = vpop.f32.mrf.mxu3 }
 0x2df   : > { %3768 = vst [vmem:[#allocation1] ss:$2 sm:$0xff] %v4527_v35  ;;  %v2918_v35 = vadd.f32 %v2913_v61, %v2874_v31 }
 0x2e0   : > { %v3732_v8 = vld.sshfl [vmem:[#allocation1 + $0x10] sm:$0xff pattern:$0x75316420]  ;;  %3770 = vst [vmem:[#allocation1 + $0x1] ss:$2 sm:$0xff] %v4528_v36 }
 0x2e1   : > { %v3735_v40 = vpack.c.bf16 %v3732_v8, %v3731_v37  ;;  %3772 = vst [vmem:[#allocation1 + $0x10] ss:$2 sm:$0xff] %v4529_v38  ;;  %v3093_v16 = vpop.f32.mrf.mxu0  ;;  %v2875_v37 = vadd.f32 %v2871_v63, %v2831_v34  ;;  %v2962_v8 = vadd.f32 %v2957_v1, %v2918_v35 }
 0x2e2   : > { %3774 = vst [vmem:[#allocation1 + $0x11] ss:$2 sm:$0xff] %v4530_v39  ;;  %v3135_v10 = vpop.f32.mrf.mxu1  ;;  %v4607_v39 = vld [vmem:[%s5523_s3 + $0x30] sm:$0xff] }
 0x2e3   : > { %4526 = vmatmul.msk.bf16.vlgmr.msra.gmra.mxu3 %vm270_vm1, %v3735_v40  ;;  %3878 = vmatpush.bf16.msrb.mxu1 %v4607_v39  ;;  %v4606_v40 = vld [vmem:[%s5523_s3 + $0x28] sm:$0xff] }
 0x2e7   : > { %v3775_v42 = vld.sshfl [vmem:[#allocation1] sm:$0xff pattern:$0x75316420]  ;;  %3879 = vmatpush.bf16.msrb.mxu1 %v4606_v40 }
 0x2e9   : > { %v3776_v43 = vld.sshfl [vmem:[#allocation1 + $0x10] sm:$0xff pattern:$0x75316420] }
 0x2ea   : > { %v3779_v45 = vpack.c.bf16 %v3776_v43, %v3775_v42  ;;  %v3137_v24 = vpop.f32.mrf.mxu1  ;;  %v3006_v42 = vadd.f32 %v3001_v2, %v2962_v8  ;;  %v2919_v43 = vadd.f32 %v2915_v3, %v2875_v37 }
 0x2eb   : > { %3880 = vmatpush.bf16.msrb.mxu1 %v4605_v49 }
 0x2ec   : > { %4532 = vmatmul.msk.bf16.vlgmr.msra.gmra.mxu0 %vm270_vm1, %v3779_v45  ;;  %v3051_v13 = vadd.f32 %v3046_v14, %v3006_v42  ;;  %v2963_v46 = vadd.f32 %v2959_v4, %v2919_v43  ;;  %v4602_v4 = vld [vmem:[%s5523_s3 + $0x8] sm:$0xff] }
 0x2ee   : > { %v3007_v48 = vadd.f32 %v3003_v5, %v2963_v46  ;;  %v3096_v51 = vadd.f32 %v3091_v22, %v3051_v13  ;;  %v4625_v46 = vld [vmem:[%s5522_s2] ss:$0 sm:$0xff] }
 0x2ef   : > { %3881 = vmatpush.bf16.msrb.mxu1 %v4604_v56 }
 0x2f0   : > { %v3052_v53 = vadd.f32 %v3048_v9, %v3007_v48  ;;  %v3140_v54 = vadd.f32 %v3135_v10, %v3096_v51  ;;  %v4601_v9 = vld [vmem:[%s5523_s3] sm:$0xff] }
 0x2f1   : > { %v3179_v15 = vpop.f32.mrf.mxu2 }
 0x2f2   : > { %v3184_v57 = vadd.f32 %v3179_v15, %v3140_v54  ;;  %v3097_v58 = vadd.f32 %v3093_v16, %v3052_v53 }
 0x2f3   : > { %3882 = vmatpush.bf16.msrb.mxu1 %v4603_v62 }
 0x2f4   : > { %v3141_v61 = vadd.f32 %v3137_v24, %v3097_v58  ;;  %v4610_v58 = vld [vmem:[%s5524_s4 + $0x8] sm:$0xff] }
 0x2f7   : > { %3883 = vmatpush.bf16.msrb.mxu1 %v4602_v4 }
 0x2f9   : > { %v3181_v27 = vpop.f32.mrf.mxu2 }
 0x2fa   : > { %v3223_v21 = vpop.f32.mrf.mxu3  ;;  %v3185_v1 = vadd.f32 %v3181_v27, %v3141_v61 }
 0x2fb   : > { %v3228_v41 = vadd.f32 %v3223_v21, %v3184_v57  ;;  %3884 = vmatpush.bf16.msrb.mxu1 %v4601_v9  ;;  %v4611_v57 = vld [vmem:[%s5524_s4 + $0x10] sm:$0xff] }
 0x2fd   : > { %v3267_v26 = vpop.f32.mrf.mxu0 }
 0x2fe   : > { %v3272_v3 = vadd.f32 %v3267_v26, %v3228_v41  ;;  %v4609_v41 = vld [vmem:[%s5524_s4] sm:$0xff] }
 0x302   : > { %v3225_v32 = vpop.f32.mrf.mxu3 }
 0x303   : > { %v3229_v14 = vadd.f32 %v3225_v32, %v3185_v1  ;;  %v4613_v32 = vld [vmem:[%s5524_s4 + $0x20] sm:$0xff] }
 0x304   : > { %3959 = vmatpush.bf16.msra.mxu2 %v4613_v32 }
 0x305   : > { %v3269_v38 = vpop.f32.mrf.mxu0 }
 0x306   : > { %v3311_v33 = vpop.f32.mrf.mxu1  ;;  %v3273_v7 = vadd.f32 %v3269_v38, %v3229_v14  ;;  %v4612_v38 = vld [vmem:[%s5524_s4 + $0x18] sm:$0xff] }
 0x307   : > { %v3316_v22 = vadd.f32 %v3311_v33, %v3272_v3 }
 0x308   : > { %3960 = vmatpush.bf16.msra.mxu2 %v4612_v38 }
 0x30c   : > { %3961 = vmatpush.bf16.msra.mxu2 %v4611_v57 }
 0x30e   : > { %v3313_v47 = vpop.f32.mrf.mxu1 }
 0x30f   : > { %v3317_v12 = vadd.f32 %v3313_v47, %v3273_v7 }
 0x310   : > { %3962 = vmatpush.bf16.msra.mxu2 %v4610_v58 }
 0x314   : > { %3963 = vmatpush.bf16.msra.mxu2 %v4609_v41 }
 0x315   : > { %v3355_v36 = vpop.f32.mrf.mxu2 }
 0x316   : > { %v3360_v5 = vadd.f32 %v3355_v36, %v3316_v22 }
 0x31d   : > { %v3357_v52 = vpop.f32.mrf.mxu2 }
 0x31e   : > { %v3399_v45 = vpop.f32.mrf.mxu3  ;;  %v3361_v17 = vadd.f32 %v3357_v52, %v3317_v12 }
 0x31f   : > { %v3404_v10 = vadd.f32 %v3399_v45, %v3360_v5 }
 0x321   : > { %v3444_v50 = vpop.f32.mrf.mxu0 }
 0x322   : > { %v3449_v18 = vadd.f32 %v3444_v50, %v3404_v10 }
 0x326   : > { %v3401_v44 = vpop.f32.mrf.mxu3 }
 0x327   : > { %v3405_v20 = vadd.f32 %v3401_v44, %v3361_v17 }
 0x329   : > { %v3446_v2 = vpop.f32.mrf.mxu0 }
 0x32a   : > { %v3489_v59 = vpop.f32.mrf.mxu1  ;;  %v3450_v26 = vadd.f32 %v3446_v2, %v3405_v20 }
 0x32b   : > { %v3494_v21 = vadd.f32 %v3489_v59, %v3449_v18 }
 0x332   : > { %v3491_v11 = vpop.f32.mrf.mxu1 }
 0x333   : > { %v3495_v30 = vadd.f32 %v3491_v11, %v3450_v26 }
 0x339   : > { %v3533_v63 = vpop.f32.mrf.mxu2 }
 0x33a   : > { %v3538_v60 = vadd.f32 %v3533_v63, %v3494_v21 }
 0x341   : > { %v3535_v16 = vpop.f32.mrf.mxu2 }
 0x342   : > { %v3577_v6 = vpop.f32.mrf.mxu3  ;;  %v3539_v31 = vadd.f32 %v3535_v16, %v3495_v30 }
 0x343   : > { %v3582_v28 = vadd.f32 %v3577_v6, %v3538_v60 }
 0x345   : > { %v3621_v15 = vpop.f32.mrf.mxu0 }
 0x346   : > { %v3626_v0 = vadd.f32 %v3621_v15, %v3582_v28 }
 0x34a   : > { %v3579_v24 = vpop.f32.mrf.mxu3 }
 0x34b   : > { %v3583_v33 = vadd.f32 %v3579_v24, %v3539_v31 }
 0x34d   : > { %v3623_v55 = vpop.f32.mrf.mxu0 }
 0x34e   : > { %v3665_v25 = vpop.f32.mrf.mxu1  ;;  %v3627_v39 = vadd.f32 %v3623_v55, %v3583_v33 }
 0x34f   : > { %v3670_v34 = vadd.f32 %v3665_v25, %v3626_v0 }
 0x356   : > { %v3667_v36 = vpop.f32.mrf.mxu1 }
 0x357   : > { %v3671_v43 = vadd.f32 %v3667_v36, %v3627_v39 }
 0x35d   : > { %v3709_v27 = vpop.f32.mrf.mxu2 }
 0x35e   : > { %v3714_v37 = vadd.f32 %v3709_v27, %v3670_v34 }
 0x365   : > { %v3711_v40 = vpop.f32.mrf.mxu2 }
 0x366   : > { %v3753_v35 = vpop.f32.mrf.mxu3  ;;  %v3715_v13 = vadd.f32 %v3711_v40, %v3671_v43 }
 0x367   : > { %v3758_v42 = vadd.f32 %v3753_v35, %v3714_v37 }
 0x369   : > { %v3797_v8 = vpop.f32.mrf.mxu0 }
 0x36a   : > { %v3802_v45 = vadd.f32 %v3797_v8, %v3758_v42 }
 0x36c   : > { %v3808_v49 = vadd.f32 %v4625_v46, %v3802_v45 }
 0x36e   : > { %v3755_v47 = vpop.f32.mrf.mxu3  ;;  %v3810_v53 = vmul.f32 %v3808_v49, %v3808_v49 }
 0x36f   : > { %v3759_v48 = vadd.f32 %v3755_v47, %v3715_v13 }
 0x371   : > { %v3799_v50 = vpop.f32.mrf.mxu0 }
 0x372   : > { %v3803_v51 = vadd.f32 %v3799_v50, %v3759_v48 }
 0x374   : > { %v3809_v52 = vadd.f32 %v4625_v46, %v3803_v51 }
 0x376   : > { %v3811_v54 = vmul.f32 %v3809_v52, %v3809_v52 }
 0x378   : > { %v3812_v56 = vpack.c.bf16 %v3811_v54, %v3810_v53 }
 0x37a   : > { %3885 = vmatmul.bf16.vlgmr.msrb.gmra.mxu1 %v3812_v56 }
 0x3f7   : > { %v3886_v44 = vpop.f32.mrf.mxu1 }
 0x3ff   : > { %v3888_v59 = vpop.f32.mrf.mxu1 }
 0x400   : > { %v3891_v61 = vpack.c.bf16 %v3888_v59, %v3886_v44 }
 0x402   : > { %3964 = vmatmul.bf16.vlgmr.msra.gmra.mxu2 %v3891_v61 }
 0x485   : > { %v3965_v62 = vpop.f32.mrf.mxu2 }
 0x486   : > { %v3970_v63 = vadd.f32 1e-12, %v3965_v62  ;;  %v3994_v22 = vadd.f32 1.0, %v3965_v62 }
 0x488   : > { %4626 = vrsqrt.f32 %v3970_v63  ;;  %vm3978_vm3 = vweird.f32 %v3970_v63 }
 0x48d   : > { %v3967_v1 = vpop.f32.mrf.mxu2 }
 0x48e   : > { %v4627_v2 = vpop.eup %4626  ;;  %v3971_v3 = vadd.f32 1e-12, %v3967_v1  ;;  %v3995_v15 = vadd.f32 1.0, %v3967_v1 }
 0x48f   : > { %v3973_v14 = vmul.f32 %v4627_v2, %v3970_v63  ;;  %vm3979_vm2 = vweird.f32 %v4627_v2 }
 0x490   : > { %4628 = vrsqrt.f32 %v3971_v3  ;;  %vm3980_vm4 = vmor %vm3978_vm3, %vm3979_vm2  ;;  %vm3988_vm6 = vweird.f32 %v3971_v3 }
 0x491   : > { %v3974_v4 = vmul.f32 %v4627_v2, %v3973_v14  ;;  %4630 = vrcp.f32 %v3994_v22 }
 0x492   : > { %4632 = vrcp.f32 %v3995_v15 }
 0x493   : > { %v3975_v5 = vmul.f32 0.5, %v3974_v4 }
 0x495   : > { %v3976_v6 = vsub.f32 1.5, %v3975_v5 }
 0x496   : > { %v4629_v7 = vpop.eup %4628 }
 0x497   : > { %v3977_v9 = vmul.f32 %v4627_v2, %v3976_v6  ;;  %v3983_v10 = vmul.f32 %v4629_v7, %v3971_v3  ;;  %v4631_v17 = vpop.eup %4630  ;;  %vm3989_vm5 = vweird.f32 %v4629_v7 }
 0x498   : > { %vm3990_vm7 = vmor %vm3988_vm6, %vm3989_vm5  ;;  %v4633_v25 = vpop.eup %4632 }
 0x499   : > { %v3981_v11 = vsel %vm3980_vm4, %v4627_v2, %v3977_v9  ;;  %v3984_v12 = vmul.f32 %v4629_v7, %v3983_v10 }
 0x49a   : > { %v3992_v16 = vmul.f32 %v3981_v11, %v3965_v62 }
 0x49b   : > { %v3985_v18 = vmul.f32 0.5, %v3984_v12 }
 0x49c   : > { %v3998_v19 = vmul.f32 %v4631_v17, %v3992_v16 }
 0x49d   : > { %v3986_v20 = vsub.f32 1.5, %v3985_v18 }
 0x49e   : > { %v4000_v21 = vmul.f32 %v3998_v19, %v3808_v49 }
 0x49f   : > { %v3987_v23 = vmul.f32 %v4629_v7, %v3986_v20 }
 0x4a0   : > { %4002 = vst [vmem:[%s224_s22] sm:$0xff] %v4000_v21 }
 0x4a1   : > { %v3991_v60 = vsel %vm3990_vm7, %v4629_v7, %v3987_v23 }
 0x4a2   : > { %v3993_v24 = vmul.f32 %v3991_v60, %v3967_v1 }
 0x4a4   : > { %v3999_v26 = vmul.f32 %v4633_v25, %v3993_v24 }
 0x4a6   : > { %v4001_v28 = vmul.f32 %v3999_v26, %v3809_v52 }
 0x4a8   : > { %4003 = vst [vmem:[%s224_s22 + $0x8] sm:$0xff] %v4001_v28 }
 0x4a9 PF: > { %s15_s18 = sadd.s32 1, %s4640_s18  }
 0x4aa   : > { %p12_p4 = scmp.ge.s32.totalorder %s15_s18, 4  }
 0x4ac   :  { %14 = sbr.rel (!%p12_p4) target bundleno = 1 (0x1), region = 410 }

</bundles_post_ra>
